<compile_context>
chip_gen: v7x
topology: tpu7x:2x2x1
jax: 0.10.0
libtpu: 0.0.40
codegen_flags: <defaults>
</compile_context>

<pallas_src>
import functools

import jax
import jax.numpy as jnp
import numpy as np
from jax.experimental import pallas as pl
from jax.experimental.pallas import tpu as pltpu

TM_MAX = 512                      # row tile (output patches per grid step)
TK_MAX = 512                      # K (reduction) tile, multiple of 256 for v6e/v7x MXU
N_LANE = 128                      # pad Cout up to a lane-dense multiple of 128
ACT_TILE_BYTES = 8 * 1024 * 1024  # cap on the bf16 activation tile (VMEM guard)


# ------------------------------- Pallas kernel ------------------------------ #
def _gemm_bias_act_kernel(a_ref, w_ref, b_ref, o_ref, acc_ref, *, act, slope):
    """One (TM, TK) x (TK, NP) MXU step; accumulates over the K grid axis."""
    k = pl.program_id(1)

    @pl.when(k == 0)
    def _init():
        acc_ref[...] = jnp.zeros_like(acc_ref)

    acc_ref[...] += jnp.dot(a_ref[...], w_ref[...],
                            preferred_element_type=jnp.float32)

    @pl.when(k == pl.num_programs(1) - 1)
    def _finalize():
        out = acc_ref[...] + b_ref[...]
        if act:
            out = jnp.where(out >= 0.0, out, slope * out)
        o_ref[...] = out.astype(o_ref.dtype)


def matmul_bias_act(a, w, b, *, act, slope=0.01):
    """leaky_relu(a @ w + b).  a: (M, K) bf16, w: (K, N) bf16, b: (N,) f32 -> (M, N) f32."""
    M, K = a.shape
    K2, N = w.shape
    assert K == K2

    # Lane-dense output: pad N (= Cout) up to a multiple of 128 (zeros, sliced off).
    NP = ((N + N_LANE - 1) // N_LANE) * N_LANE
    if NP != N:
        w = jnp.pad(w, ((0, 0), (0, NP - N)))
        b = jnp.pad(b, ((0, NP - N),))
    b2 = b.reshape(1, NP).astype(jnp.float32)

    # Rows: only round up to a multiple of 8 (sublane) when needed.  This only
    # triggers for the tiny classification head (M = batch), never for the big
    # col matrices, so there is no full-matrix copy just for padding.
    M8 = ((M + 7) // 8) * 8
    if M8 != M:
        a = jnp.pad(a, ((0, M8 - M), (0, 0)))

    # K tiling: largest multiple-of-128 divisor of K that is <= TK_MAX keeps the
    # resident footprint bounded for large Cin*k^3 (v7x: 64 MiB VMEM).  If no
    # such divisor exists, fall back to a single full-K block.
    tk = K
    if K > TK_MAX:
        for cand in range(TK_MAX, 0, -128):
            if K % cand == 0:
                tk = cand
                break

    tm = min(TM_MAX, M8)
    while tm > 8 and tm * tk * 2 > ACT_TILE_BYTES:   # bf16 activation-tile guard
        tm = max(8, ((tm // 2) // 8) * 8)
    nk = K // tk

    grid = (pl.cdiv(M8, tm), nk)
    out = pl.pallas_call(
        functools.partial(_gemm_bias_act_kernel, act=act, slope=slope),
        out_shape=jax.ShapeDtypeStruct((M8, NP), jnp.float32),
        grid_spec=pltpu.PrefetchScalarGridSpec(
            num_scalar_prefetch=0,
            grid=grid,
            in_specs=[
                pl.BlockSpec((tm, tk), lambda i, k: (i, k)),   # activation tile
                pl.BlockSpec((tk, NP), lambda i, k: (k, 0)),   # weight K-slab
                pl.BlockSpec((1, NP), lambda i, k: (0, 0)),    # bias row
            ],
            out_specs=pl.BlockSpec((tm, NP), lambda i, k: (i, 0)),
            scratch_shapes=[pltpu.VMEM((tm, NP), jnp.float32)],
        ),
        compiler_params=pltpu.CompilerParams(
            dimension_semantics=("parallel", "arbitrary"),
            vmem_limit_bytes=32 * 1024 * 1024,
        ),
    )(a, w, b2)
    return out[:M, :N]


# -------------------------- Conv3d via im2col + GEMM ------------------------ #
def conv3d_cl(x, w, b, *, stride, padding, act):
    """PyTorch-semantics Conv3d.  x: channels-last (N, D, H, W, Cin);
    w: torch layout (Cout, Cin, kd, kh, kw).  Returns (N, Do, Ho, Wo, Cout) f32."""
    N, _, _, _, Cin = x.shape
    Cout, Cin2, kd, kh, kw = w.shape
    assert Cin == Cin2

    x = x.astype(jnp.bfloat16)

    # Pad Cin to a multiple of 8 (zero channels x zero weights -> exact); makes
    # K = k^3 * Cin lane/MXU friendly (first layer: 15 -> 16, K = 1024).
    cpad = (-Cin) % 8
    if cpad:
        x = jnp.pad(x, ((0, 0), (0, 0), (0, 0), (0, 0), (0, cpad)))
        w = jnp.pad(w, ((0, 0), (0, cpad), (0, 0), (0, 0), (0, 0)))
        Cin += cpad

    if padding:
        p = padding
        x = jnp.pad(x, ((0, 0), (p, p), (p, p), (p, p), (0, 0)))
    Dp, Hp, Wp = x.shape[1:4]
    Do = (Dp - kd) // stride + 1
    Ho = (Hp - kh) // stride + 1
    Wo = (Wp - kw) // stride + 1

    # im2col in bf16, channels-last: rows ordered (n, do, ho, wo), columns
    # ordered (kd, kh, kw, ci) -> no transpose of the expanded matrix needed,
    # and the small weight matrix is reordered instead.
    # TODO(synk): fold this tap gather into the Pallas grid (strided DMA of x)
    # so the k^3-expanded col matrix is never materialized in HBM.
    taps = []
    for a in range(kd):
        for bb in range(kh):
            for c in range(kw):
                taps.append(
                    x[:,
                      a:a + (Do - 1) * stride + 1:stride,
                      bb:bb + (Ho - 1) * stride + 1:stride,
                      c:c + (Wo - 1) * stride + 1:stride,
                      :])
    col = jnp.stack(taps, axis=4)                       # (N, Do, Ho, Wo, k^3, Cin)
    col = col.reshape(N * Do * Ho * Wo, kd * kh * kw * Cin)

    wmat = jnp.transpose(w, (2, 3, 4, 1, 0)).reshape(kd * kh * kw * Cin, Cout)
    wmat = wmat.astype(jnp.bfloat16)
    bias = b if b is not None else jnp.zeros((Cout,), jnp.float32)

    out = matmul_bias_act(col, wmat, bias, act=act)     # (M, Cout) f32
    return out.reshape(N, Do, Ho, Wo, Cout)


# -------------------------------- Discriminator ----------------------------- #
def init_params(key, image_size, conv_dim, c_dim, repeat_num):
    def nrm(k, shape, scale=0.05):
        return scale * jax.random.normal(k, shape, jnp.float32)

    main = []
    key, kw_, kb_ = jax.random.split(key, 3)
    main.append((nrm(kw_, (conv_dim, 15, 4, 4, 4)), nrm(kb_, (conv_dim,))))
    curr = conv_dim
    for _ in range(1, repeat_num):
        key, kw_, kb_ = jax.random.split(key, 3)
        main.append((nrm(kw_, (curr * 2, curr, 4, 4, 4)), nrm(kb_, (curr * 2,))))
        curr *= 2
    ks = int(image_size / np.power(2, repeat_num))
    key, k1, k2 = jax.random.split(key, 3)
    w_conv1 = nrm(k1, (1, curr, 3, 3, 3))
    w_conv2 = nrm(k2, (c_dim, curr, ks, ks, ks))
    return main, w_conv1, w_conv2


def discriminator_forward(x, main, w_conv1, w_conv2):
    # NCDHW -> NDHWC once (cheap, un-expanded); all intermediate layers stay
    # channels-last so the GEMM output feeds the next layer with no transpose.
    h = jnp.transpose(x, (0, 2, 3, 4, 1))
    for (w, b) in main:
        h = conv3d_cl(h, w, b, stride=2, padding=1, act=True)
    src = conv3d_cl(h, w_conv1, None, stride=1, padding=1, act=False)
    cls = conv3d_cl(h, w_conv2, None, stride=1, padding=0, act=False)
    out_src = jnp.transpose(src, (0, 4, 1, 2, 3))            # back to NCDHW
    out_cls = cls.reshape(cls.shape[0], cls.shape[4])
    return out_src, out_cls


# ------------------------------ pure-JAX reference --------------------------- #
def _conv3d_ref(x, w, b, stride, padding):
    # Operands rounded to bf16 (same quantization points as the kernel's MXU
    # inputs), accumulation in f32 -> reference matches to summation order.
    xq = x.astype(jnp.bfloat16).astype(jnp.float32)
    wq = w.astype(jnp.bfloat16).astype(jnp.float32)
    out = jax.lax.conv_general_dilated(
        xq, wq,
        window_strides=(stride,) * 3,
        padding=[(padding, padding)] * 3,
        dimension_numbers=("NCDHW", "OIDHW", "NCDHW"),
        precision=jax.lax.Precision.HIGHEST,
    )
    if b is not None:
        out = out + b.reshape(1, -1, 1, 1, 1)
    return out


def discriminator_ref(x, main, w_conv1, w_conv2):
    h = x
    for (w, b) in main:
        h = _conv3d_ref(h, w, b, 2, 1)
        h = jnp.where(h >= 0.0, h, 0.01 * h)
    out_src = _conv3d_ref(h, w_conv1, None, 1, 1)
    out_cls = _conv3d_ref(h, w_conv2, None, 1, 0)
    return out_src, out_cls.reshape(out_cls.shape[0], out_cls.shape[1])


if __name__ == "__main__":
    # Small config consistent with the module: kernel_size = image_size / 2**repeat_num
    image_size, conv_dim, c_dim, repeat_num = 16, 8, 5, 2
    B = 2

    key = jax.random.PRNGKey(0)
    key, kx = jax.random.split(key)
    x = jax.random.normal(kx, (B, 15, image_size, image_size, image_size), jnp.float32)
    main, w_conv1, w_conv2 = init_params(key, image_size, conv_dim, c_dim, repeat_num)

    fwd = jax.jit(discriminator_forward)
    out_src, out_cls = fwd(x, main, w_conv1, w_conv2)
    out_src = jax.block_until_ready(out_src)
    out_cls = jax.block_until_ready(out_cls)

    # sanity: shapes and values vs pure-JAX reference (bf16-operand, f32-accum)
    ref_src, ref_cls = discriminator_ref(x, main, w_conv1, w_conv2)
    assert out_src.shape == (B, 1, image_size // 4, image_size // 4, image_size // 4)
    assert out_cls.shape == (B, c_dim)
    assert np.allclose(np.asarray(out_src), np.asarray(ref_src), atol=1e-2, rtol=1e-2)
    assert np.allclose(np.asarray(out_cls), np.asarray(ref_cls), atol=1e-2, rtol=1e-2)

    print("KERNEL_OK")
</pallas_src>

<mosaic_0001>
module attributes {stable_mosaic.version = 11 : i64} {
  func.func @_gemm_bias_act_kernel(%arg0: i32, %arg1: i32, %arg2: memref<512x512xbf16, #tpu.memory_space<vmem>>, %arg3: memref<512x128xbf16, #tpu.memory_space<vmem>>, %arg4: memref<1x128xf32, #tpu.memory_space<vmem>>, %arg5: memref<512x128xf32, #tpu.memory_space<vmem>>, %arg6: memref<512x128xf32, #tpu.memory_space<vmem>>) attributes {dimension_semantics = [#tpu.dimension_semantics<parallel>, #tpu.dimension_semantics<arbitrary>], iteration_bounds = array<i64: 2, 2>, scalar_prefetch = 0 : i64, scratch_operands = 1 : i64, tpu.core_type = #tpu.core_type<tc>, window_params = [{transform_indices = @transform_0, window_bounds = array<i64: 512, 512>}, {transform_indices = @transform_1, window_bounds = array<i64: 512, 128>}, {pipeline_mode = #tpu.pipeline_mode<synchronous>, transform_indices = @transform_2, window_bounds = array<i64: 1, 128>}, {transform_indices = @transform_3, window_bounds = array<i64: 512, 128>}]} {
    %c0_i32 = arith.constant 0 : i32
    %0 = arith.cmpi eq, %arg1, %c0_i32 : i32
    %1 = arith.extui %0 : i1 to i32
    %c0_i32_0 = arith.constant 0 : i32
    %2 = arith.cmpi ne, %1, %c0_i32_0 : i32
    scf.if %2 {
      %cst_9 = arith.constant 0.000000e+00 : f32
      %12 = vector.broadcast %cst_9 : f32 to vector<512x128xf32>
      %c0_10 = arith.constant 0 : index
      %c0_11 = arith.constant 0 : index
      %13 = vector.load %arg6[%c0_10, %c0_11] : memref<512x128xf32, #tpu.memory_space<vmem>>, vector<512x128xf32>
      tpu.vector_store %arg6[%c0_10, %c0_11], %12 {strides = array<i32>} : memref<512x128xf32, #tpu.memory_space<vmem>>, vector<512x128xf32>,
    } else {
    }
    %c0 = arith.constant 0 : index
    %c0_1 = arith.constant 0 : index
    %3 = vector.load %arg6[%c0, %c0_1] : memref<512x128xf32, #tpu.memory_space<vmem>>, vector<512x128xf32>
    %c0_2 = arith.constant 0 : index
    %c0_3 = arith.constant 0 : index
    %4 = vector.load %arg2[%c0_2, %c0_3] : memref<512x512xbf16, #tpu.memory_space<vmem>>, vector<512x512xbf16>
    %c0_4 = arith.constant 0 : index
    %c0_5 = arith.constant 0 : index
    %5 = vector.load %arg3[%c0_4, %c0_5] : memref<512x128xbf16, #tpu.memory_space<vmem>>, vector<512x128xbf16>
    %cst = arith.constant dense<0.000000e+00> : vector<512x128xf32>
    %6 = tpu.matmul %4, %5, %cst {dimension_numbers = #tpu.dot_dimension_numbers<[1], [0], [0], [1], [0, 0, 1, 1], [], []>} : vector<512x512xbf16>, vector<512x128xbf16>, vector<512x128xf32> -> vector<512x128xf32>
    %7 = arith.addf %3, %6 : vector<512x128xf32>
    %c0_6 = arith.constant 0 : index
    %c0_7 = arith.constant 0 : index
    %8 = vector.load %arg6[%c0_6, %c0_7] : memref<512x128xf32, #tpu.memory_space<vmem>>, vector<512x128xf32>
    tpu.vector_store %arg6[%c0_6, %c0_7], %7 {strides = array<i32>} : memref<512x128xf32, #tpu.memory_space<vmem>>, vector<512x128xf32>,
    %c1_i32 = arith.constant 1 : i32
    %9 = arith.cmpi eq, %arg1, %c1_i32 : i32
    %10 = arith.extui %9 : i1 to i32
    %c0_i32_8 = arith.constant 0 : i32
    %11 = arith.cmpi ne, %10, %c0_i32_8 : i32
    scf.if %11 {
      %c0_9 = arith.constant 0 : index
      %c0_10 = arith.constant 0 : index
      %12 = vector.load %arg6[%c0_9, %c0_10] : memref<512x128xf32, #tpu.memory_space<vmem>>, vector<512x128xf32>
      %c0_11 = arith.constant 0 : index
      %c0_12 = arith.constant 0 : index
      %13 = vector.load %arg4[%c0_11, %c0_12] : memref<1x128xf32, #tpu.memory_space<vmem>>, vector<1x128xf32>
      %14 = vector.broadcast %13 : vector<1x128xf32> to vector<512x128xf32>
      %15 = arith.addf %12, %14 : vector<512x128xf32>
      %cst_13 = arith.constant 0.000000e+00 : f32
      %16 = vector.broadcast %cst_13 : f32 to vector<512x128xf32>
      %17 = arith.cmpf oge, %15, %16 : vector<512x128xf32>
      %cst_14 = arith.constant 0.00999999977 : f32
      %18 = vector.broadcast %cst_14 : f32 to vector<512x128xf32>
      %19 = arith.mulf %18, %15 : vector<512x128xf32>
      %20 = arith.select %17, %15, %19 : vector<512x128xi1>, vector<512x128xf32>
      %c0_15 = arith.constant 0 : index
      %c0_16 = arith.constant 0 : index
      %21 = vector.load %arg5[%c0_15, %c0_16] : memref<512x128xf32, #tpu.memory_space<vmem>>, vector<512x128xf32>
      tpu.vector_store %arg5[%c0_15, %c0_16], %20 {strides = array<i32>} : memref<512x128xf32, #tpu.memory_space<vmem>>, vector<512x128xf32>,
    } else {
    }
    return
  }
  func.func @transform_0(%arg0: i32, %arg1: i32) -> (i32, i32) {
    %c0_i32 = arith.constant 0 : i32
    return %arg0, %arg1 : i32, i32
  }
  func.func @transform_1(%arg0: i32, %arg1: i32) -> (i32, i32) {
    %c0_i32 = arith.constant 0 : i32
    %c0_i32_0 = arith.constant 0 : i32
    return %arg1, %c0_i32 : i32, i32
  }
  func.func @transform_2(%arg0: i32, %arg1: i32) -> (i32, i32) {
    %c0_i32 = arith.constant 0 : i32
    %c0_i32_0 = arith.constant 0 : i32
    %c0_i32_1 = arith.constant 0 : i32
    return %c0_i32, %c0_i32_0 : i32, i32
  }
  func.func @transform_3(%arg0: i32, %arg1: i32) -> (i32, i32) {
    %c0_i32 = arith.constant 0 : i32
    %c0_i32_0 = arith.constant 0 : i32
    return %arg0, %c0_i32 : i32, i32
  }
}

module attributes {stable_mosaic.version = 11 : i64} {
  func.func @_gemm_bias_act_kernel(%arg0: i32, %arg1: i32, %arg2: memref<128x512xbf16, #tpu.memory_space<vmem>>, %arg3: memref<512x128xbf16, #tpu.memory_space<vmem>>, %arg4: memref<1x128xf32, #tpu.memory_space<vmem>>, %arg5: memref<128x128xf32, #tpu.memory_space<vmem>>, %arg6: memref<128x128xf32, #tpu.memory_space<vmem>>) attributes {dimension_semantics = [#tpu.dimension_semantics<parallel>, #tpu.dimension_semantics<arbitrary>], iteration_bounds = array<i64: 1, 1>, scalar_prefetch = 0 : i64, scratch_operands = 1 : i64, tpu.core_type = #tpu.core_type<tc>, window_params = [{transform_indices = @transform_0, window_bounds = array<i64: 128, 512>}, {transform_indices = @transform_1, window_bounds = array<i64: 512, 128>}, {pipeline_mode = #tpu.pipeline_mode<synchronous>, transform_indices = @transform_2, window_bounds = array<i64: 1, 128>}, {transform_indices = @transform_3, window_bounds = array<i64: 128, 128>}]} {
    %c0_i32 = arith.constant 0 : i32
    %0 = arith.cmpi eq, %arg1, %c0_i32 : i32
    %1 = arith.extui %0 : i1 to i32
    %c0_i32_0 = arith.constant 0 : i32
    %2 = arith.cmpi ne, %1, %c0_i32_0 : i32
    scf.if %2 {
      %cst_10 = arith.constant 0.000000e+00 : f32
      %12 = vector.broadcast %cst_10 : f32 to vector<128x128xf32>
      %c0_11 = arith.constant 0 : index
      %c0_12 = arith.constant 0 : index
      %13 = vector.load %arg6[%c0_11, %c0_12] : memref<128x128xf32, #tpu.memory_space<vmem>>, vector<128x128xf32>
      tpu.vector_store %arg6[%c0_11, %c0_12], %12 {strides = array<i32>} : memref<128x128xf32, #tpu.memory_space<vmem>>, vector<128x128xf32>,
    } else {
    }
    %c0 = arith.constant 0 : index
    %c0_1 = arith.constant 0 : index
    %3 = vector.load %arg6[%c0, %c0_1] : memref<128x128xf32, #tpu.memory_space<vmem>>, vector<128x128xf32>
    %c0_2 = arith.constant 0 : index
    %c0_3 = arith.constant 0 : index
    %4 = vector.load %arg2[%c0_2, %c0_3] : memref<128x512xbf16, #tpu.memory_space<vmem>>, vector<128x512xbf16>
    %c0_4 = arith.constant 0 : index
    %c0_5 = arith.constant 0 : index
    %5 = vector.load %arg3[%c0_4, %c0_5] : memref<512x128xbf16, #tpu.memory_space<vmem>>, vector<512x128xbf16>
    %cst = arith.constant dense<0.000000e+00> : vector<128x128xf32>
    %6 = tpu.matmul %4, %5, %cst {dimension_numbers = #tpu.dot_dimension_numbers<[1], [0], [0], [1], [0, 0, 1, 1], [], []>} : vector<128x512xbf16>, vector<512x128xbf16>, vector<128x128xf32> -> vector<128x128xf32>
    %7 = arith.addf %3, %6 : vector<128x128xf32>
    %c0_6 = arith.constant 0 : index
    %c0_7 = arith.constant 0 : index
    %8 = vector.load %arg6[%c0_6, %c0_7] : memref<128x128xf32, #tpu.memory_space<vmem>>, vector<128x128xf32>
    tpu.vector_store %arg6[%c0_6, %c0_7], %7 {strides = array<i32>} : memref<128x128xf32, #tpu.memory_space<vmem>>, vector<128x128xf32>,
    %c0_i32_8 = arith.constant 0 : i32
    %9 = arith.cmpi eq, %arg1, %c0_i32_8 : i32
    %10 = arith.extui %9 : i1 to i32
    %c0_i32_9 = arith.constant 0 : i32
    %11 = arith.cmpi ne, %10, %c0_i32_9 : i32
    scf.if %11 {
      %c0_10 = arith.constant 0 : index
      %c0_11 = arith.constant 0 : index
      %12 = vector.load %arg6[%c0_10, %c0_11] : memref<128x128xf32, #tpu.memory_space<vmem>>, vector<128x128xf32>
      %c0_12 = arith.constant 0 : index
      %c0_13 = arith.constant 0 : index
      %13 = vector.load %arg4[%c0_12, %c0_13] : memref<1x128xf32, #tpu.memory_space<vmem>>, vector<1x128xf32>
      %14 = vector.broadcast %13 : vector<1x128xf32> to vector<128x128xf32>
      %15 = arith.addf %12, %14 : vector<128x128xf32>
      %cst_14 = arith.constant 0.000000e+00 : f32
      %16 = vector.broadcast %cst_14 : f32 to vector<128x128xf32>
      %17 = arith.cmpf oge, %15, %16 : vector<128x128xf32>
      %cst_15 = arith.constant 0.00999999977 : f32
      %18 = vector.broadcast %cst_15 : f32 to vector<128x128xf32>
      %19 = arith.mulf %18, %15 : vector<128x128xf32>
      %20 = arith.select %17, %15, %19 : vector<128x128xi1>, vector<128x128xf32>
      %c0_16 = arith.constant 0 : index
      %c0_17 = arith.constant 0 : index
      %21 = vector.load %arg5[%c0_16, %c0_17] : memref<128x128xf32, #tpu.memory_space<vmem>>, vector<128x128xf32>
      tpu.vector_store %arg5[%c0_16, %c0_17], %20 {strides = array<i32>} : memref<128x128xf32, #tpu.memory_space<vmem>>, vector<128x128xf32>,
    } else {
    }
    return
  }
  func.func @transform_0(%arg0: i32, %arg1: i32) -> (i32, i32) {
    %c0_i32 = arith.constant 0 : i32
    return %arg0, %arg1 : i32, i32
  }
  func.func @transform_1(%arg0: i32, %arg1: i32) -> (i32, i32) {
    %c0_i32 = arith.constant 0 : i32
    %c0_i32_0 = arith.constant 0 : i32
    return %arg1, %c0_i32 : i32, i32
  }
  func.func @transform_2(%arg0: i32, %arg1: i32) -> (i32, i32) {
    %c0_i32 = arith.constant 0 : i32
    %c0_i32_0 = arith.constant 0 : i32
    %c0_i32_1 = arith.constant 0 : i32
    return %c0_i32, %c0_i32_0 : i32, i32
  }
  func.func @transform_3(%arg0: i32, %arg1: i32) -> (i32, i32) {
    %c0_i32 = arith.constant 0 : i32
    %c0_i32_0 = arith.constant 0 : i32
    return %arg0, %c0_i32 : i32, i32
  }
}

module attributes {stable_mosaic.version = 11 : i64} {
  func.func @_gemm_bias_act_kernel(%arg0: i32, %arg1: i32, %arg2: memref<8x512xbf16, #tpu.memory_space<vmem>>, %arg3: memref<512x128xbf16, #tpu.memory_space<vmem>>, %arg4: memref<1x128xf32, #tpu.memory_space<vmem>>, %arg5: memref<8x128xf32, #tpu.memory_space<vmem>>, %arg6: memref<8x128xf32, #tpu.memory_space<vmem>>) attributes {dimension_semantics = [#tpu.dimension_semantics<parallel>, #tpu.dimension_semantics<arbitrary>], iteration_bounds = array<i64: 1, 2>, scalar_prefetch = 0 : i64, scratch_operands = 1 : i64, tpu.core_type = #tpu.core_type<tc>, window_params = [{transform_indices = @transform_0, window_bounds = array<i64: 8, 512>}, {transform_indices = @transform_1, window_bounds = array<i64: 512, 128>}, {pipeline_mode = #tpu.pipeline_mode<synchronous>, transform_indices = @transform_2, window_bounds = array<i64: 1, 128>}, {transform_indices = @transform_3, window_bounds = array<i64: 8, 128>}]} {
    %c0_i32 = arith.constant 0 : i32
    %0 = arith.cmpi eq, %arg1, %c0_i32 : i32
    %1 = arith.extui %0 : i1 to i32
    %c0_i32_0 = arith.constant 0 : i32
    %2 = arith.cmpi ne, %1, %c0_i32_0 : i32
    scf.if %2 {
      %cst_9 = arith.constant 0.000000e+00 : f32
      %12 = vector.broadcast %cst_9 : f32 to vector<8x128xf32>
      %c0_10 = arith.constant 0 : index
      %c0_11 = arith.constant 0 : index
      %13 = vector.load %arg6[%c0_10, %c0_11] : memref<8x128xf32, #tpu.memory_space<vmem>>, vector<8x128xf32>
      tpu.vector_store %arg6[%c0_10, %c0_11], %12 {strides = array<i32>} : memref<8x128xf32, #tpu.memory_space<vmem>>, vector<8x128xf32>,
    } else {
    }
    %c0 = arith.constant 0 : index
    %c0_1 = arith.constant 0 : index
    %3 = vector.load %arg6[%c0, %c0_1] : memref<8x128xf32, #tpu.memory_space<vmem>>, vector<8x128xf32>
    %c0_2 = arith.constant 0 : index
    %c0_3 = arith.constant 0 : index
    %4 = vector.load %arg2[%c0_2, %c0_3] : memref<8x512xbf16, #tpu.memory_space<vmem>>, vector<8x512xbf16>
    %c0_4 = arith.constant 0 : index
    %c0_5 = arith.constant 0 : index
    %5 = vector.load %arg3[%c0_4, %c0_5] : memref<512x128xbf16, #tpu.memory_space<vmem>>, vector<512x128xbf16>
    %cst = arith.constant dense<0.000000e+00> : vector<8x128xf32>
    %6 = tpu.matmul %4, %5, %cst {dimension_numbers = #tpu.dot_dimension_numbers<[1], [0], [0], [1], [0, 0, 1, 1], [], []>} : vector<8x512xbf16>, vector<512x128xbf16>, vector<8x128xf32> -> vector<8x128xf32>
    %7 = arith.addf %3, %6 : vector<8x128xf32>
    %c0_6 = arith.constant 0 : index
    %c0_7 = arith.constant 0 : index
    %8 = vector.load %arg6[%c0_6, %c0_7] : memref<8x128xf32, #tpu.memory_space<vmem>>, vector<8x128xf32>
    tpu.vector_store %arg6[%c0_6, %c0_7], %7 {strides = array<i32>} : memref<8x128xf32, #tpu.memory_space<vmem>>, vector<8x128xf32>,
    %c1_i32 = arith.constant 1 : i32
    %9 = arith.cmpi eq, %arg1, %c1_i32 : i32
    %10 = arith.extui %9 : i1 to i32
    %c0_i32_8 = arith.constant 0 : i32
    %11 = arith.cmpi ne, %10, %c0_i32_8 : i32
    scf.if %11 {
      %c0_9 = arith.constant 0 : index
      %c0_10 = arith.constant 0 : index
      %12 = vector.load %arg6[%c0_9, %c0_10] : memref<8x128xf32, #tpu.memory_space<vmem>>, vector<8x128xf32>
      %c0_11 = arith.constant 0 : index
      %c0_12 = arith.constant 0 : index
      %13 = vector.load %arg4[%c0_11, %c0_12] : memref<1x128xf32, #tpu.memory_space<vmem>>, vector<1x128xf32>
      %14 = vector.broadcast %13 : vector<1x128xf32> to vector<8x128xf32>
      %15 = arith.addf %12, %14 : vector<8x128xf32>
      %c0_13 = arith.constant 0 : index
      %c0_14 = arith.constant 0 : index
      %16 = vector.load %arg5[%c0_13, %c0_14] : memref<8x128xf32, #tpu.memory_space<vmem>>, vector<8x128xf32>
      tpu.vector_store %arg5[%c0_13, %c0_14], %15 {strides = array<i32>} : memref<8x128xf32, #tpu.memory_space<vmem>>, vector<8x128xf32>,
    } else {
    }
    return
  }
  func.func @transform_0(%arg0: i32, %arg1: i32) -> (i32, i32) {
    %c0_i32 = arith.constant 0 : i32
    return %arg0, %arg1 : i32, i32
  }
  func.func @transform_1(%arg0: i32, %arg1: i32) -> (i32, i32) {
    %c0_i32 = arith.constant 0 : i32
    %c0_i32_0 = arith.constant 0 : i32
    return %arg1, %c0_i32 : i32, i32
  }
  func.func @transform_2(%arg0: i32, %arg1: i32) -> (i32, i32) {
    %c0_i32 = arith.constant 0 : i32
    %c0_i32_0 = arith.constant 0 : i32
    %c0_i32_1 = arith.constant 0 : i32
    return %c0_i32, %c0_i32_0 : i32, i32
  }
  func.func @transform_3(%arg0: i32, %arg1: i32) -> (i32, i32) {
    %c0_i32 = arith.constant 0 : i32
    %c0_i32_0 = arith.constant 0 : i32
    return %arg0, %c0_i32 : i32, i32
  }
}

module attributes {stable_mosaic.version = 11 : i64} {
  func.func @_gemm_bias_act_kernel(%arg0: i32, %arg1: i32, %arg2: memref<128x432xbf16, #tpu.memory_space<vmem>>, %arg3: memref<432x128xbf16, #tpu.memory_space<vmem>>, %arg4: memref<1x128xf32, #tpu.memory_space<vmem>>, %arg5: memref<128x128xf32, #tpu.memory_space<vmem>>, %arg6: memref<128x128xf32, #tpu.memory_space<vmem>>) attributes {dimension_semantics = [#tpu.dimension_semantics<parallel>, #tpu.dimension_semantics<arbitrary>], iteration_bounds = array<i64: 1, 1>, scalar_prefetch = 0 : i64, scratch_operands = 1 : i64, tpu.core_type = #tpu.core_type<tc>, window_params = [{transform_indices = @transform_0, window_bounds = array<i64: 128, 432>}, {transform_indices = @transform_1, window_bounds = array<i64: 432, 128>}, {pipeline_mode = #tpu.pipeline_mode<synchronous>, transform_indices = @transform_2, window_bounds = array<i64: 1, 128>}, {transform_indices = @transform_3, window_bounds = array<i64: 128, 128>}]} {
    %c0_i32 = arith.constant 0 : i32
    %0 = arith.cmpi eq, %arg1, %c0_i32 : i32
    %1 = arith.extui %0 : i1 to i32
    %c0_i32_0 = arith.constant 0 : i32
    %2 = arith.cmpi ne, %1, %c0_i32_0 : i32
    scf.if %2 {
      %cst_10 = arith.constant 0.000000e+00 : f32
      %12 = vector.broadcast %cst_10 : f32 to vector<128x128xf32>
      %c0_11 = arith.constant 0 : index
      %c0_12 = arith.constant 0 : index
      %13 = vector.load %arg6[%c0_11, %c0_12] : memref<128x128xf32, #tpu.memory_space<vmem>>, vector<128x128xf32>
      tpu.vector_store %arg6[%c0_11, %c0_12], %12 {strides = array<i32>} : memref<128x128xf32, #tpu.memory_space<vmem>>, vector<128x128xf32>,
    } else {
    }
    %c0 = arith.constant 0 : index
    %c0_1 = arith.constant 0 : index
    %3 = vector.load %arg6[%c0, %c0_1] : memref<128x128xf32, #tpu.memory_space<vmem>>, vector<128x128xf32>
    %c0_2 = arith.constant 0 : index
    %c0_3 = arith.constant 0 : index
    %4 = vector.load %arg2[%c0_2, %c0_3] : memref<128x432xbf16, #tpu.memory_space<vmem>>, vector<128x432xbf16>
    %c0_4 = arith.constant 0 : index
    %c0_5 = arith.constant 0 : index
    %5 = vector.load %arg3[%c0_4, %c0_5] : memref<432x128xbf16, #tpu.memory_space<vmem>>, vector<432x128xbf16>
    %cst = arith.constant dense<0.000000e+00> : vector<128x128xf32>
    %6 = tpu.matmul %4, %5, %cst {dimension_numbers = #tpu.dot_dimension_numbers<[1], [0], [0], [1], [0, 0, 1, 1], [], []>} : vector<128x432xbf16>, vector<432x128xbf16>, vector<128x128xf32> -> vector<128x128xf32>
    %7 = arith.addf %3, %6 : vector<128x128xf32>
    %c0_6 = arith.constant 0 : index
    %c0_7 = arith.constant 0 : index
    %8 = vector.load %arg6[%c0_6, %c0_7] : memref<128x128xf32, #tpu.memory_space<vmem>>, vector<128x128xf32>
    tpu.vector_store %arg6[%c0_6, %c0_7], %7 {strides = array<i32>} : memref<128x128xf32, #tpu.memory_space<vmem>>, vector<128x128xf32>,
    %c0_i32_8 = arith.constant 0 : i32
    %9 = arith.cmpi eq, %arg1, %c0_i32_8 : i32
    %10 = arith.extui %9 : i1 to i32
    %c0_i32_9 = arith.constant 0 : i32
    %11 = arith.cmpi ne, %10, %c0_i32_9 : i32
    scf.if %11 {
      %c0_10 = arith.constant 0 : index
      %c0_11 = arith.constant 0 : index
      %12 = vector.load %arg6[%c0_10, %c0_11] : memref<128x128xf32, #tpu.memory_space<vmem>>, vector<128x128xf32>
      %c0_12 = arith.constant 0 : index
      %c0_13 = arith.constant 0 : index
      %13 = vector.load %arg4[%c0_12, %c0_13] : memref<1x128xf32, #tpu.memory_space<vmem>>, vector<1x128xf32>
      %14 = vector.broadcast %13 : vector<1x128xf32> to vector<128x128xf32>
      %15 = arith.addf %12, %14 : vector<128x128xf32>
      %c0_14 = arith.constant 0 : index
      %c0_15 = arith.constant 0 : index
      %16 = vector.load %arg5[%c0_14, %c0_15] : memref<128x128xf32, #tpu.memory_space<vmem>>, vector<128x128xf32>
      tpu.vector_store %arg5[%c0_14, %c0_15], %15 {strides = array<i32>} : memref<128x128xf32, #tpu.memory_space<vmem>>, vector<128x128xf32>,
    } else {
    }
    return
  }
  func.func @transform_0(%arg0: i32, %arg1: i32) -> (i32, i32) {
    %c0_i32 = arith.constant 0 : i32
    return %arg0, %arg1 : i32, i32
  }
  func.func @transform_1(%arg0: i32, %arg1: i32) -> (i32, i32) {
    %c0_i32 = arith.constant 0 : i32
    %c0_i32_0 = arith.constant 0 : i32
    return %arg1, %c0_i32 : i32, i32
  }
  func.func @transform_2(%arg0: i32, %arg1: i32) -> (i32, i32) {
    %c0_i32 = arith.constant 0 : i32
    %c0_i32_0 = arith.constant 0 : i32
    %c0_i32_1 = arith.constant 0 : i32
    return %c0_i32, %c0_i32_0 : i32, i32
  }
  func.func @transform_3(%arg0: i32, %arg1: i32) -> (i32, i32) {
    %c0_i32 = arith.constant 0 : i32
    %c0_i32_0 = arith.constant 0 : i32
    return %arg0, %c0_i32 : i32, i32
  }
}

</mosaic_0001>

<bundles_post_ra>
// kernel: discriminator_forward.4
= control target key start
LH: loop header
LB: loop body
LE: loop exit
PB: predicated region body
PF: predicated region fallthrough
CT: control target
= control target key end

     0   :  { %s3375_s12 = smov 0   ;;  %s3377_s13 = smov 0   ;;  %s4124_s0 = inlined_call_operand.vmem [shape: bf16[1024,1024], index: 0, kind: input, shape index: {}]   ;;  %s4125_s1 = inlined_call_operand.vmem [shape: bf16[1024,128], index: 1, kind: input, shape index: {}]   ;;  %s4126_s2 = inlined_call_operand.vmem [shape: f32[1,128], index: 2, kind: input, shape index: {}]   ;;  %s4127_s3 = inlined_call_operand.vmem [shape: f32[1024,128], index: 3, kind: output, shape index: {}]  }
   0x1   :  { %s3379_s14 = smov 0   ;;  %s3381_s15 = smov 0  }
   0x2   :  { %s3383_s16 = smov 0   ;;  %s3385_s17 = smov 0  }
   0x3   :  { %s3387_s18 = smov 0  }
   0x4 LB: > { %s22_s19 = sadd.s32 1, %s3343_s16  ;;  %s25_s20 = sadd.s32 1, %s3347_s17  ;;  %s3351_s18 = sphi %s3387_s18, %s13_s18   ;;  %s3347_s17 = sphi %s3385_s17, %s4133_s17   ;;  %s3343_s16 = sphi %s3383_s16, %s4132_s16   ;;  %s3339_s15 = sphi %s3381_s15, %s4131_s15   ;;  %s3335_s14 = sphi %s3379_s14, %s4130_s14   ;;  %s3331_s13 = sphi %s3377_s13, %s4129_s13   ;;  %s3327_s12 = sphi %s3375_s12, %s4128_s12  }
   0x5   : > { %p23_p0 = scmp.ge.s32.totalorder %s22_s19, 2  ;;  %p41_p1 = scmp.ne.s32.totalorder %s3331_s13, %s3327_s12 }
   0x6   : > { %p42_p2 = scmp.eq.s32.totalorder %s3351_s18, 0  ;;  %s34_s24 = sadd.s32 1, %s3331_s13 }
   0x7   : > { %s4135_s19 = smov (%p23_p0, %s22_s19), 0  ;;  %s4137_s20 = smov (!%p23_p0, %s25_s20), %s3347_s17 }
   0x8   : > { %p43_p3 = por %p42_p2, %p41_p1  ;;  %p27_p4 = scmp.ge.s32.totalorder %s4137_s20, 2 }
   0x9   : > { %s30_s21 = ssub.s32 %s3343_s16, %s4135_s19  ;;  %p2837_p6 = scmp.ge.s32.totalorder %s3351_s18, 4 }
   0xa   : > { %s4139_s20 = smov (%p27_p4, %s4137_s20), 0 }
   0xb   : > { %s29_s22 = ssub.s32 %s3347_s17, %s4139_s20  ;;  %143 = sbr.rel (%p2837_p6) target bundleno = 89 (0x59), region = 20 }
   0xc   : > { %s31_s23 = sor.u32 %s30_s21, %s29_s22 }
   0xd   : > { %p32_p5 = scmp.eq.s32.totalorder %s31_s23, 0 }
   0xf   : > { %s3426_s25 = scalar_select %p32_p5, %s3331_s13, %s34_s24  }
  0x12   : > { %146 = sbr.rel (!%p43_p3) target bundleno = 89 (0x59), region = 24  ;;  %s148_s26 = sand.u32 (%p43_p3), 1, %s3331_s13  }
  0x13   : > { %s2840_s27 = sshll.u32 (%p43_p3), %s3343_s16, 2  ;;  %s2838_s28 = sshll.u32 (%p43_p3), %s148_s26, 10 }
  0x14   : > { %s3014_s29 = sshll.u32 (%p43_p3), %s3347_s17, 9  ;;  %s3440_s8 = scalar_lea.vmem (%p43_p3), [#allocation3], %s2838_s28 }
  0x15   : > { %s154_s30 = sadd.s32 (%p43_p3), %s3014_s29, %s2840_s27 }
  0x16   : > { %s2842_s4 = sshll.u32 (%p43_p3), %s154_s30, 2 }
  0x17   : > { %s3435_s7 = scalar_lea.vmem (%p43_p3), %s4124_s0, %s2842_s4 }
  0x18   : > { %v169_v0 = vld [vmem:[%s3435_s7] sm:$0xff] (%p43_p3)  ;;  %v171_v1 = vld [vmem:[%s3435_s7 + $0x8] sm:$0xff] (%p43_p3) }
  0x19   : > { %v173_v2 = vld [vmem:[%s3435_s7 + $0x20] sm:$0xff]  ;;  %170 = vst [vmem:[%s3440_s8] sm:$0xff] %v169_v0  ;;  %172 = vst [vmem:[%s3440_s8 + $0x8] sm:$0xff] %v171_v1  ;;  %v175_v3 = vld [vmem:[%s3435_s7 + $0x28] sm:$0xff] }
  0x1a   : > { %174 = vst [vmem:[%s3440_s8 + $0x10] sm:$0xff] %v173_v2  ;;  %v177_v4 = vld [vmem:[%s3435_s7 + $0x40] sm:$0xff]  ;;  %v179_v5 = vld [vmem:[%s3435_s7 + $0x48] sm:$0xff]  ;;  %176 = vst [vmem:[%s3440_s8 + $0x18] sm:$0xff] %v175_v3 }
  0x1b   : > { %178 = vst [vmem:[%s3440_s8 + $0x20] sm:$0xff] %v177_v4  ;;  %180 = vst [vmem:[%s3440_s8 + $0x28] sm:$0xff] %v179_v5  ;;  %v181_v6 = vld [vmem:[%s3435_s7 + $0x60] sm:$0xff]  ;;  %v183_v7 = vld [vmem:[%s3435_s7 + $0x68] sm:$0xff] }
  0x1c   : > { %v185_v8 = vld [vmem:[%s3435_s7 + $0x80] sm:$0xff]  ;;  %182 = vst [vmem:[%s3440_s8 + $0x30] sm:$0xff] %v181_v6  ;;  %184 = vst [vmem:[%s3440_s8 + $0x38] sm:$0xff] %v183_v7  ;;  %v187_v9 = vld [vmem:[%s3435_s7 + $0x88] sm:$0xff] }
  0x1d   : > { %186 = vst [vmem:[%s3440_s8 + $0x40] sm:$0xff] %v185_v8  ;;  %v189_v10 = vld [vmem:[%s3435_s7 + $0xa0] sm:$0xff]  ;;  %v191_v11 = vld [vmem:[%s3435_s7 + $0xa8] sm:$0xff]  ;;  %188 = vst [vmem:[%s3440_s8 + $0x48] sm:$0xff] %v187_v9 }
  0x1e   : > { %190 = vst [vmem:[%s3440_s8 + $0x50] sm:$0xff] %v189_v10  ;;  %192 = vst [vmem:[%s3440_s8 + $0x58] sm:$0xff] %v191_v11  ;;  %v193_v12 = vld [vmem:[%s3435_s7 + $0xc0] sm:$0xff]  ;;  %v195_v13 = vld [vmem:[%s3435_s7 + $0xc8] sm:$0xff] }
  0x1f   : > { %v197_v14 = vld [vmem:[%s3435_s7 + $0xe0] sm:$0xff]  ;;  %194 = vst [vmem:[%s3440_s8 + $0x60] sm:$0xff] %v193_v12  ;;  %196 = vst [vmem:[%s3440_s8 + $0x68] sm:$0xff] %v195_v13  ;;  %v199_v15 = vld [vmem:[%s3435_s7 + $0xe8] sm:$0xff] }
  0x20   : > { %198 = vst [vmem:[%s3440_s8 + $0x70] sm:$0xff] %v197_v14  ;;  %v201_v16 = vld [vmem:[%s3435_s7 + $0x100] sm:$0xff]  ;;  %v203_v17 = vld [vmem:[%s3435_s7 + $0x108] sm:$0xff]  ;;  %200 = vst [vmem:[%s3440_s8 + $0x78] sm:$0xff] %v199_v15 }
  0x21   : > { %202 = vst [vmem:[%s3440_s8 + $0x80] sm:$0xff] %v201_v16  ;;  %204 = vst [vmem:[%s3440_s8 + $0x88] sm:$0xff] %v203_v17  ;;  %v205_v18 = vld [vmem:[%s3435_s7 + $0x120] sm:$0xff]  ;;  %v207_v19 = vld [vmem:[%s3435_s7 + $0x128] sm:$0xff] }
  0x22   : > { %v209_v20 = vld [vmem:[%s3435_s7 + $0x140] sm:$0xff]  ;;  %206 = vst [vmem:[%s3440_s8 + $0x90] sm:$0xff] %v205_v18  ;;  %208 = vst [vmem:[%s3440_s8 + $0x98] sm:$0xff] %v207_v19  ;;  %v211_v21 = vld [vmem:[%s3435_s7 + $0x148] sm:$0xff] }
  0x23   : > { %210 = vst [vmem:[%s3440_s8 + $0xa0] sm:$0xff] %v209_v20  ;;  %v213_v22 = vld [vmem:[%s3435_s7 + $0x160] sm:$0xff]  ;;  %v215_v23 = vld [vmem:[%s3435_s7 + $0x168] sm:$0xff]  ;;  %212 = vst [vmem:[%s3440_s8 + $0xa8] sm:$0xff] %v211_v21 }
  0x24   : > { %214 = vst [vmem:[%s3440_s8 + $0xb0] sm:$0xff] %v213_v22  ;;  %216 = vst [vmem:[%s3440_s8 + $0xb8] sm:$0xff] %v215_v23  ;;  %v217_v24 = vld [vmem:[%s3435_s7 + $0x180] sm:$0xff]  ;;  %v219_v25 = vld [vmem:[%s3435_s7 + $0x188] sm:$0xff] }
  0x25   : > { %v221_v26 = vld [vmem:[%s3435_s7 + $0x1a0] sm:$0xff]  ;;  %218 = vst [vmem:[%s3440_s8 + $0xc0] sm:$0xff] %v217_v24  ;;  %220 = vst [vmem:[%s3440_s8 + $0xc8] sm:$0xff] %v219_v25  ;;  %v223_v27 = vld [vmem:[%s3435_s7 + $0x1a8] sm:$0xff] }
  0x26   : > { %222 = vst [vmem:[%s3440_s8 + $0xd0] sm:$0xff] %v221_v26  ;;  %v225_v28 = vld [vmem:[%s3435_s7 + $0x1c0] sm:$0xff]  ;;  %v227_v29 = vld [vmem:[%s3435_s7 + $0x1c8] sm:$0xff]  ;;  %224 = vst [vmem:[%s3440_s8 + $0xd8] sm:$0xff] %v223_v27 }
  0x27   : > { %226 = vst [vmem:[%s3440_s8 + $0xe0] sm:$0xff] %v225_v28  ;;  %228 = vst [vmem:[%s3440_s8 + $0xe8] sm:$0xff] %v227_v29  ;;  %v229_v30 = vld [vmem:[%s3435_s7 + $0x1e0] sm:$0xff]  ;;  %v231_v31 = vld [vmem:[%s3435_s7 + $0x1e8] sm:$0xff] }
  0x28   : > { %v233_v32 = vld [vmem:[%s3435_s7 + $0x200] sm:$0xff]  ;;  %230 = vst [vmem:[%s3440_s8 + $0xf0] sm:$0xff] %v229_v30  ;;  %232 = vst [vmem:[%s3440_s8 + $0xf8] sm:$0xff] %v231_v31  ;;  %v235_v33 = vld [vmem:[%s3435_s7 + $0x208] sm:$0xff] }
  0x29   : > { %234 = vst [vmem:[%s3440_s8 + $0x100] sm:$0xff] %v233_v32  ;;  %v237_v34 = vld [vmem:[%s3435_s7 + $0x220] sm:$0xff]  ;;  %v239_v35 = vld [vmem:[%s3435_s7 + $0x228] sm:$0xff]  ;;  %236 = vst [vmem:[%s3440_s8 + $0x108] sm:$0xff] %v235_v33 }
  0x2a   : > { %238 = vst [vmem:[%s3440_s8 + $0x110] sm:$0xff] %v237_v34  ;;  %240 = vst [vmem:[%s3440_s8 + $0x118] sm:$0xff] %v239_v35  ;;  %v241_v36 = vld [vmem:[%s3435_s7 + $0x240] sm:$0xff]  ;;  %v243_v37 = vld [vmem:[%s3435_s7 + $0x248] sm:$0xff] }
  0x2b   : > { %v245_v38 = vld [vmem:[%s3435_s7 + $0x260] sm:$0xff]  ;;  %242 = vst [vmem:[%s3440_s8 + $0x120] sm:$0xff] %v241_v36  ;;  %244 = vst [vmem:[%s3440_s8 + $0x128] sm:$0xff] %v243_v37  ;;  %v247_v39 = vld [vmem:[%s3435_s7 + $0x268] sm:$0xff] }
  0x2c   : > { %246 = vst [vmem:[%s3440_s8 + $0x130] sm:$0xff] %v245_v38  ;;  %v249_v40 = vld [vmem:[%s3435_s7 + $0x280] sm:$0xff]  ;;  %v251_v41 = vld [vmem:[%s3435_s7 + $0x288] sm:$0xff]  ;;  %248 = vst [vmem:[%s3440_s8 + $0x138] sm:$0xff] %v247_v39 }
  0x2d   : > { %250 = vst [vmem:[%s3440_s8 + $0x140] sm:$0xff] %v249_v40  ;;  %252 = vst [vmem:[%s3440_s8 + $0x148] sm:$0xff] %v251_v41  ;;  %v253_v42 = vld [vmem:[%s3435_s7 + $0x2a0] sm:$0xff]  ;;  %v255_v43 = vld [vmem:[%s3435_s7 + $0x2a8] sm:$0xff] }
  0x2e   : > { %v257_v44 = vld [vmem:[%s3435_s7 + $0x2c0] sm:$0xff]  ;;  %254 = vst [vmem:[%s3440_s8 + $0x150] sm:$0xff] %v253_v42  ;;  %256 = vst [vmem:[%s3440_s8 + $0x158] sm:$0xff] %v255_v43  ;;  %v259_v45 = vld [vmem:[%s3435_s7 + $0x2c8] sm:$0xff] }
  0x2f   : > { %258 = vst [vmem:[%s3440_s8 + $0x160] sm:$0xff] %v257_v44  ;;  %v261_v46 = vld [vmem:[%s3435_s7 + $0x2e0] sm:$0xff]  ;;  %v263_v47 = vld [vmem:[%s3435_s7 + $0x2e8] sm:$0xff]  ;;  %260 = vst [vmem:[%s3440_s8 + $0x168] sm:$0xff] %v259_v45 }
  0x30   : > { %262 = vst [vmem:[%s3440_s8 + $0x170] sm:$0xff] %v261_v46  ;;  %264 = vst [vmem:[%s3440_s8 + $0x178] sm:$0xff] %v263_v47  ;;  %v265_v48 = vld [vmem:[%s3435_s7 + $0x300] sm:$0xff]  ;;  %v267_v49 = vld [vmem:[%s3435_s7 + $0x308] sm:$0xff] }
  0x31   : > { %v269_v50 = vld [vmem:[%s3435_s7 + $0x320] sm:$0xff]  ;;  %266 = vst [vmem:[%s3440_s8 + $0x180] sm:$0xff] %v265_v48  ;;  %268 = vst [vmem:[%s3440_s8 + $0x188] sm:$0xff] %v267_v49  ;;  %v271_v51 = vld [vmem:[%s3435_s7 + $0x328] sm:$0xff] }
  0x32   : > { %270 = vst [vmem:[%s3440_s8 + $0x190] sm:$0xff] %v269_v50  ;;  %v273_v52 = vld [vmem:[%s3435_s7 + $0x340] sm:$0xff]  ;;  %v275_v53 = vld [vmem:[%s3435_s7 + $0x348] sm:$0xff]  ;;  %272 = vst [vmem:[%s3440_s8 + $0x198] sm:$0xff] %v271_v51 }
  0x33   : > { %274 = vst [vmem:[%s3440_s8 + $0x1a0] sm:$0xff] %v273_v52  ;;  %276 = vst [vmem:[%s3440_s8 + $0x1a8] sm:$0xff] %v275_v53  ;;  %v277_v54 = vld [vmem:[%s3435_s7 + $0x360] sm:$0xff]  ;;  %v279_v55 = vld [vmem:[%s3435_s7 + $0x368] sm:$0xff] }
  0x34   : > { %v281_v56 = vld [vmem:[%s3435_s7 + $0x380] sm:$0xff]  ;;  %278 = vst [vmem:[%s3440_s8 + $0x1b0] sm:$0xff] %v277_v54  ;;  %280 = vst [vmem:[%s3440_s8 + $0x1b8] sm:$0xff] %v279_v55  ;;  %v283_v57 = vld [vmem:[%s3435_s7 + $0x388] sm:$0xff] }
  0x35   : > { %282 = vst [vmem:[%s3440_s8 + $0x1c0] sm:$0xff] %v281_v56  ;;  %v285_v58 = vld [vmem:[%s3435_s7 + $0x3a0] sm:$0xff]  ;;  %v287_v59 = vld [vmem:[%s3435_s7 + $0x3a8] sm:$0xff]  ;;  %284 = vst [vmem:[%s3440_s8 + $0x1c8] sm:$0xff] %v283_v57 }
  0x36   : > { %286 = vst [vmem:[%s3440_s8 + $0x1d0] sm:$0xff] %v285_v58  ;;  %288 = vst [vmem:[%s3440_s8 + $0x1d8] sm:$0xff] %v287_v59  ;;  %v289_v60 = vld [vmem:[%s3435_s7 + $0x3c0] sm:$0xff]  ;;  %v291_v61 = vld [vmem:[%s3435_s7 + $0x3c8] sm:$0xff] }
  0x37   : > { %v293_v62 = vld [vmem:[%s3435_s7 + $0x3e0] sm:$0xff]  ;;  %290 = vst [vmem:[%s3440_s8 + $0x1e0] sm:$0xff] %v289_v60  ;;  %292 = vst [vmem:[%s3440_s8 + $0x1e8] sm:$0xff] %v291_v61  ;;  %v295_v63 = vld [vmem:[%s3435_s7 + $0x3e8] sm:$0xff] }
  0x38   : > { %294 = vst [vmem:[%s3440_s8 + $0x1f0] sm:$0xff] %v293_v62  ;;  %v297_v0 = vld [vmem:[%s3435_s7 + $0x400] sm:$0xff]  ;;  %v299_v1 = vld [vmem:[%s3435_s7 + $0x408] sm:$0xff]  ;;  %296 = vst [vmem:[%s3440_s8 + $0x1f8] sm:$0xff] %v295_v63 }
  0x39   : > { %298 = vst [vmem:[%s3440_s8 + $0x200] sm:$0xff] %v297_v0  ;;  %300 = vst [vmem:[%s3440_s8 + $0x208] sm:$0xff] %v299_v1  ;;  %v301_v2 = vld [vmem:[%s3435_s7 + $0x420] sm:$0xff]  ;;  %v303_v3 = vld [vmem:[%s3435_s7 + $0x428] sm:$0xff] }
  0x3a   : > { %v305_v4 = vld [vmem:[%s3435_s7 + $0x440] sm:$0xff]  ;;  %302 = vst [vmem:[%s3440_s8 + $0x210] sm:$0xff] %v301_v2  ;;  %304 = vst [vmem:[%s3440_s8 + $0x218] sm:$0xff] %v303_v3  ;;  %v307_v5 = vld [vmem:[%s3435_s7 + $0x448] sm:$0xff] }
  0x3b   : > { %306 = vst [vmem:[%s3440_s8 + $0x220] sm:$0xff] %v305_v4  ;;  %v309_v6 = vld [vmem:[%s3435_s7 + $0x460] sm:$0xff]  ;;  %v311_v7 = vld [vmem:[%s3435_s7 + $0x468] sm:$0xff]  ;;  %308 = vst [vmem:[%s3440_s8 + $0x228] sm:$0xff] %v307_v5 }
  0x3c   : > { %310 = vst [vmem:[%s3440_s8 + $0x230] sm:$0xff] %v309_v6  ;;  %312 = vst [vmem:[%s3440_s8 + $0x238] sm:$0xff] %v311_v7  ;;  %v313_v8 = vld [vmem:[%s3435_s7 + $0x480] sm:$0xff]  ;;  %v315_v9 = vld [vmem:[%s3435_s7 + $0x488] sm:$0xff] }
  0x3d   : > { %v317_v10 = vld [vmem:[%s3435_s7 + $0x4a0] sm:$0xff]  ;;  %314 = vst [vmem:[%s3440_s8 + $0x240] sm:$0xff] %v313_v8  ;;  %316 = vst [vmem:[%s3440_s8 + $0x248] sm:$0xff] %v315_v9  ;;  %v319_v11 = vld [vmem:[%s3435_s7 + $0x4a8] sm:$0xff] }
  0x3e   : > { %318 = vst [vmem:[%s3440_s8 + $0x250] sm:$0xff] %v317_v10  ;;  %v321_v12 = vld [vmem:[%s3435_s7 + $0x4c0] sm:$0xff]  ;;  %v323_v13 = vld [vmem:[%s3435_s7 + $0x4c8] sm:$0xff]  ;;  %320 = vst [vmem:[%s3440_s8 + $0x258] sm:$0xff] %v319_v11 }
  0x3f   : > { %322 = vst [vmem:[%s3440_s8 + $0x260] sm:$0xff] %v321_v12  ;;  %324 = vst [vmem:[%s3440_s8 + $0x268] sm:$0xff] %v323_v13  ;;  %v325_v14 = vld [vmem:[%s3435_s7 + $0x4e0] sm:$0xff]  ;;  %v327_v15 = vld [vmem:[%s3435_s7 + $0x4e8] sm:$0xff] }
  0x40   : > { %v329_v16 = vld [vmem:[%s3435_s7 + $0x500] sm:$0xff]  ;;  %326 = vst [vmem:[%s3440_s8 + $0x270] sm:$0xff] %v325_v14  ;;  %328 = vst [vmem:[%s3440_s8 + $0x278] sm:$0xff] %v327_v15  ;;  %v331_v17 = vld [vmem:[%s3435_s7 + $0x508] sm:$0xff] }
  0x41   : > { %330 = vst [vmem:[%s3440_s8 + $0x280] sm:$0xff] %v329_v16  ;;  %v333_v18 = vld [vmem:[%s3435_s7 + $0x520] sm:$0xff]  ;;  %v335_v19 = vld [vmem:[%s3435_s7 + $0x528] sm:$0xff]  ;;  %332 = vst [vmem:[%s3440_s8 + $0x288] sm:$0xff] %v331_v17 }
  0x42   : > { %334 = vst [vmem:[%s3440_s8 + $0x290] sm:$0xff] %v333_v18  ;;  %336 = vst [vmem:[%s3440_s8 + $0x298] sm:$0xff] %v335_v19  ;;  %v337_v20 = vld [vmem:[%s3435_s7 + $0x540] sm:$0xff]  ;;  %v339_v21 = vld [vmem:[%s3435_s7 + $0x548] sm:$0xff] }
  0x43   : > { %v341_v22 = vld [vmem:[%s3435_s7 + $0x560] sm:$0xff]  ;;  %338 = vst [vmem:[%s3440_s8 + $0x2a0] sm:$0xff] %v337_v20  ;;  %340 = vst [vmem:[%s3440_s8 + $0x2a8] sm:$0xff] %v339_v21  ;;  %v343_v23 = vld [vmem:[%s3435_s7 + $0x568] sm:$0xff] }
  0x44   : > { %342 = vst [vmem:[%s3440_s8 + $0x2b0] sm:$0xff] %v341_v22  ;;  %v345_v24 = vld [vmem:[%s3435_s7 + $0x580] sm:$0xff]  ;;  %v347_v25 = vld [vmem:[%s3435_s7 + $0x588] sm:$0xff]  ;;  %344 = vst [vmem:[%s3440_s8 + $0x2b8] sm:$0xff] %v343_v23 }
  0x45   : > { %346 = vst [vmem:[%s3440_s8 + $0x2c0] sm:$0xff] %v345_v24  ;;  %348 = vst [vmem:[%s3440_s8 + $0x2c8] sm:$0xff] %v347_v25  ;;  %v349_v26 = vld [vmem:[%s3435_s7 + $0x5a0] sm:$0xff]  ;;  %v351_v27 = vld [vmem:[%s3435_s7 + $0x5a8] sm:$0xff] }
  0x46   : > { %v353_v28 = vld [vmem:[%s3435_s7 + $0x5c0] sm:$0xff]  ;;  %350 = vst [vmem:[%s3440_s8 + $0x2d0] sm:$0xff] %v349_v26  ;;  %352 = vst [vmem:[%s3440_s8 + $0x2d8] sm:$0xff] %v351_v27  ;;  %v355_v29 = vld [vmem:[%s3435_s7 + $0x5c8] sm:$0xff] }
  0x47   : > { %354 = vst [vmem:[%s3440_s8 + $0x2e0] sm:$0xff] %v353_v28  ;;  %v357_v30 = vld [vmem:[%s3435_s7 + $0x5e0] sm:$0xff]  ;;  %v359_v31 = vld [vmem:[%s3435_s7 + $0x5e8] sm:$0xff]  ;;  %356 = vst [vmem:[%s3440_s8 + $0x2e8] sm:$0xff] %v355_v29 }
  0x48   : > { %358 = vst [vmem:[%s3440_s8 + $0x2f0] sm:$0xff] %v357_v30  ;;  %360 = vst [vmem:[%s3440_s8 + $0x2f8] sm:$0xff] %v359_v31  ;;  %v361_v32 = vld [vmem:[%s3435_s7 + $0x600] sm:$0xff]  ;;  %v363_v33 = vld [vmem:[%s3435_s7 + $0x608] sm:$0xff] }
  0x49   : > { %v365_v34 = vld [vmem:[%s3435_s7 + $0x620] sm:$0xff]  ;;  %362 = vst [vmem:[%s3440_s8 + $0x300] sm:$0xff] %v361_v32  ;;  %364 = vst [vmem:[%s3440_s8 + $0x308] sm:$0xff] %v363_v33  ;;  %v367_v35 = vld [vmem:[%s3435_s7 + $0x628] sm:$0xff] }
  0x4a   : > { %366 = vst [vmem:[%s3440_s8 + $0x310] sm:$0xff] %v365_v34  ;;  %v369_v36 = vld [vmem:[%s3435_s7 + $0x640] sm:$0xff]  ;;  %v371_v37 = vld [vmem:[%s3435_s7 + $0x648] sm:$0xff]  ;;  %368 = vst [vmem:[%s3440_s8 + $0x318] sm:$0xff] %v367_v35 }
  0x4b   : > { %370 = vst [vmem:[%s3440_s8 + $0x320] sm:$0xff] %v369_v36  ;;  %372 = vst [vmem:[%s3440_s8 + $0x328] sm:$0xff] %v371_v37  ;;  %v373_v38 = vld [vmem:[%s3435_s7 + $0x660] sm:$0xff]  ;;  %v375_v39 = vld [vmem:[%s3435_s7 + $0x668] sm:$0xff] }
  0x4c   : > { %v377_v40 = vld [vmem:[%s3435_s7 + $0x680] sm:$0xff]  ;;  %374 = vst [vmem:[%s3440_s8 + $0x330] sm:$0xff] %v373_v38  ;;  %376 = vst [vmem:[%s3440_s8 + $0x338] sm:$0xff] %v375_v39  ;;  %v379_v41 = vld [vmem:[%s3435_s7 + $0x688] sm:$0xff] }
  0x4d   : > { %378 = vst [vmem:[%s3440_s8 + $0x340] sm:$0xff] %v377_v40  ;;  %v381_v42 = vld [vmem:[%s3435_s7 + $0x6a0] sm:$0xff]  ;;  %v383_v43 = vld [vmem:[%s3435_s7 + $0x6a8] sm:$0xff]  ;;  %380 = vst [vmem:[%s3440_s8 + $0x348] sm:$0xff] %v379_v41 }
  0x4e   : > { %382 = vst [vmem:[%s3440_s8 + $0x350] sm:$0xff] %v381_v42  ;;  %384 = vst [vmem:[%s3440_s8 + $0x358] sm:$0xff] %v383_v43  ;;  %v385_v44 = vld [vmem:[%s3435_s7 + $0x6c0] sm:$0xff]  ;;  %v387_v45 = vld [vmem:[%s3435_s7 + $0x6c8] sm:$0xff] }
  0x4f   : > { %v389_v46 = vld [vmem:[%s3435_s7 + $0x6e0] sm:$0xff]  ;;  %386 = vst [vmem:[%s3440_s8 + $0x360] sm:$0xff] %v385_v44  ;;  %388 = vst [vmem:[%s3440_s8 + $0x368] sm:$0xff] %v387_v45  ;;  %v391_v47 = vld [vmem:[%s3435_s7 + $0x6e8] sm:$0xff] }
  0x50   : > { %390 = vst [vmem:[%s3440_s8 + $0x370] sm:$0xff] %v389_v46  ;;  %v393_v48 = vld [vmem:[%s3435_s7 + $0x700] sm:$0xff]  ;;  %v395_v49 = vld [vmem:[%s3435_s7 + $0x708] sm:$0xff]  ;;  %392 = vst [vmem:[%s3440_s8 + $0x378] sm:$0xff] %v391_v47 }
  0x51   : > { %394 = vst [vmem:[%s3440_s8 + $0x380] sm:$0xff] %v393_v48  ;;  %396 = vst [vmem:[%s3440_s8 + $0x388] sm:$0xff] %v395_v49  ;;  %v397_v50 = vld [vmem:[%s3435_s7 + $0x720] sm:$0xff]  ;;  %v399_v51 = vld [vmem:[%s3435_s7 + $0x728] sm:$0xff] }
  0x52   : > { %v401_v52 = vld [vmem:[%s3435_s7 + $0x740] sm:$0xff]  ;;  %398 = vst [vmem:[%s3440_s8 + $0x390] sm:$0xff] %v397_v50  ;;  %400 = vst [vmem:[%s3440_s8 + $0x398] sm:$0xff] %v399_v51  ;;  %v403_v53 = vld [vmem:[%s3435_s7 + $0x748] sm:$0xff] }
  0x53   : > { %402 = vst [vmem:[%s3440_s8 + $0x3a0] sm:$0xff] %v401_v52  ;;  %v405_v54 = vld [vmem:[%s3435_s7 + $0x760] sm:$0xff]  ;;  %v407_v55 = vld [vmem:[%s3435_s7 + $0x768] sm:$0xff]  ;;  %404 = vst [vmem:[%s3440_s8 + $0x3a8] sm:$0xff] %v403_v53 }
  0x54   : > { %406 = vst [vmem:[%s3440_s8 + $0x3b0] sm:$0xff] %v405_v54  ;;  %408 = vst [vmem:[%s3440_s8 + $0x3b8] sm:$0xff] %v407_v55  ;;  %v409_v56 = vld [vmem:[%s3435_s7 + $0x780] sm:$0xff]  ;;  %v411_v57 = vld [vmem:[%s3435_s7 + $0x788] sm:$0xff] }
  0x55   : > { %v413_v58 = vld [vmem:[%s3435_s7 + $0x7a0] sm:$0xff]  ;;  %410 = vst [vmem:[%s3440_s8 + $0x3c0] sm:$0xff] %v409_v56  ;;  %412 = vst [vmem:[%s3440_s8 + $0x3c8] sm:$0xff] %v411_v57  ;;  %v415_v59 = vld [vmem:[%s3435_s7 + $0x7a8] sm:$0xff] }
  0x56   : > { %414 = vst [vmem:[%s3440_s8 + $0x3d0] sm:$0xff] %v413_v58  ;;  %v417_v60 = vld [vmem:[%s3435_s7 + $0x7c0] sm:$0xff]  ;;  %v419_v61 = vld [vmem:[%s3435_s7 + $0x7c8] sm:$0xff]  ;;  %416 = vst [vmem:[%s3440_s8 + $0x3d8] sm:$0xff] %v415_v59 }
  0x57   : > { %418 = vst [vmem:[%s3440_s8 + $0x3e0] sm:$0xff] %v417_v60  ;;  %420 = vst [vmem:[%s3440_s8 + $0x3e8] sm:$0xff] %v419_v61  ;;  %v421_v62 = vld [vmem:[%s3435_s7 + $0x7e0] sm:$0xff]  ;;  %v423_v63 = vld [vmem:[%s3435_s7 + $0x7e8] sm:$0xff] }
  0x58   : > { %422 = vst [vmem:[%s3440_s8 + $0x3f0] sm:$0xff] %v421_v62  ;;  %424 = vst [vmem:[%s3440_s8 + $0x3f8] sm:$0xff] %v423_v63 }
  0x59 PF: > { %p2843_p7 = scmp.ge.s32.totalorder %s3351_s18, 1  ;;  %p438_p8 = scmp.lt.s32.totalorder %s3351_s18, 5 }
  0x5b   : > { %p439_p9 = pnand %p2843_p7, %p438_p8 }
  0x5c   : > { %s445_s9 = sand.u32 (!%p439_p9), 1, %s3327_s12   ;;  %s2845_s10 = sshll.u32 (!%p439_p9), %s3335_s14, 6 }
  0x5d   : > { %442 = sbr.rel (%p439_p9) target bundleno = 712 (0x2c8), region = 51  ;;  %s2844_s11 = sshll.u32 (!%p439_p9), %s445_s9, 10 }
  0x5e   : > { %p476_p10 = scmp.lt.s32.totalorder (!%p439_p9), %s2845_s10, 127  ;;  %s2847_s21 = sshll.u32 (!%p439_p9), %s3339_s15, 6 }
  0x5f   : > { %p482_p11 = scmp.lt.s32.totalorder (!%p439_p9), %s2847_s21, 127  ;;  %s3710_s12 = scalar_lea.vmem (!%p439_p9), [#allocation3], %s2844_s11 }
  0x60   : > { %p2849_p12 = scmp.ne.s32.totalorder (!%p439_p9), %s3335_s14, 0 }
  0x64   : > { %s4141_s10 = smov (!%p476_p10, %s2845_s10), 127  ;;  %s4143_s21 = smov (!%p482_p11, %s2847_s21), 127 }
  0x65   : > { %s2846_s22 = sshll.u32 %s4141_s10, 2  ;;  %s2848_s27 = sshll.u32 %s4143_s21, 3  ;;  %v3353_v0 = vmov (!%p2849_p12), 0.0  }
  0x66   : > { %s3703_s26 = scalar_lea.vmem %s4125_s1, %s2846_s22  ;;  %s3708_s30 = scalar_lea.vmem %s4127_s3, %s2848_s27  ;;  %492 = vst [vmem:[#allocation2] sm:$0xff] (!%p2849_p12), %v3353_v0  ;;  %493 = vst [vmem:[#allocation2 + $0x8] sm:$0xff] (!%p2849_p12), %v3353_v0 }
  0x67   : > { %491 = sbr.rel (%p2849_p12) target bundleno = 134 (0x86), region = 59  ;;  %494 = vst [vmem:[#allocation2 + $0x10] sm:$0xff] (!%p2849_p12), %v3353_v0  ;;  %495 = vst [vmem:[#allocation2 + $0x18] sm:$0xff] (!%p2849_p12), %v3353_v0 }
  0x68   : > { %496 = vst [vmem:[#allocation2 + $0x20] sm:$0xff] (!%p2849_p12), %v3353_v0  ;;  %497 = vst [vmem:[#allocation2 + $0x28] sm:$0xff] (!%p2849_p12), %v3353_v0 }
  0x69   : > { %498 = vst [vmem:[#allocation2 + $0x30] sm:$0xff] (!%p2849_p12), %v3353_v0  ;;  %499 = vst [vmem:[#allocation2 + $0x38] sm:$0xff] (!%p2849_p12), %v3353_v0 }
  0x6a   : > { %500 = vst [vmem:[#allocation2 + $0x40] sm:$0xff] (!%p2849_p12), %v3353_v0  ;;  %501 = vst [vmem:[#allocation2 + $0x48] sm:$0xff] (!%p2849_p12), %v3353_v0 }
  0x6b   : > { %502 = vst [vmem:[#allocation2 + $0x50] sm:$0xff] (!%p2849_p12), %v3353_v0  ;;  %503 = vst [vmem:[#allocation2 + $0x58] sm:$0xff] (!%p2849_p12), %v3353_v0 }
  0x6c   : > { %504 = vst [vmem:[#allocation2 + $0x60] sm:$0xff] (!%p2849_p12), %v3353_v0  ;;  %505 = vst [vmem:[#allocation2 + $0x68] sm:$0xff] (!%p2849_p12), %v3353_v0 }
  0x6d   : > { %506 = vst [vmem:[#allocation2 + $0x70] sm:$0xff] (!%p2849_p12), %v3353_v0  ;;  %507 = vst [vmem:[#allocation2 + $0x78] sm:$0xff] (!%p2849_p12), %v3353_v0 }
  0x6e   : > { %508 = vst [vmem:[#allocation2 + $0x80] sm:$0xff] %v3353_v0  ;;  %509 = vst [vmem:[#allocation2 + $0x88] sm:$0xff] %v3353_v0 }
  0x6f   : > { %510 = vst [vmem:[#allocation2 + $0x90] sm:$0xff] %v3353_v0  ;;  %511 = vst [vmem:[#allocation2 + $0x98] sm:$0xff] %v3353_v0 }
  0x70   : > { %512 = vst [vmem:[#allocation2 + $0xa0] sm:$0xff] %v3353_v0  ;;  %513 = vst [vmem:[#allocation2 + $0xa8] sm:$0xff] %v3353_v0 }
  0x71   : > { %514 = vst [vmem:[#allocation2 + $0xb0] sm:$0xff] %v3353_v0  ;;  %515 = vst [vmem:[#allocation2 + $0xb8] sm:$0xff] %v3353_v0 }
  0x72   : > { %516 = vst [vmem:[#allocation2 + $0xc0] sm:$0xff] %v3353_v0  ;;  %517 = vst [vmem:[#allocation2 + $0xc8] sm:$0xff] %v3353_v0 }
  0x73   : > { %518 = vst [vmem:[#allocation2 + $0xd0] sm:$0xff] %v3353_v0  ;;  %519 = vst [vmem:[#allocation2 + $0xd8] sm:$0xff] %v3353_v0 }
  0x74   : > { %520 = vst [vmem:[#allocation2 + $0xe0] sm:$0xff] %v3353_v0  ;;  %521 = vst [vmem:[#allocation2 + $0xe8] sm:$0xff] %v3353_v0 }
  0x75   : > { %522 = vst [vmem:[#allocation2 + $0xf0] sm:$0xff] %v3353_v0  ;;  %523 = vst [vmem:[#allocation2 + $0xf8] sm:$0xff] %v3353_v0 }
  0x76   : > { %524 = vst [vmem:[#allocation2 + $0x100] sm:$0xff] %v3353_v0  ;;  %525 = vst [vmem:[#allocation2 + $0x108] sm:$0xff] %v3353_v0 }
  0x77   : > { %526 = vst [vmem:[#allocation2 + $0x110] sm:$0xff] %v3353_v0  ;;  %527 = vst [vmem:[#allocation2 + $0x118] sm:$0xff] %v3353_v0 }
  0x78   : > { %528 = vst [vmem:[#allocation2 + $0x120] sm:$0xff] %v3353_v0  ;;  %529 = vst [vmem:[#allocation2 + $0x128] sm:$0xff] %v3353_v0 }
  0x79   : > { %530 = vst [vmem:[#allocation2 + $0x130] sm:$0xff] %v3353_v0  ;;  %531 = vst [vmem:[#allocation2 + $0x138] sm:$0xff] %v3353_v0 }
  0x7a   : > { %532 = vst [vmem:[#allocation2 + $0x140] sm:$0xff] %v3353_v0  ;;  %533 = vst [vmem:[#allocation2 + $0x148] sm:$0xff] %v3353_v0 }
  0x7b   : > { %534 = vst [vmem:[#allocation2 + $0x150] sm:$0xff] %v3353_v0  ;;  %535 = vst [vmem:[#allocation2 + $0x158] sm:$0xff] %v3353_v0 }
  0x7c   : > { %536 = vst [vmem:[#allocation2 + $0x160] sm:$0xff] %v3353_v0  ;;  %537 = vst [vmem:[#allocation2 + $0x168] sm:$0xff] %v3353_v0 }
  0x7d   : > { %538 = vst [vmem:[#allocation2 + $0x170] sm:$0xff] %v3353_v0  ;;  %539 = vst [vmem:[#allocation2 + $0x178] sm:$0xff] %v3353_v0 }
  0x7e   : > { %540 = vst [vmem:[#allocation2 + $0x180] sm:$0xff] %v3353_v0  ;;  %541 = vst [vmem:[#allocation2 + $0x188] sm:$0xff] %v3353_v0 }
  0x7f   : > { %542 = vst [vmem:[#allocation2 + $0x190] sm:$0xff] %v3353_v0  ;;  %543 = vst [vmem:[#allocation2 + $0x198] sm:$0xff] %v3353_v0 }
  0x80   : > { %544 = vst [vmem:[#allocation2 + $0x1a0] sm:$0xff] %v3353_v0  ;;  %545 = vst [vmem:[#allocation2 + $0x1a8] sm:$0xff] %v3353_v0 }
  0x81   : > { %546 = vst [vmem:[#allocation2 + $0x1b0] sm:$0xff] %v3353_v0  ;;  %547 = vst [vmem:[#allocation2 + $0x1b8] sm:$0xff] %v3353_v0 }
  0x82   : > { %548 = vst [vmem:[#allocation2 + $0x1c0] sm:$0xff] %v3353_v0  ;;  %549 = vst [vmem:[#allocation2 + $0x1c8] sm:$0xff] %v3353_v0 }
  0x83   : > { %550 = vst [vmem:[#allocation2 + $0x1d0] sm:$0xff] %v3353_v0  ;;  %551 = vst [vmem:[#allocation2 + $0x1d8] sm:$0xff] %v3353_v0 }
  0x84   : > { %552 = vst [vmem:[#allocation2 + $0x1e0] sm:$0xff] %v3353_v0  ;;  %553 = vst [vmem:[#allocation2 + $0x1e8] sm:$0xff] %v3353_v0 }
  0x85   : > { %554 = vst [vmem:[#allocation2 + $0x1f0] sm:$0xff] %v3353_v0  ;;  %555 = vst [vmem:[#allocation2 + $0x1f8] sm:$0xff] %v3353_v0 }
  0x86 PF: > { %v3073_v1 = vld [vmem:[%s3703_s26] sm:$0xff]   ;;  %v3354_v2 = vmov 0   ;;  %v3075_v4 = vld [vmem:[%s3703_s26 + $0x8] sm:$0xff]   ;;  %v3077_v6 = vld [vmem:[%s3703_s26 + $0x10] sm:$0xff]   ;;  %p3010_p13 = scmp.ne.s32.totalorder %s3335_s14, 1 }
  0x87   : > { %1644 = vmatprep.subr.bf16.mxu0 %v3354_v2  ;;  %1933 = vmatprep.subr.bf16.mxu1 %v3354_v2  ;;  %v3074_v3 = vld [vmem:[%s3703_s26 + $0x80] sm:$0xff]   ;;  %v3076_v5 = vld [vmem:[%s3703_s26 + $0x88] sm:$0xff]   ;;  %v3078_v7 = vld [vmem:[%s3703_s26 + $0x90] sm:$0xff]  }
  0x88   : > { %1645 = vmatpush1.bf16.msra.mxu0 %v3073_v1  ;;  %1934 = vmatpush1.bf16.msra.mxu1 %v3074_v3  ;;  %v3079_v8 = vld [vmem:[%s3703_s26 + $0x18] sm:$0xff]   ;;  %v3081_v10 = vld [vmem:[%s3703_s26 + $0x20] sm:$0xff]   ;;  %v3083_v12 = vld [vmem:[%s3703_s26 + $0x28] sm:$0xff]  }
  0x89   : > { %1646 = vmatprep.subr.bf16.mxu0 %v3354_v2  ;;  %1935 = vmatprep.subr.bf16.mxu1 %v3354_v2  ;;  %v3080_v9 = vld [vmem:[%s3703_s26 + $0x98] sm:$0xff]   ;;  %v3082_v11 = vld [vmem:[%s3703_s26 + $0xa0] sm:$0xff]   ;;  %v3084_v13 = vld [vmem:[%s3703_s26 + $0xa8] sm:$0xff]  }
  0x8a   : > { %v3085_v14 = vld [vmem:[%s3703_s26 + $0x30] sm:$0xff]   ;;  %v3087_v16 = vld [vmem:[%s3703_s26 + $0x38] sm:$0xff]   ;;  %v3089_v18 = vld [vmem:[%s3703_s26 + $0x40] sm:$0xff]  }
  0x8b   : > { %v3086_v15 = vld [vmem:[%s3703_s26 + $0xb0] sm:$0xff]   ;;  %v3088_v17 = vld [vmem:[%s3703_s26 + $0xb8] sm:$0xff]   ;;  %v3090_v19 = vld [vmem:[%s3703_s26 + $0xc0] sm:$0xff]  }
  0x8c   : > { %1647 = vmatpush1.bf16.msra.mxu0 %v3075_v4  ;;  %1936 = vmatpush1.bf16.msra.mxu1 %v3076_v5  ;;  %v3107_v20 = vld [vmem:[%s3710_s12 + $0x4] ss:$16 sps:$4 sm:$0xff]   ;;  %v3091_v21 = vld [vmem:[%s3703_s26 + $0x48] sm:$0xff]   ;;  %v3095_v26 = vld [vmem:[%s3703_s26 + $0x58] sm:$0xff]  }
  0x8d   : > { %1648 = vmatprep.subr.bf16.mxu0 %v3354_v2  ;;  %1937 = vmatprep.subr.bf16.mxu1 %v3354_v2  ;;  %v3110_v22 = vld [vmem:[%s3710_s12 + $0xc] ss:$16 sps:$4 sm:$0xff]   ;;  %v3093_v24 = vld [vmem:[%s3703_s26 + $0x50] sm:$0xff]   ;;  %v3097_v28 = vld [vmem:[%s3703_s26 + $0x60] sm:$0xff]  }
  0x8e   : > { %v3092_v23 = vld [vmem:[%s3703_s26 + $0xc8] sm:$0xff]   ;;  %1676 = vmatprep.mubr.bf16.mxu0 %v3107_v20  ;;  %1965 = vmatprep.mubr.bf16.mxu1 %v3110_v22  ;;  %v3094_v25 = vld [vmem:[%s3703_s26 + $0xd0] sm:$0xff]   ;;  %v3096_v27 = vld [vmem:[%s3703_s26 + $0xd8] sm:$0xff]  }
  0x8f   : > { %v3098_v29 = vld [vmem:[%s3703_s26 + $0xe0] sm:$0xff]   ;;  %v3099_v30 = vld [vmem:[%s3703_s26 + $0x68] sm:$0xff]   ;;  %v3101_v32 = vld [vmem:[%s3703_s26 + $0x70] sm:$0xff]  }
  0x90   : > { %1649 = vmatpush1.bf16.msra.mxu0 %v3077_v6  ;;  %1938 = vmatpush1.bf16.msra.mxu1 %v3078_v7  ;;  %v3100_v31 = vld [vmem:[%s3703_s26 + $0xe8] sm:$0xff]   ;;  %v3102_v33 = vld [vmem:[%s3703_s26 + $0xf0] sm:$0xff]   ;;  %v3103_v34 = vld [vmem:[%s3703_s26 + $0x78] sm:$0xff]  }
  0x91   : > { %1650 = vmatprep.subr.bf16.mxu0 %v3354_v2  ;;  %1939 = vmatprep.subr.bf16.mxu1 %v3354_v2  ;;  %v3104_v35 = vld [vmem:[%s3703_s26 + $0xf8] sm:$0xff]   ;;  %v3105_v36 = vld [vmem:[%s3710_s12] ss:$16 sps:$4 sm:$0xff]   ;;  %v3111_v38 = vld [vmem:[%s3710_s12 + $0x24] ss:$16 sps:$4 sm:$0xff]  }
  0x92   : > { %v3108_v37 = vld [vmem:[%s3710_s12 + $0x8] ss:$16 sps:$4 sm:$0xff]   ;;  %v3113_v39 = vld [vmem:[%s3710_s12 + $0x2c] ss:$16 sps:$4 sm:$0xff]   ;;  %v3115_v40 = vld [vmem:[%s3710_s12 + $0x20] ss:$16 sps:$4 sm:$0xff]  }
  0x93   : > { %v3116_v41 = vld [vmem:[%s3710_s12 + $0x28] ss:$16 sps:$4 sm:$0xff]   ;;  %v3117_v42 = vld [vmem:[%s3710_s12 + $0x44] ss:$16 sps:$4 sm:$0xff]   ;;  %v3119_v43 = vld [vmem:[%s3710_s12 + $0x4c] ss:$16 sps:$4 sm:$0xff]  }
  0x94   : > { %1651 = vmatpush1.bf16.msra.mxu0 %v3079_v8  ;;  %1940 = vmatpush1.bf16.msra.mxu1 %v3080_v9  ;;  %v3121_v44 = vld [vmem:[%s3710_s12 + $0x40] ss:$16 sps:$4 sm:$0xff]   ;;  %v3122_v45 = vld [vmem:[%s3710_s12 + $0x48] ss:$16 sps:$4 sm:$0xff]   ;;  %v3123_v46 = vld [vmem:[%s3710_s12 + $0x64] ss:$16 sps:$4 sm:$0xff]  }
  0x95   : > { %1652 = vmatprep.subr.bf16.mxu0 %v3354_v2  ;;  %1941 = vmatprep.subr.bf16.mxu1 %v3354_v2  ;;  %v3125_v47 = vld [vmem:[%s3710_s12 + $0x6c] ss:$16 sps:$4 sm:$0xff]   ;;  %v3127_v48 = vld [vmem:[%s3710_s12 + $0x60] ss:$16 sps:$4 sm:$0xff]   ;;  %v3128_v49 = vld [vmem:[%s3710_s12 + $0x68] ss:$16 sps:$4 sm:$0xff]  }
  0x96   : > { %v3129_v50 = vld [vmem:[%s3710_s12 + $0x84] ss:$16 sps:$4 sm:$0xff]   ;;  %v3131_v51 = vld [vmem:[%s3710_s12 + $0x8c] ss:$16 sps:$4 sm:$0xff]   ;;  %v3133_v52 = vld [vmem:[%s3710_s12 + $0x80] ss:$16 sps:$4 sm:$0xff]  }
  0x97   : > { %v3134_v53 = vld [vmem:[%s3710_s12 + $0x88] ss:$16 sps:$4 sm:$0xff]   ;;  %v3135_v54 = vld [vmem:[%s3710_s12 + $0xa4] ss:$16 sps:$4 sm:$0xff]   ;;  %v3137_v55 = vld [vmem:[%s3710_s12 + $0xac] ss:$16 sps:$4 sm:$0xff]  }
  0x98   : > { %1653 = vmatpush1.bf16.msra.mxu0 %v3081_v10  ;;  %1942 = vmatpush1.bf16.msra.mxu1 %v3082_v11  ;;  %v3139_v56 = vld [vmem:[%s3710_s12 + $0xa0] ss:$16 sps:$4 sm:$0xff]   ;;  %v3140_v57 = vld [vmem:[%s3710_s12 + $0xa8] ss:$16 sps:$4 sm:$0xff]   ;;  %v3141_v58 = vld [vmem:[%s3710_s12 + $0xc4] ss:$16 sps:$4 sm:$0xff]  }
  0x99   : > { %1654 = vmatprep.subr.bf16.mxu0 %v3354_v2  ;;  %1943 = vmatprep.subr.bf16.mxu1 %v3354_v2  ;;  %v3143_v59 = vld [vmem:[%s3710_s12 + $0xcc] ss:$16 sps:$4 sm:$0xff]   ;;  %v3145_v60 = vld [vmem:[%s3710_s12 + $0xc0] ss:$16 sps:$4 sm:$0xff]   ;;  %v3146_v61 = vld [vmem:[%s3710_s12 + $0xc8] ss:$16 sps:$4 sm:$0xff]  }
  0x9a   : > { %v3147_v62 = vld [vmem:[%s3710_s12 + $0xe4] ss:$16 sps:$4 sm:$0xff]   ;;  %v3149_v63 = vld [vmem:[%s3710_s12 + $0xec] ss:$16 sps:$4 sm:$0xff]   ;;  %v3151_v0 = vld [vmem:[%s3710_s12 + $0xe0] ss:$16 sps:$4 sm:$0xff]  }
  0x9b   : > { %v3152_v1 = vld [vmem:[%s3710_s12 + $0xe8] ss:$16 sps:$4 sm:$0xff]   ;;  %v3155_v3 = vld [vmem:[%s3710_s12 + $0x10c] ss:$16 sps:$4 sm:$0xff]   ;;  %v3157_v4 = vld [vmem:[%s3710_s12 + $0x100] ss:$16 sps:$4 sm:$0xff]  }
  0x9c   : > { %1655 = vmatpush1.bf16.msra.mxu0 %v3083_v12  ;;  %1944 = vmatpush1.bf16.msra.mxu1 %v3084_v13  ;;  %v3158_v5 = vld [vmem:[%s3710_s12 + $0x108] ss:$16 sps:$4 sm:$0xff]   ;;  %v3159_v6 = vld [vmem:[%s3710_s12 + $0x124] ss:$16 sps:$4 sm:$0xff]   ;;  %v3161_v7 = vld [vmem:[%s3710_s12 + $0x12c] ss:$16 sps:$4 sm:$0xff]  }
  0x9d   : > { %1656 = vmatprep.subr.bf16.mxu0 %v3354_v2  ;;  %1945 = vmatprep.subr.bf16.mxu1 %v3354_v2  ;;  %v3163_v8 = vld [vmem:[%s3710_s12 + $0x120] ss:$16 sps:$4 sm:$0xff]   ;;  %v3164_v9 = vld [vmem:[%s3710_s12 + $0x128] ss:$16 sps:$4 sm:$0xff]   ;;  %v3165_v10 = vld [vmem:[%s3710_s12 + $0x144] ss:$16 sps:$4 sm:$0xff]  }
  0x9e   : > { %v3167_v11 = vld [vmem:[%s3710_s12 + $0x14c] ss:$16 sps:$4 sm:$0xff]   ;;  %v3169_v12 = vld [vmem:[%s3710_s12 + $0x140] ss:$16 sps:$4 sm:$0xff]   ;;  %v3170_v13 = vld [vmem:[%s3710_s12 + $0x148] ss:$16 sps:$4 sm:$0xff]  }
  0x9f   : > { %v3181_v20 = vld [vmem:[%s3710_s12 + $0x180] ss:$16 sps:$4 sm:$0xff]   ;;  %v3183_v22 = vld [vmem:[%s3710_s12 + $0x1a4] ss:$16 sps:$4 sm:$0xff]  }
  0xa0   : > { %1657 = vmatpush1.bf16.msra.mxu0 %v3085_v14  ;;  %1946 = vmatpush1.bf16.msra.mxu1 %v3086_v15  ;;  %v3171_v14 = vld [vmem:[%s3710_s12 + $0x164] ss:$16 sps:$4 sm:$0xff]   ;;  %v3173_v15 = vld [vmem:[%s3710_s12 + $0x16c] ss:$16 sps:$4 sm:$0xff]  }
  0xa1   : > { %1658 = vmatprep.subr.bf16.mxu0 %v3354_v2  ;;  %1947 = vmatprep.subr.bf16.mxu1 %v3354_v2 }
  0xa4   : > { %1659 = vmatpush1.bf16.msra.mxu0 %v3087_v16  ;;  %1948 = vmatpush1.bf16.msra.mxu1 %v3088_v17  ;;  %v3175_v16 = vld [vmem:[%s3710_s12 + $0x160] ss:$16 sps:$4 sm:$0xff]   ;;  %v3176_v17 = vld [vmem:[%s3710_s12 + $0x168] ss:$16 sps:$4 sm:$0xff]  }
  0xa5   : > { %1660 = vmatprep.subr.bf16.mxu0 %v3354_v2  ;;  %1949 = vmatprep.subr.bf16.mxu1 %v3354_v2 }
  0xa8   : > { %1661 = vmatpush1.bf16.msra.mxu0 %v3089_v18  ;;  %1950 = vmatpush1.bf16.msra.mxu1 %v3090_v19  ;;  %v3177_v18 = vld [vmem:[%s3710_s12 + $0x184] ss:$16 sps:$4 sm:$0xff]   ;;  %v3179_v19 = vld [vmem:[%s3710_s12 + $0x18c] ss:$16 sps:$4 sm:$0xff]  }
  0xa9   : > { %1662 = vmatprep.subr.bf16.mxu0 %v3354_v2  ;;  %1951 = vmatprep.subr.bf16.mxu1 %v3354_v2 }
  0xac   : > { %1663 = vmatpush1.bf16.msra.mxu0 %v3091_v21  ;;  %1952 = vmatpush1.bf16.msra.mxu1 %v3092_v23  ;;  %v3182_v21 = vld [vmem:[%s3710_s12 + $0x188] ss:$16 sps:$4 sm:$0xff]   ;;  %v3185_v23 = vld [vmem:[%s3710_s12 + $0x1ac] ss:$16 sps:$4 sm:$0xff]  }
  0xad   : > { %1664 = vmatprep.subr.bf16.mxu0 %v3354_v2  ;;  %1953 = vmatprep.subr.bf16.mxu1 %v3354_v2 }
  0xb0   : > { %1665 = vmatpush1.bf16.msra.mxu0 %v3093_v24  ;;  %1954 = vmatpush1.bf16.msra.mxu1 %v3094_v25  ;;  %v3187_v24 = vld [vmem:[%s3710_s12 + $0x1a0] ss:$16 sps:$4 sm:$0xff]   ;;  %v3188_v25 = vld [vmem:[%s3710_s12 + $0x1a8] ss:$16 sps:$4 sm:$0xff]  }
  0xb1   : > { %1666 = vmatprep.subr.bf16.mxu0 %v3354_v2  ;;  %1955 = vmatprep.subr.bf16.mxu1 %v3354_v2 }
  0xb4   : > { %1667 = vmatpush1.bf16.msra.mxu0 %v3095_v26  ;;  %1956 = vmatpush1.bf16.msra.mxu1 %v3096_v27  ;;  %v3189_v26 = vld [vmem:[%s3710_s12 + $0x1c4] ss:$16 sps:$4 sm:$0xff]   ;;  %v3191_v27 = vld [vmem:[%s3710_s12 + $0x1cc] ss:$16 sps:$4 sm:$0xff]  }
  0xb5   : > { %1668 = vmatprep.subr.bf16.mxu0 %v3354_v2  ;;  %1957 = vmatprep.subr.bf16.mxu1 %v3354_v2 }
  0xb8   : > { %1669 = vmatpush1.bf16.msra.mxu0 %v3097_v28  ;;  %1958 = vmatpush1.bf16.msra.mxu1 %v3098_v29  ;;  %v3193_v28 = vld [vmem:[%s3710_s12 + $0x1c0] ss:$16 sps:$4 sm:$0xff]   ;;  %v3194_v29 = vld [vmem:[%s3710_s12 + $0x1c8] ss:$16 sps:$4 sm:$0xff]  }
  0xb9   : > { %1670 = vmatprep.subr.bf16.mxu0 %v3354_v2  ;;  %1959 = vmatprep.subr.bf16.mxu1 %v3354_v2 }
  0xbc   : > { %1671 = vmatpush1.bf16.msra.mxu0 %v3099_v30  ;;  %1960 = vmatpush1.bf16.msra.mxu1 %v3100_v31  ;;  %v3195_v30 = vld [vmem:[%s3710_s12 + $0x1e4] ss:$16 sps:$4 sm:$0xff]   ;;  %v3197_v31 = vld [vmem:[%s3710_s12 + $0x1ec] ss:$16 sps:$4 sm:$0xff]  }
  0xbd   : > { %1672 = vmatprep.subr.bf16.mxu0 %v3354_v2  ;;  %1961 = vmatprep.subr.bf16.mxu1 %v3354_v2 }
  0xc0   : > { %1673 = vmatpush1.bf16.msra.mxu0 %v3101_v32  ;;  %1962 = vmatpush1.bf16.msra.mxu1 %v3102_v33  ;;  %v3199_v32 = vld [vmem:[%s3710_s12 + $0x1e0] ss:$16 sps:$4 sm:$0xff]   ;;  %v3200_v33 = vld [vmem:[%s3710_s12 + $0x1e8] ss:$16 sps:$4 sm:$0xff]  }
  0xc1   : > { %1674 = vmatprep.subr.bf16.mxu0 %v3354_v2  ;;  %1963 = vmatprep.subr.bf16.mxu1 %v3354_v2  ;;  %v3153_v2 = vld [vmem:[%s3710_s12 + $0x104] ss:$16 sps:$4 sm:$0xff]  }
  0xc4   : > { %1675 = vmatpush1.bf16.msra.mxu0 %v3103_v34  ;;  %1964 = vmatpush1.bf16.msra.mxu1 %v3104_v35  ;;  %v3201_v34 = vld [vmem:[%s3710_s12 + $0x204] ss:$16 sps:$4 sm:$0xff]   ;;  %v3203_v35 = vld [vmem:[%s3710_s12 + $0x20c] ss:$16 sps:$4 sm:$0xff]  }
  0xc7   : > { %1677 = vmatmul.mubr.bf16.vlgmr.msra.gmra.mrb[0].mxu0 %v3105_v36  ;;  %1966 = vmatmul.mubr.bf16.vlgmr.msra.gmra.mrb[0].mxu1 %v3108_v37  ;;  %v3205_v36 = vld [vmem:[%s3710_s12 + $0x200] ss:$16 sps:$4 sm:$0xff]   ;;  %v3206_v37 = vld [vmem:[%s3710_s12 + $0x208] ss:$16 sps:$4 sm:$0xff]  }
  0xc8   : > { %1684 = vmatprep.mubr.bf16.mxu0 %v3111_v38  ;;  %1973 = vmatprep.mubr.bf16.mxu1 %v3113_v39  ;;  %v3207_v38 = vld [vmem:[%s3710_s12 + $0x224] ss:$16 sps:$4 sm:$0xff]   ;;  %v3209_v39 = vld [vmem:[%s3710_s12 + $0x22c] ss:$16 sps:$4 sm:$0xff]  }
  0xcf   : > { %1685 = vmatmul.mubr.bf16.gmra.mrb[4].mxu0 %v3115_v40  ;;  %1974 = vmatmul.mubr.bf16.gmra.mrb[4].mxu1 %v3116_v41  ;;  %v3211_v40 = vld [vmem:[%s3710_s12 + $0x220] ss:$16 sps:$4 sm:$0xff]   ;;  %v3212_v41 = vld [vmem:[%s3710_s12 + $0x228] ss:$16 sps:$4 sm:$0xff]  }
  0xd0   : > { %1692 = vmatprep.mubr.bf16.mxu0 %v3117_v42  ;;  %1981 = vmatprep.mubr.bf16.mxu1 %v3119_v43  ;;  %v3213_v42 = vld [vmem:[%s3710_s12 + $0x244] ss:$16 sps:$4 sm:$0xff]   ;;  %v3215_v43 = vld [vmem:[%s3710_s12 + $0x24c] ss:$16 sps:$4 sm:$0xff]  }
  0xd7   : > { %1693 = vmatmul.mubr.bf16.gmra.mrb[8].mxu0 %v3121_v44  ;;  %1982 = vmatmul.mubr.bf16.gmra.mrb[8].mxu1 %v3122_v45  ;;  %v3217_v44 = vld [vmem:[%s3710_s12 + $0x240] ss:$16 sps:$4 sm:$0xff]   ;;  %v3218_v45 = vld [vmem:[%s3710_s12 + $0x248] ss:$16 sps:$4 sm:$0xff]  }
  0xd8   : > { %1700 = vmatprep.mubr.bf16.mxu0 %v3123_v46  ;;  %1989 = vmatprep.mubr.bf16.mxu1 %v3125_v47  ;;  %v3219_v46 = vld [vmem:[%s3710_s12 + $0x264] ss:$16 sps:$4 sm:$0xff]   ;;  %v3221_v47 = vld [vmem:[%s3710_s12 + $0x26c] ss:$16 sps:$4 sm:$0xff]  }
  0xdf   : > { %1701 = vmatmul.mubr.bf16.gmra.mrb[12].mxu0 %v3127_v48  ;;  %1990 = vmatmul.mubr.bf16.gmra.mrb[12].mxu1 %v3128_v49  ;;  %v3223_v48 = vld [vmem:[%s3710_s12 + $0x260] ss:$16 sps:$4 sm:$0xff]   ;;  %v3224_v49 = vld [vmem:[%s3710_s12 + $0x268] ss:$16 sps:$4 sm:$0xff]  }
  0xe0   : > { %1708 = vmatprep.mubr.bf16.mxu0 %v3129_v50  ;;  %1997 = vmatprep.mubr.bf16.mxu1 %v3131_v51  ;;  %v3225_v50 = vld [vmem:[%s3710_s12 + $0x284] ss:$16 sps:$4 sm:$0xff]   ;;  %v3227_v51 = vld [vmem:[%s3710_s12 + $0x28c] ss:$16 sps:$4 sm:$0xff]  }
  0xe7   : > { %1709 = vmatmul.mubr.bf16.gmra.mrb[16].mxu0 %v3133_v52  ;;  %1998 = vmatmul.mubr.bf16.gmra.mrb[16].mxu1 %v3134_v53  ;;  %v3229_v52 = vld [vmem:[%s3710_s12 + $0x280] ss:$16 sps:$4 sm:$0xff]   ;;  %v3230_v53 = vld [vmem:[%s3710_s12 + $0x288] ss:$16 sps:$4 sm:$0xff]  }
  0xe8   : > { %1716 = vmatprep.mubr.bf16.mxu0 %v3135_v54  ;;  %2005 = vmatprep.mubr.bf16.mxu1 %v3137_v55  ;;  %v3231_v54 = vld [vmem:[%s3710_s12 + $0x2a4] ss:$16 sps:$4 sm:$0xff]   ;;  %v3233_v55 = vld [vmem:[%s3710_s12 + $0x2ac] ss:$16 sps:$4 sm:$0xff]  }
  0xef   : > { %1717 = vmatmul.mubr.bf16.gmra.mrb[20].mxu0 %v3139_v56  ;;  %2006 = vmatmul.mubr.bf16.gmra.mrb[20].mxu1 %v3140_v57  ;;  %v3235_v56 = vld [vmem:[%s3710_s12 + $0x2a0] ss:$16 sps:$4 sm:$0xff]   ;;  %v3236_v57 = vld [vmem:[%s3710_s12 + $0x2a8] ss:$16 sps:$4 sm:$0xff]  }
  0xf0   : > { %1724 = vmatprep.mubr.bf16.mxu0 %v3141_v58  ;;  %2013 = vmatprep.mubr.bf16.mxu1 %v3143_v59  ;;  %v3237_v58 = vld [vmem:[%s3710_s12 + $0x2c4] ss:$16 sps:$4 sm:$0xff]   ;;  %v3239_v59 = vld [vmem:[%s3710_s12 + $0x2cc] ss:$16 sps:$4 sm:$0xff]  }
  0xf7   : > { %1725 = vmatmul.mubr.bf16.gmra.mrb[24].mxu0 %v3145_v60  ;;  %2014 = vmatmul.mubr.bf16.gmra.mrb[24].mxu1 %v3146_v61  ;;  %v3241_v60 = vld [vmem:[%s3710_s12 + $0x2c0] ss:$16 sps:$4 sm:$0xff]   ;;  %v3242_v61 = vld [vmem:[%s3710_s12 + $0x2c8] ss:$16 sps:$4 sm:$0xff]  }
  0xf8   : > { %1732 = vmatprep.mubr.bf16.mxu0 %v3147_v62  ;;  %2021 = vmatprep.mubr.bf16.mxu1 %v3149_v63  ;;  %v3243_v62 = vld [vmem:[%s3710_s12 + $0x2e4] ss:$16 sps:$4 sm:$0xff]   ;;  %v3245_v63 = vld [vmem:[%s3710_s12 + $0x2ec] ss:$16 sps:$4 sm:$0xff]  }
  0xff   : > { %1733 = vmatmul.mubr.bf16.gmra.mrb[28].mxu0 %v3151_v0  ;;  %2022 = vmatmul.mubr.bf16.gmra.mrb[28].mxu1 %v3152_v1  ;;  %v3247_v0 = vld [vmem:[%s3710_s12 + $0x2e0] ss:$16 sps:$4 sm:$0xff]   ;;  %v3248_v1 = vld [vmem:[%s3710_s12 + $0x2e8] ss:$16 sps:$4 sm:$0xff]  }
 0x100   : > { %1740 = vmatprep.mubr.bf16.mxu0 %v3153_v2  ;;  %2029 = vmatprep.mubr.bf16.mxu1 %v3155_v3  ;;  %v3249_v2 = vld [vmem:[%s3710_s12 + $0x304] ss:$16 sps:$4 sm:$0xff]   ;;  %v3251_v3 = vld [vmem:[%s3710_s12 + $0x30c] ss:$16 sps:$4 sm:$0xff]  }
 0x107   : > { %1741 = vmatmul.mubr.bf16.gmra.mrb[32].mxu0 %v3157_v4  ;;  %2030 = vmatmul.mubr.bf16.gmra.mrb[32].mxu1 %v3158_v5  ;;  %v3253_v4 = vld [vmem:[%s3710_s12 + $0x300] ss:$16 sps:$4 sm:$0xff]   ;;  %v3254_v5 = vld [vmem:[%s3710_s12 + $0x308] ss:$16 sps:$4 sm:$0xff]  }
 0x108   : > { %1748 = vmatprep.mubr.bf16.mxu0 %v3159_v6  ;;  %2037 = vmatprep.mubr.bf16.mxu1 %v3161_v7  ;;  %v3255_v6 = vld [vmem:[%s3710_s12 + $0x324] ss:$16 sps:$4 sm:$0xff]   ;;  %v3257_v7 = vld [vmem:[%s3710_s12 + $0x32c] ss:$16 sps:$4 sm:$0xff]  }
 0x10f   : > { %1749 = vmatmul.mubr.bf16.gmra.mrb[36].mxu0 %v3163_v8  ;;  %2038 = vmatmul.mubr.bf16.gmra.mrb[36].mxu1 %v3164_v9  ;;  %v3259_v8 = vld [vmem:[%s3710_s12 + $0x320] ss:$16 sps:$4 sm:$0xff]   ;;  %v3260_v9 = vld [vmem:[%s3710_s12 + $0x328] ss:$16 sps:$4 sm:$0xff]  }
 0x110   : > { %1756 = vmatprep.mubr.bf16.mxu0 %v3165_v10  ;;  %2045 = vmatprep.mubr.bf16.mxu1 %v3167_v11  ;;  %v3261_v10 = vld [vmem:[%s3710_s12 + $0x344] ss:$16 sps:$4 sm:$0xff]   ;;  %v3263_v11 = vld [vmem:[%s3710_s12 + $0x34c] ss:$16 sps:$4 sm:$0xff]  }
 0x117   : > { %1757 = vmatmul.mubr.bf16.gmra.mrb[40].mxu0 %v3169_v12  ;;  %2046 = vmatmul.mubr.bf16.gmra.mrb[40].mxu1 %v3170_v13  ;;  %v3265_v12 = vld [vmem:[%s3710_s12 + $0x340] ss:$16 sps:$4 sm:$0xff]   ;;  %v3266_v13 = vld [vmem:[%s3710_s12 + $0x348] ss:$16 sps:$4 sm:$0xff]  }
 0x118   : > { %1764 = vmatprep.mubr.bf16.mxu0 %v3171_v14  ;;  %2053 = vmatprep.mubr.bf16.mxu1 %v3173_v15  ;;  %v3267_v14 = vld [vmem:[%s3710_s12 + $0x364] ss:$16 sps:$4 sm:$0xff]   ;;  %v3269_v15 = vld [vmem:[%s3710_s12 + $0x36c] ss:$16 sps:$4 sm:$0xff]  }
 0x11f   : > { %1765 = vmatmul.mubr.bf16.gmra.mrb[44].mxu0 %v3175_v16  ;;  %2054 = vmatmul.mubr.bf16.gmra.mrb[44].mxu1 %v3176_v17  ;;  %v556_v17 = vld [vmem:[#allocation2] sm:$0xff] }
 0x120   : > { %1772 = vmatprep.mubr.bf16.mxu0 %v3177_v18  ;;  %2061 = vmatprep.mubr.bf16.mxu1 %v3179_v19 }
 0x127   : > { %1773 = vmatmul.mubr.bf16.gmra.mrb[48].mxu0 %v3181_v20  ;;  %2062 = vmatmul.mubr.bf16.gmra.mrb[48].mxu1 %v3182_v21  ;;  %v3271_v20 = vld [vmem:[%s3710_s12 + $0x360] ss:$16 sps:$4 sm:$0xff]  }
 0x128   : > { %1780 = vmatprep.mubr.bf16.mxu0 %v3183_v22  ;;  %2069 = vmatprep.mubr.bf16.mxu1 %v3185_v23 }
 0x12f   : > { %1781 = vmatmul.mubr.bf16.gmra.mrb[52].mxu0 %v3187_v24  ;;  %2070 = vmatmul.mubr.bf16.gmra.mrb[52].mxu1 %v3188_v25  ;;  %v3272_v24 = vld [vmem:[%s3710_s12 + $0x368] ss:$16 sps:$4 sm:$0xff]   ;;  %v3273_v25 = vld [vmem:[%s3710_s12 + $0x384] ss:$16 sps:$4 sm:$0xff]  }
 0x130   : > { %1788 = vmatprep.mubr.bf16.mxu0 %v3189_v26  ;;  %2077 = vmatprep.mubr.bf16.mxu1 %v3191_v27  ;;  %v557_v26 = vld [vmem:[#allocation2 + $0x8] sm:$0xff] }
 0x137   : > { %1789 = vmatmul.mubr.bf16.gmra.mrb[56].mxu0 %v3193_v28  ;;  %2078 = vmatmul.mubr.bf16.gmra.mrb[56].mxu1 %v3194_v29  ;;  %v3275_v29 = vld [vmem:[%s3710_s12 + $0x38c] ss:$16 sps:$4 sm:$0xff]  }
 0x138   : > { %1796 = vmatprep.mubr.bf16.mxu0 %v3195_v30  ;;  %2085 = vmatprep.mubr.bf16.mxu1 %v3197_v31 }
 0x13f   : > { %1797 = vmatmul.mubr.bf16.gmra.mrb[60].mxu0 %v3199_v32  ;;  %2086 = vmatmul.mubr.bf16.gmra.mrb[60].mxu1 %v3200_v33 }
 0x140   : > { %1804 = vmatprep.mubr.bf16.mxu0 %v3201_v34  ;;  %2093 = vmatprep.mubr.bf16.mxu1 %v3203_v35  ;;  %v558_v35 = vld [vmem:[#allocation2 + $0x10] sm:$0xff] }
 0x147   : > { %1805 = vmatmul.mubr.bf16.gmra.mrb[64].mxu0 %v3205_v36  ;;  %2094 = vmatmul.mubr.bf16.gmra.mrb[64].mxu1 %v3206_v37 }
 0x148   : > { %1812 = vmatprep.mubr.bf16.mxu0 %v3207_v38  ;;  %2101 = vmatprep.mubr.bf16.mxu1 %v3209_v39  ;;  %v3277_v38 = vld [vmem:[%s3710_s12 + $0x380] ss:$16 sps:$4 sm:$0xff]  }
 0x14f   : > { %1813 = vmatmul.mubr.bf16.gmra.mrb[68].mxu0 %v3211_v40  ;;  %2102 = vmatmul.mubr.bf16.gmra.mrb[68].mxu1 %v3212_v41 }
 0x150   : > { %1820 = vmatprep.mubr.bf16.mxu0 %v3213_v42  ;;  %2109 = vmatprep.mubr.bf16.mxu1 %v3215_v43  ;;  %v3278_v42 = vld [vmem:[%s3710_s12 + $0x388] ss:$16 sps:$4 sm:$0xff]   ;;  %v3279_v43 = vld [vmem:[%s3710_s12 + $0x3a4] ss:$16 sps:$4 sm:$0xff]  }
 0x157   : > { %1821 = vmatmul.mubr.bf16.gmra.mrb[72].mxu0 %v3217_v44  ;;  %2110 = vmatmul.mubr.bf16.gmra.mrb[72].mxu1 %v3218_v45  ;;  %v559_v44 = vld [vmem:[#allocation2 + $0x18] sm:$0xff] }
 0x158   : > { %1828 = vmatprep.mubr.bf16.mxu0 %v3219_v46  ;;  %2117 = vmatprep.mubr.bf16.mxu1 %v3221_v47  ;;  %v3281_v47 = vld [vmem:[%s3710_s12 + $0x3ac] ss:$16 sps:$4 sm:$0xff]  }
 0x15f   : > { %1829 = vmatmul.mubr.bf16.gmra.mrb[76].mxu0 %v3223_v48  ;;  %2118 = vmatmul.mubr.bf16.gmra.mrb[76].mxu1 %v3224_v49 }
 0x160   : > { %1836 = vmatprep.mubr.bf16.mxu0 %v3225_v50  ;;  %2125 = vmatprep.mubr.bf16.mxu1 %v3227_v51 }
 0x167   : > { %1837 = vmatmul.mubr.bf16.gmra.mrb[80].mxu0 %v3229_v52  ;;  %2126 = vmatmul.mubr.bf16.gmra.mrb[80].mxu1 %v3230_v53  ;;  %v560_v53 = vld [vmem:[#allocation2 + $0x20] sm:$0xff] }
 0x168   : > { %1844 = vmatprep.mubr.bf16.mxu0 %v3231_v54  ;;  %2133 = vmatprep.mubr.bf16.mxu1 %v3233_v55 }
 0x16f   : > { %1845 = vmatmul.mubr.bf16.gmra.mrb[84].mxu0 %v3235_v56  ;;  %2134 = vmatmul.mubr.bf16.gmra.mrb[84].mxu1 %v3236_v57  ;;  %v3283_v56 = vld [vmem:[%s3710_s12 + $0x3a0] ss:$16 sps:$4 sm:$0xff]  }
 0x170   : > { %1852 = vmatprep.mubr.bf16.mxu0 %v3237_v58  ;;  %2141 = vmatprep.mubr.bf16.mxu1 %v3239_v59 }
 0x177   : > { %1853 = vmatmul.mubr.bf16.gmra.mrb[88].mxu0 %v3241_v60  ;;  %2142 = vmatmul.mubr.bf16.gmra.mrb[88].mxu1 %v3242_v61  ;;  %v3284_v60 = vld [vmem:[%s3710_s12 + $0x3a8] ss:$16 sps:$4 sm:$0xff]   ;;  %v3285_v61 = vld [vmem:[%s3710_s12 + $0x3c4] ss:$16 sps:$4 sm:$0xff]  }
 0x178   : > { %1860 = vmatprep.mubr.bf16.mxu0 %v3243_v62  ;;  %2149 = vmatprep.mubr.bf16.mxu1 %v3245_v63  ;;  %v561_v62 = vld [vmem:[#allocation2 + $0x28] sm:$0xff] }
 0x17f   : > { %1861 = vmatmul.mubr.bf16.gmra.mrb[92].mxu0 %v3247_v0  ;;  %2150 = vmatmul.mubr.bf16.gmra.mrb[92].mxu1 %v3248_v1  ;;  %v3287_v1 = vld [vmem:[%s3710_s12 + $0x3cc] ss:$16 sps:$4 sm:$0xff]  }
 0x180   : > { %1868 = vmatprep.mubr.bf16.mxu0 %v3249_v2  ;;  %2157 = vmatprep.mubr.bf16.mxu1 %v3251_v3 }
 0x187   : > { %1869 = vmatmul.mubr.bf16.gmra.mrb[96].mxu0 %v3253_v4  ;;  %2158 = vmatmul.mubr.bf16.gmra.mrb[96].mxu1 %v3254_v5 }
 0x188   : > { %1876 = vmatprep.mubr.bf16.mxu0 %v3255_v6  ;;  %2165 = vmatprep.mubr.bf16.mxu1 %v3257_v7  ;;  %v562_v7 = vld [vmem:[#allocation2 + $0x30] sm:$0xff] }
 0x18f   : > { %1877 = vmatmul.mubr.bf16.gmra.mrb[100].mxu0 %v3259_v8  ;;  %2166 = vmatmul.mubr.bf16.gmra.mrb[100].mxu1 %v3260_v9 }
 0x190   : > { %1884 = vmatprep.mubr.bf16.mxu0 %v3261_v10  ;;  %2173 = vmatprep.mubr.bf16.mxu1 %v3263_v11  ;;  %v3289_v10 = vld [vmem:[%s3710_s12 + $0x3c0] ss:$16 sps:$4 sm:$0xff]  }
 0x197   : > { %1885 = vmatmul.mubr.bf16.gmra.mrb[104].mxu0 %v3265_v12  ;;  %2174 = vmatmul.mubr.bf16.gmra.mrb[104].mxu1 %v3266_v13 }
 0x198   : > { %1892 = vmatprep.mubr.bf16.mxu0 %v3267_v14  ;;  %2181 = vmatprep.mubr.bf16.mxu1 %v3269_v15  ;;  %v3290_v14 = vld [vmem:[%s3710_s12 + $0x3c8] ss:$16 sps:$4 sm:$0xff]   ;;  %v3291_v15 = vld [vmem:[%s3710_s12 + $0x3e4] ss:$16 sps:$4 sm:$0xff]  }
 0x19a   : > { %v1678_v16 = vpop.f32.mrb[0].mxu0  ;;  %v1967_v18 = vpop.f32.mrb[0].mxu1 }
 0x19b   : > { %v1680_v19 = vpop.f32.mrb[1].mxu0  ;;  %v1968_v21 = vadd.f32 %v1967_v18, %v1678_v16  ;;  %v1969_v22 = vpop.f32.mrb[1].mxu1  ;;  %v563_v16 = vld [vmem:[#allocation2 + $0x38] sm:$0xff] }
 0x19c   : > { %v1681_v23 = vpop.f32.mrb[2].mxu0  ;;  %v1970_v27 = vpop.f32.mrb[2].mxu1  ;;  %v3293_v19 = vld [vmem:[%s3710_s12 + $0x3ec] ss:$16 sps:$4 sm:$0xff]  }
 0x19d   : > { %v1683_v28 = vpop.f32.mrb[3].mxu0  ;;  %v2222_v30 = vadd.f32 %v1968_v21, %v556_v17  ;;  %v1971_v31 = vadd.f32 %v1970_v27, %v1681_v23  ;;  %v1972_v32 = vpop.f32.mrb[3].mxu1 }
 0x19e   : > { %v3295_v28 = vld [vmem:[%s3710_s12 + $0x3e0] ss:$16 sps:$4 sm:$0xff]   ;;  %v3296_v32 = vld [vmem:[%s3710_s12 + $0x3e8] ss:$16 sps:$4 sm:$0xff]  }
 0x19f   : > { %1893 = vmatmul.mubr.bf16.gmra.mrb[108].mxu0 %v3271_v20  ;;  %2286 = vst [vmem:[#allocation2] sm:$0xff] %v2222_v30  ;;  %v2223_v33 = vadd.f32 %v1971_v31, %v557_v26  ;;  %2182 = vmatmul.mubr.bf16.gmra.mrb[108].mxu1 %v3272_v24 }
 0x1a0   : > { %1900 = vmatprep.mubr.bf16.mxu0 %v3273_v25  ;;  %2189 = vmatprep.mubr.bf16.mxu1 %v3275_v29  ;;  %v564_v25 = vld [vmem:[#allocation2 + $0x40] sm:$0xff] }
 0x1a1   : > { %2287 = vst [vmem:[#allocation2 + $0x8] sm:$0xff] %v2223_v33  ;;  %v565_v33 = vld [vmem:[#allocation2 + $0x48] sm:$0xff] }
 0x1a2   : > { %v1686_v34 = vpop.f32.mrb[4].mxu0  ;;  %v1975_v36 = vpop.f32.mrb[4].mxu1 }
 0x1a3   : > { %v1688_v37 = vpop.f32.mrb[5].mxu0  ;;  %v1976_v39 = vadd.f32 %v1975_v36, %v1686_v34  ;;  %v1977_v40 = vpop.f32.mrb[5].mxu1 }
 0x1a4   : > { %v1689_v41 = vpop.f32.mrb[6].mxu0  ;;  %v1978_v45 = vpop.f32.mrb[6].mxu1 }
 0x1a5   : > { %v1691_v46 = vpop.f32.mrb[7].mxu0  ;;  %v2224_v48 = vadd.f32 %v1976_v39, %v558_v35  ;;  %v1979_v49 = vadd.f32 %v1978_v45, %v1689_v41  ;;  %v1980_v50 = vpop.f32.mrb[7].mxu1  ;;  %v566_v41 = vld [vmem:[#allocation2 + $0x50] sm:$0xff] }
 0x1a7   : > { %1901 = vmatmul.mubr.bf16.gmra.mrb[112].mxu0 %v3277_v38  ;;  %2288 = vst [vmem:[#allocation2 + $0x10] sm:$0xff] %v2224_v48  ;;  %v2225_v51 = vadd.f32 %v1979_v49, %v559_v44  ;;  %2190 = vmatmul.mubr.bf16.gmra.mrb[112].mxu1 %v3278_v42 }
 0x1a8   : > { %1908 = vmatprep.mubr.bf16.mxu0 %v3279_v43  ;;  %2197 = vmatprep.mubr.bf16.mxu1 %v3281_v47  ;;  %v567_v47 = vld [vmem:[#allocation2 + $0x58] sm:$0xff] }
 0x1a9   : > { %2289 = vst [vmem:[#allocation2 + $0x18] sm:$0xff] %v2225_v51 }
 0x1aa   : > { %v1694_v52 = vpop.f32.mrb[8].mxu0  ;;  %v1983_v54 = vpop.f32.mrb[8].mxu1 }
 0x1ab   : > { %v1696_v55 = vpop.f32.mrb[9].mxu0  ;;  %v1984_v57 = vadd.f32 %v1983_v54, %v1694_v52  ;;  %v1985_v58 = vpop.f32.mrb[9].mxu1 }
 0x1ac   : > { %v1697_v59 = vpop.f32.mrb[10].mxu0  ;;  %v1986_v63 = vpop.f32.mrb[10].mxu1  ;;  %v568_v55 = vld [vmem:[#allocation2 + $0x60] sm:$0xff] }
 0x1ad   : > { %v1699_v0 = vpop.f32.mrb[11].mxu0  ;;  %v2226_v2 = vadd.f32 %v1984_v57, %v560_v53  ;;  %v1987_v3 = vadd.f32 %v1986_v63, %v1697_v59  ;;  %v1988_v4 = vpop.f32.mrb[11].mxu1 }
 0x1af   : > { %1909 = vmatmul.mubr.bf16.gmra.mrb[116].mxu0 %v3283_v56  ;;  %2290 = vst [vmem:[#allocation2 + $0x20] sm:$0xff] %v2226_v2  ;;  %v2227_v5 = vadd.f32 %v1987_v3, %v561_v62  ;;  %2198 = vmatmul.mubr.bf16.gmra.mrb[116].mxu1 %v3284_v60 }
 0x1b0   : > { %1916 = vmatprep.mubr.bf16.mxu0 %v3285_v61  ;;  %2205 = vmatprep.mubr.bf16.mxu1 %v3287_v1  ;;  %v569_v61 = vld [vmem:[#allocation2 + $0x68] sm:$0xff] }
 0x1b1   : > { %2291 = vst [vmem:[#allocation2 + $0x28] sm:$0xff] %v2227_v5  ;;  %v570_v5 = vld [vmem:[#allocation2 + $0x70] sm:$0xff] }
 0x1b2   : > { %v1702_v6 = vpop.f32.mrb[12].mxu0  ;;  %v1991_v8 = vpop.f32.mrb[12].mxu1 }
 0x1b3   : > { %v1704_v9 = vpop.f32.mrb[13].mxu0  ;;  %v1992_v11 = vadd.f32 %v1991_v8, %v1702_v6  ;;  %v1993_v12 = vpop.f32.mrb[13].mxu1 }
 0x1b4   : > { %v1705_v13 = vpop.f32.mrb[14].mxu0  ;;  %v1994_v17 = vpop.f32.mrb[14].mxu1 }
 0x1b5   : > { %v1707_v18 = vpop.f32.mrb[15].mxu0  ;;  %v2228_v20 = vadd.f32 %v1992_v11, %v562_v7  ;;  %v1995_v21 = vadd.f32 %v1994_v17, %v1705_v13  ;;  %v1996_v22 = vpop.f32.mrb[15].mxu1  ;;  %v571_v11 = vld [vmem:[#allocation2 + $0x78] sm:$0xff] }
 0x1b7   : > { %1917 = vmatmul.mubr.bf16.gmra.mrb[120].mxu0 %v3289_v10  ;;  %2292 = vst [vmem:[#allocation2 + $0x30] sm:$0xff] %v2228_v20  ;;  %v2229_v23 = vadd.f32 %v1995_v21, %v563_v16  ;;  %2206 = vmatmul.mubr.bf16.gmra.mrb[120].mxu1 %v3290_v14 }
 0x1b8   : > { %1924 = vmatprep.mubr.bf16.mxu0 %v3291_v15  ;;  %2213 = vmatprep.mubr.bf16.mxu1 %v3293_v19  ;;  %v572_v19 = vld [vmem:[#allocation2 + $0x80] sm:$0xff] }
 0x1b9   : > { %2293 = vst [vmem:[#allocation2 + $0x38] sm:$0xff] %v2229_v23 }
 0x1ba   : > { %v1710_v24 = vpop.f32.mrb[16].mxu0  ;;  %v1999_v26 = vpop.f32.mrb[16].mxu1 }
 0x1bb   : > { %v1712_v27 = vpop.f32.mrb[17].mxu0  ;;  %v2000_v29 = vadd.f32 %v1999_v26, %v1710_v24  ;;  %v2001_v30 = vpop.f32.mrb[17].mxu1 }
 0x1bc   : > { %v1713_v31 = vpop.f32.mrb[18].mxu0  ;;  %v2002_v34 = vpop.f32.mrb[18].mxu1 }
 0x1bd   : > { %v1715_v35 = vpop.f32.mrb[19].mxu0  ;;  %v2230_v36 = vadd.f32 %v2000_v29, %v564_v25  ;;  %v2003_v37 = vadd.f32 %v2002_v34, %v1713_v31  ;;  %v2004_v38 = vpop.f32.mrb[19].mxu1  ;;  %v573_v25 = vld [vmem:[#allocation2 + $0x88] sm:$0xff] }
 0x1bf   : > { %1925 = vmatmul.mubr.bf16.gmra.mrb[124].mxu0 %v3295_v28  ;;  %2294 = vst [vmem:[#allocation2 + $0x40] sm:$0xff] %v2230_v36  ;;  %v2231_v39 = vadd.f32 %v2003_v37, %v565_v33  ;;  %2214 = vmatmul.mubr.bf16.gmra.mrb[124].mxu1 %v3296_v32  ;;  %v574_v33 = vld [vmem:[#allocation2 + $0x90] sm:$0xff] }
 0x1c1   : > { %2295 = vst [vmem:[#allocation2 + $0x48] sm:$0xff] %v2231_v39  ;;  %v575_v39 = vld [vmem:[#allocation2 + $0x98] sm:$0xff] }
 0x1c2   : > { %v1718_v40 = vpop.f32.mrb[20].mxu0  ;;  %v2007_v42 = vpop.f32.mrb[20].mxu1 }
 0x1c3   : > { %v1720_v43 = vpop.f32.mrb[21].mxu0  ;;  %v2008_v44 = vadd.f32 %v2007_v42, %v1718_v40  ;;  %v2009_v45 = vpop.f32.mrb[21].mxu1 }
 0x1c4   : > { %v1721_v46 = vpop.f32.mrb[22].mxu0  ;;  %v2010_v48 = vpop.f32.mrb[22].mxu1 }
 0x1c5   : > { %v1723_v49 = vpop.f32.mrb[23].mxu0  ;;  %v2232_v50 = vadd.f32 %v2008_v44, %v566_v41  ;;  %v2011_v51 = vadd.f32 %v2010_v48, %v1721_v46  ;;  %v2012_v52 = vpop.f32.mrb[23].mxu1 }
 0x1c7   : > { %2296 = vst [vmem:[#allocation2 + $0x50] sm:$0xff] %v2232_v50  ;;  %v2233_v53 = vadd.f32 %v2011_v51, %v567_v47  ;;  %v576_v47 = vld [vmem:[#allocation2 + $0xa0] sm:$0xff] }
 0x1c9   : > { %2297 = vst [vmem:[#allocation2 + $0x58] sm:$0xff] %v2233_v53  ;;  %v577_v53 = vld [vmem:[#allocation2 + $0xa8] sm:$0xff] }
 0x1ca   : > { %v1726_v54 = vpop.f32.mrb[24].mxu0  ;;  %v2015_v56 = vpop.f32.mrb[24].mxu1 }
 0x1cb   : > { %v1728_v57 = vpop.f32.mrb[25].mxu0  ;;  %v2016_v58 = vadd.f32 %v2015_v56, %v1726_v54  ;;  %v2017_v59 = vpop.f32.mrb[25].mxu1 }
 0x1cc   : > { %v1729_v60 = vpop.f32.mrb[26].mxu0  ;;  %v2018_v62 = vpop.f32.mrb[26].mxu1 }
 0x1cd   : > { %v1731_v63 = vpop.f32.mrb[27].mxu0  ;;  %v2234_v0 = vadd.f32 %v2016_v58, %v568_v55  ;;  %v2019_v1 = vadd.f32 %v2018_v62, %v1729_v60  ;;  %v2020_v2 = vpop.f32.mrb[27].mxu1 }
 0x1cf   : > { %2298 = vst [vmem:[#allocation2 + $0x60] sm:$0xff] %v2234_v0  ;;  %v2235_v3 = vadd.f32 %v2019_v1, %v569_v61  ;;  %v578_v61 = vld [vmem:[#allocation2 + $0xb0] sm:$0xff] }
 0x1d1   : > { %2299 = vst [vmem:[#allocation2 + $0x68] sm:$0xff] %v2235_v3  ;;  %v579_v3 = vld [vmem:[#allocation2 + $0xb8] sm:$0xff] }
 0x1d2   : > { %v1734_v4 = vpop.f32.mrb[28].mxu0  ;;  %v2023_v6 = vpop.f32.mrb[28].mxu1 }
 0x1d3   : > { %v1736_v7 = vpop.f32.mrb[29].mxu0  ;;  %v2024_v8 = vadd.f32 %v2023_v6, %v1734_v4  ;;  %v2025_v9 = vpop.f32.mrb[29].mxu1 }
 0x1d4   : > { %v1737_v10 = vpop.f32.mrb[30].mxu0  ;;  %v2026_v12 = vpop.f32.mrb[30].mxu1 }
 0x1d5   : > { %v1739_v13 = vpop.f32.mrb[31].mxu0  ;;  %v2236_v14 = vadd.f32 %v2024_v8, %v570_v5  ;;  %v2027_v15 = vadd.f32 %v2026_v12, %v1737_v10  ;;  %v2028_v16 = vpop.f32.mrb[31].mxu1 }
 0x1d7   : > { %2300 = vst [vmem:[#allocation2 + $0x70] sm:$0xff] %v2236_v14  ;;  %v2237_v17 = vadd.f32 %v2027_v15, %v571_v11  ;;  %v580_v11 = vld [vmem:[#allocation2 + $0xc0] sm:$0xff] }
 0x1d9   : > { %2301 = vst [vmem:[#allocation2 + $0x78] sm:$0xff] %v2237_v17  ;;  %v581_v17 = vld [vmem:[#allocation2 + $0xc8] sm:$0xff] }
 0x1da   : > { %v1742_v18 = vpop.f32.mrb[32].mxu0  ;;  %v2031_v20 = vpop.f32.mrb[32].mxu1 }
 0x1db   : > { %v1744_v21 = vpop.f32.mrb[33].mxu0  ;;  %v2032_v22 = vadd.f32 %v2031_v20, %v1742_v18  ;;  %v2033_v23 = vpop.f32.mrb[33].mxu1 }
 0x1dc   : > { %v1745_v24 = vpop.f32.mrb[34].mxu0  ;;  %v2034_v26 = vpop.f32.mrb[34].mxu1 }
 0x1dd   : > { %v1747_v27 = vpop.f32.mrb[35].mxu0  ;;  %v2238_v28 = vadd.f32 %v2032_v22, %v572_v19  ;;  %v2035_v29 = vadd.f32 %v2034_v26, %v1745_v24  ;;  %v2036_v30 = vpop.f32.mrb[35].mxu1 }
 0x1df   : > { %2302 = vst [vmem:[#allocation2 + $0x80] sm:$0xff] %v2238_v28  ;;  %v2239_v31 = vadd.f32 %v2035_v29, %v573_v25  ;;  %v582_v25 = vld [vmem:[#allocation2 + $0xd0] sm:$0xff] }
 0x1e1   : > { %2303 = vst [vmem:[#allocation2 + $0x88] sm:$0xff] %v2239_v31  ;;  %v583_v31 = vld [vmem:[#allocation2 + $0xd8] sm:$0xff] }
 0x1e2   : > { %v1750_v32 = vpop.f32.mrb[36].mxu0  ;;  %v2039_v34 = vpop.f32.mrb[36].mxu1 }
 0x1e3   : > { %v1752_v35 = vpop.f32.mrb[37].mxu0  ;;  %v2040_v36 = vadd.f32 %v2039_v34, %v1750_v32  ;;  %v2041_v37 = vpop.f32.mrb[37].mxu1 }
 0x1e4   : > { %v1753_v38 = vpop.f32.mrb[38].mxu0  ;;  %v2042_v40 = vpop.f32.mrb[38].mxu1 }
 0x1e5   : > { %v1755_v41 = vpop.f32.mrb[39].mxu0  ;;  %v2240_v42 = vadd.f32 %v2040_v36, %v574_v33  ;;  %v2043_v43 = vadd.f32 %v2042_v40, %v1753_v38  ;;  %v2044_v44 = vpop.f32.mrb[39].mxu1 }
 0x1e7   : > { %2304 = vst [vmem:[#allocation2 + $0x90] sm:$0xff] %v2240_v42  ;;  %v2241_v45 = vadd.f32 %v2043_v43, %v575_v39  ;;  %v584_v39 = vld [vmem:[#allocation2 + $0xe0] sm:$0xff] }
 0x1e9   : > { %2305 = vst [vmem:[#allocation2 + $0x98] sm:$0xff] %v2241_v45  ;;  %v585_v45 = vld [vmem:[#allocation2 + $0xe8] sm:$0xff] }
 0x1ea   : > { %v1758_v46 = vpop.f32.mrb[40].mxu0  ;;  %v2047_v48 = vpop.f32.mrb[40].mxu1 }
 0x1eb   : > { %v1760_v49 = vpop.f32.mrb[41].mxu0  ;;  %v2048_v50 = vadd.f32 %v2047_v48, %v1758_v46  ;;  %v2049_v51 = vpop.f32.mrb[41].mxu1 }
 0x1ec   : > { %v1761_v52 = vpop.f32.mrb[42].mxu0  ;;  %v2050_v54 = vpop.f32.mrb[42].mxu1 }
 0x1ed   : > { %v1763_v55 = vpop.f32.mrb[43].mxu0  ;;  %v2242_v56 = vadd.f32 %v2048_v50, %v576_v47  ;;  %v2051_v57 = vadd.f32 %v2050_v54, %v1761_v52  ;;  %v2052_v58 = vpop.f32.mrb[43].mxu1 }
 0x1ef   : > { %2306 = vst [vmem:[#allocation2 + $0xa0] sm:$0xff] %v2242_v56  ;;  %v2243_v59 = vadd.f32 %v2051_v57, %v577_v53  ;;  %v586_v53 = vld [vmem:[#allocation2 + $0xf0] sm:$0xff] }
 0x1f1   : > { %2307 = vst [vmem:[#allocation2 + $0xa8] sm:$0xff] %v2243_v59  ;;  %v587_v59 = vld [vmem:[#allocation2 + $0xf8] sm:$0xff] }
 0x1f2   : > { %v1766_v60 = vpop.f32.mrb[44].mxu0  ;;  %v2055_v62 = vpop.f32.mrb[44].mxu1 }
 0x1f3   : > { %v1768_v63 = vpop.f32.mrb[45].mxu0  ;;  %v2056_v0 = vadd.f32 %v2055_v62, %v1766_v60  ;;  %v2057_v1 = vpop.f32.mrb[45].mxu1 }
 0x1f4   : > { %v1769_v2 = vpop.f32.mrb[46].mxu0  ;;  %v2058_v4 = vpop.f32.mrb[46].mxu1 }
 0x1f5   : > { %v1771_v5 = vpop.f32.mrb[47].mxu0  ;;  %v2244_v6 = vadd.f32 %v2056_v0, %v578_v61  ;;  %v2059_v7 = vadd.f32 %v2058_v4, %v1769_v2  ;;  %v2060_v8 = vpop.f32.mrb[47].mxu1 }
 0x1f7   : > { %2308 = vst [vmem:[#allocation2 + $0xb0] sm:$0xff] %v2244_v6  ;;  %v2245_v9 = vadd.f32 %v2059_v7, %v579_v3  ;;  %v588_v3 = vld [vmem:[#allocation2 + $0x100] sm:$0xff] }
 0x1f9   : > { %2309 = vst [vmem:[#allocation2 + $0xb8] sm:$0xff] %v2245_v9  ;;  %v589_v9 = vld [vmem:[#allocation2 + $0x108] sm:$0xff] }
 0x1fa   : > { %v1774_v10 = vpop.f32.mrb[48].mxu0  ;;  %v2063_v12 = vpop.f32.mrb[48].mxu1 }
 0x1fb   : > { %v1776_v13 = vpop.f32.mrb[49].mxu0  ;;  %v2064_v14 = vadd.f32 %v2063_v12, %v1774_v10  ;;  %v2065_v15 = vpop.f32.mrb[49].mxu1 }
 0x1fc   : > { %v1777_v16 = vpop.f32.mrb[50].mxu0  ;;  %v2066_v18 = vpop.f32.mrb[50].mxu1 }
 0x1fd   : > { %v1779_v19 = vpop.f32.mrb[51].mxu0  ;;  %v2246_v20 = vadd.f32 %v2064_v14, %v580_v11  ;;  %v2067_v21 = vadd.f32 %v2066_v18, %v1777_v16  ;;  %v2068_v22 = vpop.f32.mrb[51].mxu1 }
 0x1ff   : > { %2310 = vst [vmem:[#allocation2 + $0xc0] sm:$0xff] %v2246_v20  ;;  %v2247_v23 = vadd.f32 %v2067_v21, %v581_v17  ;;  %v590_v17 = vld [vmem:[#allocation2 + $0x110] sm:$0xff] }
 0x201   : > { %2311 = vst [vmem:[#allocation2 + $0xc8] sm:$0xff] %v2247_v23  ;;  %v591_v23 = vld [vmem:[#allocation2 + $0x118] sm:$0xff] }
 0x202   : > { %v1782_v24 = vpop.f32.mrb[52].mxu0  ;;  %v2071_v26 = vpop.f32.mrb[52].mxu1 }
 0x203   : > { %v1784_v27 = vpop.f32.mrb[53].mxu0  ;;  %v2072_v28 = vadd.f32 %v2071_v26, %v1782_v24  ;;  %v2073_v29 = vpop.f32.mrb[53].mxu1 }
 0x204   : > { %v1785_v30 = vpop.f32.mrb[54].mxu0  ;;  %v2074_v32 = vpop.f32.mrb[54].mxu1 }
 0x205   : > { %v1787_v33 = vpop.f32.mrb[55].mxu0  ;;  %v2248_v34 = vadd.f32 %v2072_v28, %v582_v25  ;;  %v2075_v35 = vadd.f32 %v2074_v32, %v1785_v30  ;;  %v2076_v36 = vpop.f32.mrb[55].mxu1 }
 0x207   : > { %2312 = vst [vmem:[#allocation2 + $0xd0] sm:$0xff] %v2248_v34  ;;  %v2249_v37 = vadd.f32 %v2075_v35, %v583_v31  ;;  %v592_v31 = vld [vmem:[#allocation2 + $0x120] sm:$0xff] }
 0x209   : > { %2313 = vst [vmem:[#allocation2 + $0xd8] sm:$0xff] %v2249_v37  ;;  %v593_v37 = vld [vmem:[#allocation2 + $0x128] sm:$0xff] }
 0x20a   : > { %v1790_v38 = vpop.f32.mrb[56].mxu0  ;;  %v2079_v40 = vpop.f32.mrb[56].mxu1 }
 0x20b   : > { %v1792_v41 = vpop.f32.mrb[57].mxu0  ;;  %v2080_v42 = vadd.f32 %v2079_v40, %v1790_v38  ;;  %v2081_v43 = vpop.f32.mrb[57].mxu1 }
 0x20c   : > { %v1793_v44 = vpop.f32.mrb[58].mxu0  ;;  %v2082_v46 = vpop.f32.mrb[58].mxu1 }
 0x20d   : > { %v1795_v47 = vpop.f32.mrb[59].mxu0  ;;  %v2250_v48 = vadd.f32 %v2080_v42, %v584_v39  ;;  %v2083_v49 = vadd.f32 %v2082_v46, %v1793_v44  ;;  %v2084_v50 = vpop.f32.mrb[59].mxu1 }
 0x20f   : > { %2314 = vst [vmem:[#allocation2 + $0xe0] sm:$0xff] %v2250_v48  ;;  %v2251_v51 = vadd.f32 %v2083_v49, %v585_v45  ;;  %v594_v45 = vld [vmem:[#allocation2 + $0x130] sm:$0xff] }
 0x211   : > { %2315 = vst [vmem:[#allocation2 + $0xe8] sm:$0xff] %v2251_v51  ;;  %v595_v51 = vld [vmem:[#allocation2 + $0x138] sm:$0xff] }
 0x212   : > { %v1798_v52 = vpop.f32.mrb[60].mxu0  ;;  %v2087_v54 = vpop.f32.mrb[60].mxu1 }
 0x213   : > { %v1800_v55 = vpop.f32.mrb[61].mxu0  ;;  %v2088_v56 = vadd.f32 %v2087_v54, %v1798_v52  ;;  %v2089_v57 = vpop.f32.mrb[61].mxu1 }
 0x214   : > { %v1801_v58 = vpop.f32.mrb[62].mxu0  ;;  %v2090_v60 = vpop.f32.mrb[62].mxu1 }
 0x215   : > { %v1803_v61 = vpop.f32.mrb[63].mxu0  ;;  %v2252_v62 = vadd.f32 %v2088_v56, %v586_v53  ;;  %v2091_v63 = vadd.f32 %v2090_v60, %v1801_v58  ;;  %v2092_v0 = vpop.f32.mrb[63].mxu1 }
 0x217   : > { %2316 = vst [vmem:[#allocation2 + $0xf0] sm:$0xff] %v2252_v62  ;;  %v2253_v1 = vadd.f32 %v2091_v63, %v587_v59  ;;  %v596_v59 = vld [vmem:[#allocation2 + $0x140] sm:$0xff] }
 0x219   : > { %2317 = vst [vmem:[#allocation2 + $0xf8] sm:$0xff] %v2253_v1  ;;  %v597_v1 = vld [vmem:[#allocation2 + $0x148] sm:$0xff] }
 0x21a   : > { %v1806_v2 = vpop.f32.mrb[64].mxu0  ;;  %v2095_v4 = vpop.f32.mrb[64].mxu1 }
 0x21b   : > { %v1808_v5 = vpop.f32.mrb[65].mxu0  ;;  %v2096_v6 = vadd.f32 %v2095_v4, %v1806_v2  ;;  %v2097_v7 = vpop.f32.mrb[65].mxu1 }
 0x21c   : > { %v1809_v8 = vpop.f32.mrb[66].mxu0  ;;  %v2098_v10 = vpop.f32.mrb[66].mxu1 }
 0x21d   : > { %v1811_v11 = vpop.f32.mrb[67].mxu0  ;;  %v2254_v12 = vadd.f32 %v2096_v6, %v588_v3  ;;  %v2099_v13 = vadd.f32 %v2098_v10, %v1809_v8  ;;  %v2100_v14 = vpop.f32.mrb[67].mxu1 }
 0x21f   : > { %2318 = vst [vmem:[#allocation2 + $0x100] sm:$0xff] %v2254_v12  ;;  %v2255_v15 = vadd.f32 %v2099_v13, %v589_v9  ;;  %v598_v9 = vld [vmem:[#allocation2 + $0x150] sm:$0xff] }
 0x221   : > { %2319 = vst [vmem:[#allocation2 + $0x108] sm:$0xff] %v2255_v15  ;;  %v599_v15 = vld [vmem:[#allocation2 + $0x158] sm:$0xff] }
 0x222   : > { %v1814_v16 = vpop.f32.mrb[68].mxu0  ;;  %v2103_v18 = vpop.f32.mrb[68].mxu1 }
 0x223   : > { %v1816_v19 = vpop.f32.mrb[69].mxu0  ;;  %v2104_v20 = vadd.f32 %v2103_v18, %v1814_v16  ;;  %v2105_v21 = vpop.f32.mrb[69].mxu1 }
 0x224   : > { %v1817_v22 = vpop.f32.mrb[70].mxu0  ;;  %v2106_v24 = vpop.f32.mrb[70].mxu1 }
 0x225   : > { %v1819_v25 = vpop.f32.mrb[71].mxu0  ;;  %v2256_v26 = vadd.f32 %v2104_v20, %v590_v17  ;;  %v2107_v27 = vadd.f32 %v2106_v24, %v1817_v22  ;;  %v2108_v28 = vpop.f32.mrb[71].mxu1 }
 0x227   : > { %2320 = vst [vmem:[#allocation2 + $0x110] sm:$0xff] %v2256_v26  ;;  %v2257_v29 = vadd.f32 %v2107_v27, %v591_v23  ;;  %v600_v23 = vld [vmem:[#allocation2 + $0x160] sm:$0xff] }
 0x229   : > { %2321 = vst [vmem:[#allocation2 + $0x118] sm:$0xff] %v2257_v29  ;;  %v601_v29 = vld [vmem:[#allocation2 + $0x168] sm:$0xff] }
 0x22a   : > { %v1822_v30 = vpop.f32.mrb[72].mxu0  ;;  %v2111_v32 = vpop.f32.mrb[72].mxu1 }
 0x22b   : > { %v1824_v33 = vpop.f32.mrb[73].mxu0  ;;  %v2112_v34 = vadd.f32 %v2111_v32, %v1822_v30  ;;  %v2113_v35 = vpop.f32.mrb[73].mxu1 }
 0x22c   : > { %v1825_v36 = vpop.f32.mrb[74].mxu0  ;;  %v2114_v38 = vpop.f32.mrb[74].mxu1 }
 0x22d   : > { %v1827_v39 = vpop.f32.mrb[75].mxu0  ;;  %v2258_v40 = vadd.f32 %v2112_v34, %v592_v31  ;;  %v2115_v41 = vadd.f32 %v2114_v38, %v1825_v36  ;;  %v2116_v42 = vpop.f32.mrb[75].mxu1 }
 0x22f   : > { %2322 = vst [vmem:[#allocation2 + $0x120] sm:$0xff] %v2258_v40  ;;  %v2259_v43 = vadd.f32 %v2115_v41, %v593_v37  ;;  %v602_v37 = vld [vmem:[#allocation2 + $0x170] sm:$0xff] }
 0x231   : > { %2323 = vst [vmem:[#allocation2 + $0x128] sm:$0xff] %v2259_v43  ;;  %v603_v43 = vld [vmem:[#allocation2 + $0x178] sm:$0xff] }
 0x232   : > { %v1830_v44 = vpop.f32.mrb[76].mxu0  ;;  %v2119_v46 = vpop.f32.mrb[76].mxu1 }
 0x233   : > { %v1832_v47 = vpop.f32.mrb[77].mxu0  ;;  %v2120_v48 = vadd.f32 %v2119_v46, %v1830_v44  ;;  %v2121_v49 = vpop.f32.mrb[77].mxu1 }
 0x234   : > { %v1833_v50 = vpop.f32.mrb[78].mxu0  ;;  %v2122_v52 = vpop.f32.mrb[78].mxu1 }
 0x235   : > { %v1835_v53 = vpop.f32.mrb[79].mxu0  ;;  %v2260_v54 = vadd.f32 %v2120_v48, %v594_v45  ;;  %v2123_v55 = vadd.f32 %v2122_v52, %v1833_v50  ;;  %v2124_v56 = vpop.f32.mrb[79].mxu1 }
 0x237   : > { %2324 = vst [vmem:[#allocation2 + $0x130] sm:$0xff] %v2260_v54  ;;  %v2261_v57 = vadd.f32 %v2123_v55, %v595_v51  ;;  %v604_v51 = vld [vmem:[#allocation2 + $0x180] sm:$0xff] }
 0x239   : > { %2325 = vst [vmem:[#allocation2 + $0x138] sm:$0xff] %v2261_v57  ;;  %v605_v57 = vld [vmem:[#allocation2 + $0x188] sm:$0xff] }
 0x23a   : > { %v1838_v58 = vpop.f32.mrb[80].mxu0  ;;  %v2127_v60 = vpop.f32.mrb[80].mxu1 }
 0x23b   : > { %v1840_v61 = vpop.f32.mrb[81].mxu0  ;;  %v2128_v62 = vadd.f32 %v2127_v60, %v1838_v58  ;;  %v2129_v63 = vpop.f32.mrb[81].mxu1 }
 0x23c   : > { %v1841_v0 = vpop.f32.mrb[82].mxu0  ;;  %v2130_v2 = vpop.f32.mrb[82].mxu1 }
 0x23d   : > { %v1843_v3 = vpop.f32.mrb[83].mxu0  ;;  %v2262_v4 = vadd.f32 %v2128_v62, %v596_v59  ;;  %v2131_v5 = vadd.f32 %v2130_v2, %v1841_v0  ;;  %v2132_v6 = vpop.f32.mrb[83].mxu1 }
 0x23f   : > { %2326 = vst [vmem:[#allocation2 + $0x140] sm:$0xff] %v2262_v4  ;;  %v2263_v7 = vadd.f32 %v2131_v5, %v597_v1  ;;  %v606_v1 = vld [vmem:[#allocation2 + $0x190] sm:$0xff] }
 0x241   : > { %2327 = vst [vmem:[#allocation2 + $0x148] sm:$0xff] %v2263_v7  ;;  %v607_v7 = vld [vmem:[#allocation2 + $0x198] sm:$0xff] }
 0x242   : > { %v1846_v8 = vpop.f32.mrb[84].mxu0  ;;  %v2135_v10 = vpop.f32.mrb[84].mxu1 }
 0x243   : > { %v1848_v11 = vpop.f32.mrb[85].mxu0  ;;  %v2136_v12 = vadd.f32 %v2135_v10, %v1846_v8  ;;  %v2137_v13 = vpop.f32.mrb[85].mxu1 }
 0x244   : > { %v1849_v14 = vpop.f32.mrb[86].mxu0  ;;  %v2138_v16 = vpop.f32.mrb[86].mxu1 }
 0x245   : > { %v1851_v17 = vpop.f32.mrb[87].mxu0  ;;  %v2264_v18 = vadd.f32 %v2136_v12, %v598_v9  ;;  %v2139_v19 = vadd.f32 %v2138_v16, %v1849_v14  ;;  %v2140_v20 = vpop.f32.mrb[87].mxu1 }
 0x247   : > { %2328 = vst [vmem:[#allocation2 + $0x150] sm:$0xff] %v2264_v18  ;;  %v2265_v21 = vadd.f32 %v2139_v19, %v599_v15  ;;  %v608_v15 = vld [vmem:[#allocation2 + $0x1a0] sm:$0xff] }
 0x249   : > { %2329 = vst [vmem:[#allocation2 + $0x158] sm:$0xff] %v2265_v21  ;;  %v609_v21 = vld [vmem:[#allocation2 + $0x1a8] sm:$0xff] }
 0x24a   : > { %v1854_v22 = vpop.f32.mrb[88].mxu0  ;;  %v2143_v24 = vpop.f32.mrb[88].mxu1 }
 0x24b   : > { %v1856_v25 = vpop.f32.mrb[89].mxu0  ;;  %v2144_v26 = vadd.f32 %v2143_v24, %v1854_v22  ;;  %v2145_v27 = vpop.f32.mrb[89].mxu1 }
 0x24c   : > { %v1857_v28 = vpop.f32.mrb[90].mxu0  ;;  %v2146_v30 = vpop.f32.mrb[90].mxu1 }
 0x24d   : > { %v1859_v31 = vpop.f32.mrb[91].mxu0  ;;  %v2266_v32 = vadd.f32 %v2144_v26, %v600_v23  ;;  %v2147_v33 = vadd.f32 %v2146_v30, %v1857_v28  ;;  %v2148_v34 = vpop.f32.mrb[91].mxu1 }
 0x24f   : > { %2330 = vst [vmem:[#allocation2 + $0x160] sm:$0xff] %v2266_v32  ;;  %v2267_v35 = vadd.f32 %v2147_v33, %v601_v29  ;;  %v610_v29 = vld [vmem:[#allocation2 + $0x1b0] sm:$0xff] }
 0x251   : > { %2331 = vst [vmem:[#allocation2 + $0x168] sm:$0xff] %v2267_v35  ;;  %v611_v35 = vld [vmem:[#allocation2 + $0x1b8] sm:$0xff] }
 0x252   : > { %v1862_v36 = vpop.f32.mrb[92].mxu0  ;;  %v2151_v38 = vpop.f32.mrb[92].mxu1 }
 0x253   : > { %v1864_v39 = vpop.f32.mrb[93].mxu0  ;;  %v2152_v40 = vadd.f32 %v2151_v38, %v1862_v36  ;;  %v2153_v41 = vpop.f32.mrb[93].mxu1 }
 0x254   : > { %v1865_v42 = vpop.f32.mrb[94].mxu0  ;;  %v2154_v44 = vpop.f32.mrb[94].mxu1 }
 0x255   : > { %v1867_v45 = vpop.f32.mrb[95].mxu0  ;;  %v2268_v46 = vadd.f32 %v2152_v40, %v602_v37  ;;  %v2155_v47 = vadd.f32 %v2154_v44, %v1865_v42  ;;  %v2156_v48 = vpop.f32.mrb[95].mxu1 }
 0x257   : > { %2332 = vst [vmem:[#allocation2 + $0x170] sm:$0xff] %v2268_v46  ;;  %v2269_v49 = vadd.f32 %v2155_v47, %v603_v43  ;;  %v612_v43 = vld [vmem:[#allocation2 + $0x1c0] sm:$0xff] }
 0x259   : > { %2333 = vst [vmem:[#allocation2 + $0x178] sm:$0xff] %v2269_v49  ;;  %v613_v49 = vld [vmem:[#allocation2 + $0x1c8] sm:$0xff] }
 0x25a   : > { %v1870_v50 = vpop.f32.mrb[96].mxu0  ;;  %v2159_v52 = vpop.f32.mrb[96].mxu1 }
 0x25b   : > { %v1872_v53 = vpop.f32.mrb[97].mxu0  ;;  %v2160_v54 = vadd.f32 %v2159_v52, %v1870_v50  ;;  %v2161_v55 = vpop.f32.mrb[97].mxu1 }
 0x25c   : > { %v1873_v56 = vpop.f32.mrb[98].mxu0  ;;  %v2162_v58 = vpop.f32.mrb[98].mxu1 }
 0x25d   : > { %v1875_v59 = vpop.f32.mrb[99].mxu0  ;;  %v2270_v60 = vadd.f32 %v2160_v54, %v604_v51  ;;  %v2163_v61 = vadd.f32 %v2162_v58, %v1873_v56  ;;  %v2164_v62 = vpop.f32.mrb[99].mxu1 }
 0x25f   : > { %2334 = vst [vmem:[#allocation2 + $0x180] sm:$0xff] %v2270_v60  ;;  %v2271_v63 = vadd.f32 %v2163_v61, %v605_v57  ;;  %v614_v57 = vld [vmem:[#allocation2 + $0x1d0] sm:$0xff] }
 0x261   : > { %2335 = vst [vmem:[#allocation2 + $0x188] sm:$0xff] %v2271_v63  ;;  %v615_v63 = vld [vmem:[#allocation2 + $0x1d8] sm:$0xff] }
 0x262   : > { %v1878_v0 = vpop.f32.mrb[100].mxu0  ;;  %v2167_v2 = vpop.f32.mrb[100].mxu1 }
 0x263   : > { %v1880_v3 = vpop.f32.mrb[101].mxu0  ;;  %v2168_v4 = vadd.f32 %v2167_v2, %v1878_v0  ;;  %v2169_v5 = vpop.f32.mrb[101].mxu1 }
 0x264   : > { %v1881_v6 = vpop.f32.mrb[102].mxu0  ;;  %v2170_v8 = vpop.f32.mrb[102].mxu1 }
 0x265   : > { %v1883_v9 = vpop.f32.mrb[103].mxu0  ;;  %v2272_v10 = vadd.f32 %v2168_v4, %v606_v1  ;;  %v2171_v11 = vadd.f32 %v2170_v8, %v1881_v6  ;;  %v2172_v12 = vpop.f32.mrb[103].mxu1 }
 0x267   : > { %2336 = vst [vmem:[#allocation2 + $0x190] sm:$0xff] %v2272_v10  ;;  %v2273_v13 = vadd.f32 %v2171_v11, %v607_v7  ;;  %v616_v7 = vld [vmem:[#allocation2 + $0x1e0] sm:$0xff] }
 0x269   : > { %2337 = vst [vmem:[#allocation2 + $0x198] sm:$0xff] %v2273_v13  ;;  %v617_v13 = vld [vmem:[#allocation2 + $0x1e8] sm:$0xff] }
 0x26a   : > { %v1886_v14 = vpop.f32.mrb[104].mxu0  ;;  %v2175_v16 = vpop.f32.mrb[104].mxu1 }
 0x26b   : > { %v1888_v17 = vpop.f32.mrb[105].mxu0  ;;  %v2176_v18 = vadd.f32 %v2175_v16, %v1886_v14  ;;  %v2177_v19 = vpop.f32.mrb[105].mxu1 }
 0x26c   : > { %v1889_v20 = vpop.f32.mrb[106].mxu0  ;;  %v2178_v22 = vpop.f32.mrb[106].mxu1 }
 0x26d   : > { %v1891_v23 = vpop.f32.mrb[107].mxu0  ;;  %v2274_v24 = vadd.f32 %v2176_v18, %v608_v15  ;;  %v2179_v25 = vadd.f32 %v2178_v22, %v1889_v20  ;;  %v2180_v26 = vpop.f32.mrb[107].mxu1 }
 0x26f   : > { %2338 = vst [vmem:[#allocation2 + $0x1a0] sm:$0xff] %v2274_v24  ;;  %v2275_v27 = vadd.f32 %v2179_v25, %v609_v21  ;;  %v618_v21 = vld [vmem:[#allocation2 + $0x1f0] sm:$0xff] }
 0x271   : > { %2339 = vst [vmem:[#allocation2 + $0x1a8] sm:$0xff] %v2275_v27  ;;  %v619_v27 = vld [vmem:[#allocation2 + $0x1f8] sm:$0xff] }
 0x272   : > { %v1894_v28 = vpop.f32.mrb[108].mxu0  ;;  %v2183_v30 = vpop.f32.mrb[108].mxu1 }
 0x273   : > { %v1896_v31 = vpop.f32.mrb[109].mxu0  ;;  %v2184_v32 = vadd.f32 %v2183_v30, %v1894_v28  ;;  %v2185_v33 = vpop.f32.mrb[109].mxu1 }
 0x274   : > { %v1897_v34 = vpop.f32.mrb[110].mxu0  ;;  %v2186_v36 = vpop.f32.mrb[110].mxu1 }
 0x275   : > { %v1899_v37 = vpop.f32.mrb[111].mxu0  ;;  %v2276_v38 = vadd.f32 %v2184_v32, %v610_v29  ;;  %v2187_v39 = vadd.f32 %v2186_v36, %v1897_v34  ;;  %v2188_v40 = vpop.f32.mrb[111].mxu1  ;;  %v2354_v34 = vld [vmem:[#allocation2] sm:$0xff] (!%p3010_p13)  ;;  %v2355_v36 = vld [vmem:[#allocation2 + $0x8] sm:$0xff] (!%p3010_p13) }
 0x276   : > { %v2357_v40 = vld [vmem:[#allocation2 + $0x18] sm:$0xff] (!%p3010_p13) }
 0x277   : > { %2340 = vst [vmem:[#allocation2 + $0x1b0] sm:$0xff] %v2276_v38  ;;  %v2277_v41 = vadd.f32 %v2187_v39, %v611_v35  ;;  %v3973_v35 = vld [vmem:[%s4126_s2] ss:$0 sm:$0xff] (!%p3010_p13)  ;;  %v2356_v39 = vld [vmem:[#allocation2 + $0x10] sm:$0xff] (!%p3010_p13) }
 0x278   : > { %v2425_v37 = vadd.f32 (!%p3010_p13), %v3973_v35, %v2354_v34  ;;  %v2426_v38 = vadd.f32 (!%p3010_p13), %v3973_v35, %v2355_v36 }
 0x279   : > { %2341 = vst [vmem:[#allocation2 + $0x1b8] sm:$0xff] %v2277_v41  ;;  %v2358_v41 = vld [vmem:[#allocation2 + $0x20] sm:$0xff] (!%p3010_p13) }
 0x27a   : > { %v1902_v42 = vpop.f32.mrb[112].mxu0  ;;  %v2191_v44 = vpop.f32.mrb[112].mxu1  ;;  %vm2489_vm0 = vcmp.ge.f32.partialorder (!%p3010_p13), %v2425_v37, 0.0  ;;  %vm2490_vm1 = vcmp.ge.f32.partialorder (!%p3010_p13), %v2426_v38, 0.0 }
 0x27b   : > { %v1904_v45 = vpop.f32.mrb[113].mxu0  ;;  %v2192_v46 = vadd.f32 %v2191_v44, %v1902_v42  ;;  %v2193_v47 = vpop.f32.mrb[113].mxu1  ;;  %v2427_v42 = vadd.f32 (!%p3010_p13), %v3973_v35, %v2356_v39  ;;  %v2429_v44 = vadd.f32 (!%p3010_p13), %v3973_v35, %v2358_v41  ;;  %v2375_v39 = vld [vmem:[#allocation2 + $0xa8] sm:$0xff] (!%p3010_p13) }
 0x27c   : > { %v1905_v48 = vpop.f32.mrb[114].mxu0  ;;  %v2194_v50 = vpop.f32.mrb[114].mxu1  ;;  %v2359_v45 = vld [vmem:[#allocation2 + $0x28] sm:$0xff] (!%p3010_p13)  ;;  %v2361_v47 = vld [vmem:[#allocation2 + $0x38] sm:$0xff] (!%p3010_p13) }
 0x27d   : > { %v1907_v51 = vpop.f32.mrb[115].mxu0  ;;  %v2278_v52 = vadd.f32 %v2192_v46, %v612_v43  ;;  %v2195_v53 = vadd.f32 %v2194_v50, %v1905_v48  ;;  %v2196_v54 = vpop.f32.mrb[115].mxu1  ;;  %v2428_v43 = vadd.f32 (!%p3010_p13), %v3973_v35, %v2357_v40  ;;  %v2360_v46 = vld [vmem:[#allocation2 + $0x30] sm:$0xff] (!%p3010_p13)  ;;  %v2553_v48 = vmul.f32 (!%p3010_p13), 0.01, %v2425_v37 }
 0x27e   : > { %vm2491_vm2 = vcmp.ge.f32.partialorder (!%p3010_p13), %v2427_v42, 0.0  ;;  %v2555_v50 = vmul.f32 (!%p3010_p13), 0.01, %v2427_v42  ;;  %vm2493_vm4 = vcmp.ge.f32.partialorder (!%p3010_p13), %v2429_v44, 0.0  ;;  %v2557_v54 = vmul.f32 (!%p3010_p13), 0.01, %v2429_v44 }
 0x27f   : > { %2342 = vst [vmem:[#allocation2 + $0x1c0] sm:$0xff] %v2278_v52  ;;  %v2279_v55 = vadd.f32 %v2195_v53, %v613_v49  ;;  %v2554_v49 = vmul.f32 (!%p3010_p13), 0.01, %v2426_v38  ;;  %vm2492_vm3 = vcmp.ge.f32.partialorder (!%p3010_p13), %v2428_v43, 0.0  ;;  %v2556_v51 = vmul.f32 (!%p3010_p13), 0.01, %v2428_v43 }
 0x280   : > { %v2617_v52 = vsel (!%p3010_p13), %vm2489_vm0, %v2425_v37, %v2553_v48 }
 0x281   : > { %2343 = vst [vmem:[#allocation2 + $0x1c8] sm:$0xff] %v2279_v55  ;;  %v2618_v53 = vsel (!%p3010_p13), %vm2490_vm1, %v2426_v38, %v2554_v49  ;;  %v2362_v55 = vld [vmem:[#allocation2 + $0x40] sm:$0xff] (!%p3010_p13)  ;;  %2681 = vst [vmem:[%s3708_s30] sm:$0xff] (!%p3010_p13), %v2617_v52 }
 0x282   : > { %v1910_v56 = vpop.f32.mrb[116].mxu0  ;;  %v2199_v58 = vpop.f32.mrb[116].mxu1  ;;  %2682 = vst [vmem:[%s3708_s30 + $0x8] sm:$0xff] (!%p3010_p13), %v2618_v53  ;;  %v2374_v38 = vld [vmem:[#allocation2 + $0xa0] sm:$0xff] (!%p3010_p13) }
 0x283   : > { %v1912_v59 = vpop.f32.mrb[117].mxu0  ;;  %v2200_v60 = vadd.f32 %v2199_v58, %v1910_v56  ;;  %v2201_v61 = vpop.f32.mrb[117].mxu1  ;;  %v2363_v56 = vld [vmem:[#allocation2 + $0x48] sm:$0xff] (!%p3010_p13)  ;;  %v2620_v58 = vsel (!%p3010_p13), %vm2492_vm3, %v2428_v43, %v2556_v51 }
 0x284   : > { %v1913_v62 = vpop.f32.mrb[118].mxu0  ;;  %v2202_v0 = vpop.f32.mrb[118].mxu1  ;;  %v2430_v59 = vadd.f32 (!%p3010_p13), %v3973_v35, %v2359_v45  ;;  %v2364_v61 = vld [vmem:[#allocation2 + $0x50] sm:$0xff] (!%p3010_p13)  ;;  %2684 = vst [vmem:[%s3708_s30 + $0x18] sm:$0xff] (!%p3010_p13), %v2620_v58  ;;  %v2377_v45 = vld [vmem:[#allocation2 + $0xb8] sm:$0xff] (!%p3010_p13)  ;;  %v2379_v58 = vld [vmem:[#allocation2 + $0xc8] sm:$0xff] (!%p3010_p13) }
 0x285   : > { %v1915_v1 = vpop.f32.mrb[119].mxu0  ;;  %v2280_v2 = vadd.f32 %v2200_v60, %v614_v57  ;;  %v2203_v3 = vadd.f32 %v2202_v0, %v1913_v62  ;;  %v2204_v4 = vpop.f32.mrb[119].mxu1  ;;  %v2619_v57 = vsel (!%p3010_p13), %vm2491_vm2, %v2427_v42, %v2555_v50  ;;  %v2431_v60 = vadd.f32 (!%p3010_p13), %v3973_v35, %v2360_v46  ;;  %v2365_v62 = vld [vmem:[#allocation2 + $0x58] sm:$0xff] (!%p3010_p13)  ;;  %v2378_v46 = vld [vmem:[#allocation2 + $0xc0] sm:$0xff] (!%p3010_p13) }
 0x286   : > { %2683 = vst [vmem:[%s3708_s30 + $0x10] sm:$0xff] (!%p3010_p13), %v2619_v57  ;;  %v2432_v0 = vadd.f32 (!%p3010_p13), %v3973_v35, %v2361_v47  ;;  %v2433_v1 = vadd.f32 (!%p3010_p13), %v3973_v35, %v2362_v55  ;;  %v2367_v4 = vld [vmem:[#allocation2 + $0x68] sm:$0xff] (!%p3010_p13)  ;;  %vm2494_vm5 = vcmp.ge.f32.partialorder (!%p3010_p13), %v2430_v59, 0.0  ;;  %v2446_v57 = vadd.f32 (!%p3010_p13), %v3973_v35, %v2375_v39 }
 0x287   : > { %2344 = vst [vmem:[#allocation2 + $0x1d0] sm:$0xff] %v2280_v2  ;;  %v2281_v5 = vadd.f32 %v2203_v3, %v615_v63  ;;  %v2621_v63 = vsel (!%p3010_p13), %vm2493_vm4, %v2429_v44, %v2557_v54  ;;  %v2434_v2 = vadd.f32 (!%p3010_p13), %v3973_v35, %v2363_v56  ;;  %v2366_v3 = vld [vmem:[#allocation2 + $0x60] sm:$0xff] (!%p3010_p13)  ;;  %vm2495_vm6 = vcmp.ge.f32.partialorder (!%p3010_p13), %v2431_v60, 0.0  ;;  %v2376_v44 = vld [vmem:[#allocation2 + $0xb0] sm:$0xff] (!%p3010_p13) }
 0x288   : > { %2685 = vst [vmem:[%s3708_s30 + $0x20] sm:$0xff] (!%p3010_p13), %v2621_v63  ;;  %vm2496_vm7 = vcmp.ge.f32.partialorder (!%p3010_p13), %v2432_v0, 0.0  ;;  %vm2497_vm8 = vcmp.ge.f32.partialorder (!%p3010_p13), %v2433_v1, 0.0  ;;  %v2445_v56 = vadd.f32 (!%p3010_p13), %v3973_v35, %v2374_v38  ;;  %v2449_v63 = vadd.f32 (!%p3010_p13), %v3973_v35, %v2378_v46 }
 0x289   : > { %2345 = vst [vmem:[#allocation2 + $0x1d8] sm:$0xff] %v2281_v5  ;;  %v2368_v5 = vld [vmem:[#allocation2 + $0x70] sm:$0xff] (!%p3010_p13)  ;;  %vm2498_vm9 = vcmp.ge.f32.partialorder (!%p3010_p13), %v2434_v2, 0.0 }
 0x28a   : > { %v1918_v6 = vpop.f32.mrb[120].mxu0  ;;  %v2207_v8 = vpop.f32.mrb[120].mxu1  ;;  %vm2509_vm4 = vcmp.ge.f32.partialorder (!%p3010_p13), %v2445_v56, 0.0 }
 0x28b   : > { %v1920_v9 = vpop.f32.mrb[121].mxu0  ;;  %v2208_v10 = vadd.f32 %v2207_v8, %v1918_v6  ;;  %v2209_v11 = vpop.f32.mrb[121].mxu1  ;;  %v2558_v6 = vmul.f32 (!%p3010_p13), 0.01, %v2430_v59  ;;  %v2560_v8 = vmul.f32 (!%p3010_p13), 0.01, %v2432_v0 }
 0x28c   : > { %v1921_v12 = vpop.f32.mrb[122].mxu0  ;;  %v2210_v14 = vpop.f32.mrb[122].mxu1  ;;  %v2561_v9 = vmul.f32 (!%p3010_p13), 0.01, %v2433_v1 }
 0x28d   : > { %v1923_v15 = vpop.f32.mrb[123].mxu0  ;;  %v2282_v16 = vadd.f32 %v2208_v10, %v616_v7  ;;  %v2211_v17 = vadd.f32 %v2210_v14, %v1921_v12  ;;  %v2212_v18 = vpop.f32.mrb[123].mxu1  ;;  %v2559_v7 = vmul.f32 (!%p3010_p13), 0.01, %v2431_v60  ;;  %v2622_v10 = vsel (!%p3010_p13), %vm2494_vm5, %v2430_v59, %v2558_v6  ;;  %v2380_v59 = vld [vmem:[#allocation2 + $0xd0] sm:$0xff] (!%p3010_p13) }
 0x28e   : > { %v2562_v12 = vmul.f32 (!%p3010_p13), 0.01, %v2434_v2  ;;  %2686 = vst [vmem:[%s3708_s30 + $0x28] sm:$0xff] (!%p3010_p13), %v2622_v10  ;;  %v2625_v14 = vsel (!%p3010_p13), %vm2497_vm8, %v2433_v1, %v2561_v9  ;;  %v2435_v15 = vadd.f32 (!%p3010_p13), %v3973_v35, %v2364_v61  ;;  %v2370_v18 = vld [vmem:[#allocation2 + $0x80] sm:$0xff] (!%p3010_p13)  ;;  %v2447_v61 = vadd.f32 (!%p3010_p13), %v3973_v35, %v2376_v44 }
 0x28f   : > { %2346 = vst [vmem:[#allocation2 + $0x1e0] sm:$0xff] %v2282_v16  ;;  %v2283_v19 = vadd.f32 %v2211_v17, %v617_v13  ;;  %v2623_v11 = vsel (!%p3010_p13), %vm2495_vm6, %v2431_v60, %v2559_v7  ;;  %v2624_v13 = vsel (!%p3010_p13), %vm2496_vm7, %v2432_v0, %v2560_v8  ;;  %v2436_v16 = vadd.f32 (!%p3010_p13), %v3973_v35, %v2365_v62  ;;  %v2369_v17 = vld [vmem:[#allocation2 + $0x78] sm:$0xff] (!%p3010_p13)  ;;  %v2382_v1 = vld [vmem:[#allocation2 + $0xe0] sm:$0xff] (!%p3010_p13) }
 0x290   : > { %2687 = vst [vmem:[%s3708_s30 + $0x30] sm:$0xff] (!%p3010_p13), %v2623_v11  ;;  %2688 = vst [vmem:[%s3708_s30 + $0x38] sm:$0xff] (!%p3010_p13), %v2624_v13  ;;  %vm2499_vm10 = vcmp.ge.f32.partialorder (!%p3010_p13), %v2435_v15, 0.0  ;;  %v2440_v36 = vadd.f32 (!%p3010_p13), %v3973_v35, %v2369_v17  ;;  %v2441_v37 = vadd.f32 (!%p3010_p13), %v3973_v35, %v2370_v18  ;;  %v2448_v62 = vadd.f32 (!%p3010_p13), %v3973_v35, %v2377_v45  ;;  %v2381_v0 = vld [vmem:[#allocation2 + $0xd8] sm:$0xff] (!%p3010_p13) }
 0x291   : > { %2347 = vst [vmem:[#allocation2 + $0x1e8] sm:$0xff] %v2283_v19  ;;  %2689 = vst [vmem:[%s3708_s30 + $0x40] sm:$0xff] (!%p3010_p13), %v2625_v14  ;;  %v2626_v19 = vsel (!%p3010_p13), %vm2498_vm9, %v2434_v2, %v2562_v12  ;;  %vm2500_vm11 = vcmp.ge.f32.partialorder (!%p3010_p13), %v2436_v16, 0.0  ;;  %v2383_v2 = vld [vmem:[#allocation2 + $0xe8] sm:$0xff] (!%p3010_p13)  ;;  %vm2510_vm5 = vcmp.ge.f32.partialorder (!%p3010_p13), %v2446_v57, 0.0  ;;  %vm2511_vm6 = vcmp.ge.f32.partialorder (!%p3010_p13), %v2447_v61, 0.0 }
 0x292   : > { %v1926_v20 = vpop.f32.mrb[124].mxu0  ;;  %v2215_v22 = vpop.f32.mrb[124].mxu1  ;;  %2690 = vst [vmem:[%s3708_s30 + $0x48] sm:$0xff] (!%p3010_p13), %v2626_v19  ;;  %vm2504_vm15 = vcmp.ge.f32.partialorder (!%p3010_p13), %v2440_v36, 0.0  ;;  %v2568_v47 = vmul.f32 (!%p3010_p13), 0.01, %v2440_v36  ;;  %v2450_v12 = vadd.f32 (!%p3010_p13), %v3973_v35, %v2379_v58  ;;  %v2451_v13 = vadd.f32 (!%p3010_p13), %v3973_v35, %v2380_v59 }
 0x293   : > { %v1928_v23 = vpop.f32.mrb[125].mxu0  ;;  %v2216_v24 = vadd.f32 %v2215_v22, %v1926_v20  ;;  %v2217_v25 = vpop.f32.mrb[125].mxu1  ;;  %2353 = sbr.rel (%p3010_p13) target bundleno = 712 (0x2c8), region = 63  ;;  %v2437_v20 = vadd.f32 (!%p3010_p13), %v3973_v35, %v2366_v3  ;;  %v2439_v22 = vadd.f32 (!%p3010_p13), %v3973_v35, %v2368_v5  ;;  %vm2505_vm0 = vcmp.ge.f32.partialorder (!%p3010_p13), %v2441_v37, 0.0  ;;  %v2384_v14 = vld [vmem:[#allocation2 + $0xf0] sm:$0xff] (!%p3010_p13) }
 0x294   : > { %v1929_v26 = vpop.f32.mrb[126].mxu0  ;;  %v2218_v28 = vpop.f32.mrb[126].mxu1  ;;  %v2371_v23 = vld [vmem:[#allocation2 + $0x88] sm:$0xff] (!%p3010_p13)  ;;  %v2373_v25 = vld [vmem:[#allocation2 + $0x98] sm:$0xff] (!%p3010_p13)  ;;  %v2569_v48 = vmul.f32 (!%p3010_p13), 0.01, %v2441_v37  ;;  %v2632_v51 = vsel (!%p3010_p13), %vm2504_vm15, %v2440_v36, %v2568_v47  ;;  %v2452_v17 = vadd.f32 (!%p3010_p13), %v3973_v35, %v2381_v0  ;;  %v2453_v18 = vadd.f32 (!%p3010_p13), %v3973_v35, %v2382_v1 }
 0x295   : > { %v1931_v29 = vpop.f32.mrb[127].mxu0  ;;  %v2284_v30 = vadd.f32 %v2216_v24, %v618_v21  ;;  %v2219_v31 = vadd.f32 %v2218_v28, %v1929_v26  ;;  %v2220_v32 = vpop.f32.mrb[127].mxu1  ;;  %v2438_v21 = vadd.f32 (!%p3010_p13), %v3973_v35, %v2367_v4  ;;  %v2372_v24 = vld [vmem:[#allocation2 + $0x90] sm:$0xff] (!%p3010_p13)  ;;  %v2563_v26 = vmul.f32 (!%p3010_p13), 0.01, %v2435_v15  ;;  %2696 = vst [vmem:[%s3708_s30 + $0x78] sm:$0xff] (!%p3010_p13), %v2632_v51 }
 0x296   : > { %vm2501_vm12 = vcmp.ge.f32.partialorder (!%p3010_p13), %v2437_v20, 0.0  ;;  %v2565_v28 = vmul.f32 (!%p3010_p13), 0.01, %v2437_v20  ;;  %vm2503_vm14 = vcmp.ge.f32.partialorder (!%p3010_p13), %v2439_v22, 0.0  ;;  %v2567_v32 = vmul.f32 (!%p3010_p13), 0.01, %v2439_v22 }
 0x297   : > { %2348 = vst [vmem:[#allocation2 + $0x1f0] sm:$0xff] %v2284_v30  ;;  %v2285_v33 = vadd.f32 %v2219_v31, %v619_v27  ;;  %v2564_v27 = vmul.f32 (!%p3010_p13), 0.01, %v2436_v16  ;;  %vm2502_vm13 = vcmp.ge.f32.partialorder (!%p3010_p13), %v2438_v21, 0.0  ;;  %v2566_v29 = vmul.f32 (!%p3010_p13), 0.01, %v2438_v21 }
 0x298   : > { %v2627_v30 = vsel (!%p3010_p13), %vm2499_vm10, %v2435_v15, %v2563_v26  ;;  %v2631_v40 = vsel (!%p3010_p13), %vm2503_vm14, %v2439_v22, %v2567_v32  ;;  %v2442_v41 = vadd.f32 (!%p3010_p13), %v3973_v35, %v2371_v23  ;;  %v2443_v42 = vadd.f32 (!%p3010_p13), %v3973_v35, %v2372_v24  ;;  %v2385_v15 = vld [vmem:[#allocation2 + $0xf8] sm:$0xff] (!%p3010_p13)  ;;  %v2388_v22 = vld [vmem:[#allocation2 + $0x110] sm:$0xff] (!%p3010_p13)  ;;  %v2390_v36 = vld [vmem:[#allocation2 + $0x120] sm:$0xff] (!%p3010_p13) }
 0x299   : > { %2349 = vst [vmem:[#allocation2 + $0x1f8] sm:$0xff] %v2285_v33  ;;  %v2628_v31 = vsel (!%p3010_p13), %vm2500_vm11, %v2436_v16, %v2564_v27  ;;  %2691 = vst [vmem:[%s3708_s30 + $0x50] sm:$0xff] (!%p3010_p13), %v2627_v30  ;;  %v2629_v33 = vsel (!%p3010_p13), %vm2501_vm12, %v2437_v20, %v2565_v28  ;;  %v2630_v34 = vsel (!%p3010_p13), %vm2502_vm13, %v2438_v21, %v2566_v29  ;;  %v2573_v3 = vmul.f32 (!%p3010_p13), 0.01, %v2445_v56  ;;  %v2386_v20 = vld [vmem:[#allocation2 + $0x100] sm:$0xff] (!%p3010_p13)  ;;  %v2387_v21 = vld [vmem:[#allocation2 + $0x108] sm:$0xff] (!%p3010_p13) }
 0x29a   : > { %2692 = vst [vmem:[%s3708_s30 + $0x58] sm:$0xff] %v2628_v31  ;;  %2693 = vst [vmem:[%s3708_s30 + $0x60] sm:$0xff] %v2629_v33  ;;  %v2444_v43 = vadd.f32 %v3973_v35, %v2373_v25  ;;  %vm2506_vm1 = vcmp.ge.f32.partialorder %v2442_v41, 0.0  ;;  %v2570_v49 = vmul.f32 0.01, %v2442_v41  ;;  %vm2507_vm2 = vcmp.ge.f32.partialorder %v2443_v42, 0.0 }
 0x29b   : > { %2694 = vst [vmem:[%s3708_s30 + $0x68] sm:$0xff] %v2630_v34  ;;  %2695 = vst [vmem:[%s3708_s30 + $0x70] sm:$0xff] %v2631_v40  ;;  %v2571_v50 = vmul.f32 0.01, %v2443_v42  ;;  %v2633_v52 = vsel %vm2505_vm0, %v2441_v37, %v2569_v48  ;;  %v2574_v4 = vmul.f32 0.01, %v2446_v57  ;;  %v2637_v7 = vsel %vm2509_vm4, %v2445_v56, %v2573_v3 }
 0x29c   : > { %vm2508_vm3 = vcmp.ge.f32.partialorder %v2444_v43, 0.0  ;;  %v2572_v53 = vmul.f32 0.01, %v2444_v43  ;;  %2697 = vst [vmem:[%s3708_s30 + $0x80] sm:$0xff] %v2633_v52  ;;  %v2634_v54 = vsel %vm2506_vm1, %v2442_v41, %v2570_v49  ;;  %v2575_v5 = vmul.f32 0.01, %v2447_v61 }
 0x29d   : > { %v2635_v55 = vsel %vm2507_vm2, %v2443_v42, %v2571_v50  ;;  %2698 = vst [vmem:[%s3708_s30 + $0x88] sm:$0xff] %v2634_v54  ;;  %vm2512_vm7 = vcmp.ge.f32.partialorder %v2448_v62, 0.0  ;;  %v2576_v6 = vmul.f32 0.01, %v2448_v62  ;;  %v2638_v8 = vsel %vm2510_vm5, %v2446_v57, %v2574_v4  ;;  %2701 = vst [vmem:[%s3708_s30 + $0xa0] sm:$0xff] %v2637_v7  ;;  %v2389_v34 = vld [vmem:[#allocation2 + $0x118] sm:$0xff] }
 0x29e   : > { %2699 = vst [vmem:[%s3708_s30 + $0x90] sm:$0xff] %v2635_v55  ;;  %v2636_v60 = vsel %vm2508_vm3, %v2444_v43, %v2572_v53  ;;  %vm2513_vm8 = vcmp.ge.f32.partialorder %v2449_v63, 0.0  ;;  %v2577_v9 = vmul.f32 0.01, %v2449_v63  ;;  %2702 = vst [vmem:[%s3708_s30 + $0xa8] sm:$0xff] %v2638_v8  ;;  %v2639_v10 = vsel %vm2511_vm6, %v2447_v61, %v2575_v5  ;;  %v2391_v41 = vld [vmem:[#allocation2 + $0x128] sm:$0xff] }
 0x29f   : > { %2700 = vst [vmem:[%s3708_s30 + $0x98] sm:$0xff] %v2636_v60  ;;  %v2640_v11 = vsel %vm2512_vm7, %v2448_v62, %v2576_v6  ;;  %2703 = vst [vmem:[%s3708_s30 + $0xb0] sm:$0xff] %v2639_v10  ;;  %v2454_v19 = vadd.f32 %v3973_v35, %v2383_v2  ;;  %vm2514_vm9 = vcmp.ge.f32.partialorder %v2450_v12, 0.0  ;;  %v2578_v23 = vmul.f32 0.01, %v2450_v12  ;;  %v2392_v42 = vld [vmem:[#allocation2 + $0x130] sm:$0xff] }
 0x2a0   : > { %2704 = vst [vmem:[%s3708_s30 + $0xb8] sm:$0xff] %v2640_v11  ;;  %v2641_v16 = vsel %vm2513_vm8, %v2449_v63, %v2577_v9  ;;  %vm2515_vm10 = vcmp.ge.f32.partialorder %v2451_v13, 0.0  ;;  %v2579_v24 = vmul.f32 0.01, %v2451_v13  ;;  %vm2516_vm11 = vcmp.ge.f32.partialorder %v2452_v17, 0.0  ;;  %v2393_v43 = vld [vmem:[#allocation2 + $0x138] sm:$0xff] }
 0x2a1   : > { %2705 = vst [vmem:[%s3708_s30 + $0xc0] sm:$0xff] %v2641_v16  ;;  %v2580_v25 = vmul.f32 0.01, %v2452_v17  ;;  %vm2517_vm12 = vcmp.ge.f32.partialorder %v2453_v18, 0.0  ;;  %v2581_v26 = vmul.f32 0.01, %v2453_v18  ;;  %v2642_v27 = vsel %vm2514_vm9, %v2450_v12, %v2578_v23 }
 0x2a2   : > { %v2643_v28 = vsel %vm2515_vm10, %v2451_v13, %v2579_v24  ;;  %vm2518_vm13 = vcmp.ge.f32.partialorder %v2454_v19, 0.0  ;;  %v2582_v29 = vmul.f32 0.01, %v2454_v19  ;;  %2706 = vst [vmem:[%s3708_s30 + $0xc8] sm:$0xff] %v2642_v27  ;;  %v2455_v32 = vadd.f32 %v3973_v35, %v2384_v14  ;;  %v2394_v55 = vld [vmem:[#allocation2 + $0x140] sm:$0xff]  ;;  %v2395_v56 = vld [vmem:[#allocation2 + $0x148] sm:$0xff] }
 0x2a3   : > { %2707 = vst [vmem:[%s3708_s30 + $0xd0] sm:$0xff] %v2643_v28  ;;  %v2644_v30 = vsel %vm2516_vm11, %v2452_v17, %v2580_v25  ;;  %v2645_v31 = vsel %vm2517_vm12, %v2453_v18, %v2581_v26  ;;  %v2456_v33 = vadd.f32 %v3973_v35, %v2385_v15  ;;  %v2457_v38 = vadd.f32 %v3973_v35, %v2386_v20  ;;  %v2396_v61 = vld [vmem:[#allocation2 + $0x150] sm:$0xff]  ;;  %v2397_v62 = vld [vmem:[#allocation2 + $0x158] sm:$0xff]  ;;  %v2398_v63 = vld [vmem:[#allocation2 + $0x160] sm:$0xff] }
 0x2a4   : > { %2708 = vst [vmem:[%s3708_s30 + $0xd8] sm:$0xff] %v2644_v30  ;;  %2709 = vst [vmem:[%s3708_s30 + $0xe0] sm:$0xff] %v2645_v31  ;;  %v2646_v37 = vsel %vm2518_vm13, %v2454_v19, %v2582_v29  ;;  %v2458_v39 = vadd.f32 %v3973_v35, %v2387_v21  ;;  %v2459_v40 = vadd.f32 %v3973_v35, %v2388_v22  ;;  %vm2519_vm14 = vcmp.ge.f32.partialorder %v2455_v32, 0.0  ;;  %v2399_v11 = vld [vmem:[#allocation2 + $0x168] sm:$0xff]  ;;  %v2400_v12 = vld [vmem:[#allocation2 + $0x170] sm:$0xff] }
 0x2a5   : > { %2710 = vst [vmem:[%s3708_s30 + $0xe8] sm:$0xff] %v2646_v37  ;;  %v2583_v44 = vmul.f32 0.01, %v2455_v32  ;;  %vm2520_vm15 = vcmp.ge.f32.partialorder %v2456_v33, 0.0  ;;  %v2584_v45 = vmul.f32 0.01, %v2456_v33  ;;  %v2460_v53 = vadd.f32 %v3973_v35, %v2389_v34 }
 0x2a6   : > { %vm2521_vm0 = vcmp.ge.f32.partialorder %v2457_v38, 0.0  ;;  %v2585_v46 = vmul.f32 0.01, %v2457_v38  ;;  %vm2522_vm1 = vcmp.ge.f32.partialorder %v2458_v39, 0.0  ;;  %v2586_v47 = vmul.f32 0.01, %v2458_v39 }
 0x2a7   : > { %v2647_v48 = vsel %vm2519_vm14, %v2455_v32, %v2583_v44  ;;  %v2648_v49 = vsel %vm2520_vm15, %v2456_v33, %v2584_v45  ;;  %vm2523_vm2 = vcmp.ge.f32.partialorder %v2459_v40, 0.0  ;;  %v2587_v50 = vmul.f32 0.01, %v2459_v40  ;;  %v2401_v17 = vld [vmem:[#allocation2 + $0x178] sm:$0xff]  ;;  %v2402_v18 = vld [vmem:[#allocation2 + $0x180] sm:$0xff]  ;;  %v2403_v19 = vld [vmem:[#allocation2 + $0x188] sm:$0xff] }
 0x2a8   : > { %2711 = vst [vmem:[%s3708_s30 + $0xf0] sm:$0xff] %v2647_v48  ;;  %2712 = vst [vmem:[%s3708_s30 + $0xf8] sm:$0xff] %v2648_v49  ;;  %v2649_v51 = vsel %vm2521_vm0, %v2457_v38, %v2585_v46  ;;  %v2650_v52 = vsel %vm2522_vm1, %v2458_v39, %v2586_v47  ;;  %v2461_v54 = vadd.f32 %v3973_v35, %v2390_v36  ;;  %vm2524_vm3 = vcmp.ge.f32.partialorder %v2460_v53, 0.0  ;;  %v2404_v31 = vld [vmem:[#allocation2 + $0x190] sm:$0xff]  ;;  %v2405_v32 = vld [vmem:[#allocation2 + $0x198] sm:$0xff] }
 0x2a9   : > { %2713 = vst [vmem:[%s3708_s30 + $0x100] sm:$0xff] %v2649_v51  ;;  %2714 = vst [vmem:[%s3708_s30 + $0x108] sm:$0xff] %v2650_v52  ;;  %v2651_v57 = vsel %vm2523_vm2, %v2459_v40, %v2587_v50  ;;  %v2462_v58 = vadd.f32 %v3973_v35, %v2391_v41  ;;  %v2463_v59 = vadd.f32 %v3973_v35, %v2392_v42  ;;  %v2588_v0 = vmul.f32 0.01, %v2460_v53  ;;  %v2406_v38 = vld [vmem:[#allocation2 + $0x1a0] sm:$0xff]  ;;  %v2407_v39 = vld [vmem:[#allocation2 + $0x1a8] sm:$0xff] }
 0x2aa   : > { %v2464_v60 = vadd.f32 %v3973_v35, %v2393_v43  ;;  %2715 = vst [vmem:[%s3708_s30 + $0x110] sm:$0xff] %v2651_v57  ;;  %vm2525_vm4 = vcmp.ge.f32.partialorder %v2461_v54, 0.0  ;;  %v2589_v1 = vmul.f32 0.01, %v2461_v54  ;;  %v2465_v9 = vadd.f32 %v3973_v35, %v2394_v55  ;;  %v2408_v40 = vld [vmem:[#allocation2 + $0x1b0] sm:$0xff]  ;;  %v2409_v52 = vld [vmem:[#allocation2 + $0x1b8] sm:$0xff] }
 0x2ab   : > { %vm2526_vm5 = vcmp.ge.f32.partialorder %v2462_v58, 0.0  ;;  %v2590_v2 = vmul.f32 0.01, %v2462_v58  ;;  %vm2527_vm6 = vcmp.ge.f32.partialorder %v2463_v59, 0.0  ;;  %v2591_v3 = vmul.f32 0.01, %v2463_v59 }
 0x2ac   : > { %v2652_v4 = vsel %vm2524_vm3, %v2460_v53, %v2588_v0  ;;  %v2653_v5 = vsel %vm2525_vm4, %v2461_v54, %v2589_v1  ;;  %vm2528_vm7 = vcmp.ge.f32.partialorder %v2464_v60, 0.0  ;;  %v2592_v6 = vmul.f32 0.01, %v2464_v60  ;;  %v2410_v53 = vld [vmem:[#allocation2 + $0x1c0] sm:$0xff] }
 0x2ad   : > { %2716 = vst [vmem:[%s3708_s30 + $0x118] sm:$0xff] %v2652_v4  ;;  %2717 = vst [vmem:[%s3708_s30 + $0x120] sm:$0xff] %v2653_v5  ;;  %v2654_v7 = vsel %vm2526_vm5, %v2462_v58, %v2590_v2  ;;  %v2655_v8 = vsel %vm2527_vm6, %v2463_v59, %v2591_v3  ;;  %v2466_v10 = vadd.f32 %v3973_v35, %v2395_v56  ;;  %vm2529_vm8 = vcmp.ge.f32.partialorder %v2465_v9, 0.0  ;;  %v2411_v58 = vld [vmem:[#allocation2 + $0x1c8] sm:$0xff]  ;;  %v2412_v59 = vld [vmem:[#allocation2 + $0x1d0] sm:$0xff] }
 0x2ae   : > { %2718 = vst [vmem:[%s3708_s30 + $0x128] sm:$0xff] %v2654_v7  ;;  %2719 = vst [vmem:[%s3708_s30 + $0x130] sm:$0xff] %v2655_v8  ;;  %v2656_v13 = vsel %vm2528_vm7, %v2464_v60, %v2592_v6  ;;  %v2467_v14 = vadd.f32 %v3973_v35, %v2396_v61  ;;  %v2468_v15 = vadd.f32 %v3973_v35, %v2397_v62  ;;  %v2593_v20 = vmul.f32 0.01, %v2465_v9  ;;  %v2413_v60 = vld [vmem:[#allocation2 + $0x1d8] sm:$0xff]  ;;  %v2414_v8 = vld [vmem:[#allocation2 + $0x1e0] sm:$0xff] }
 0x2af   : > { %v2469_v16 = vadd.f32 %v3973_v35, %v2398_v63  ;;  %2720 = vst [vmem:[%s3708_s30 + $0x138] sm:$0xff] %v2656_v13  ;;  %vm2530_vm9 = vcmp.ge.f32.partialorder %v2466_v10, 0.0  ;;  %v2594_v21 = vmul.f32 0.01, %v2466_v10  ;;  %v2470_v29 = vadd.f32 %v3973_v35, %v2399_v11  ;;  %v2415_v13 = vld [vmem:[#allocation2 + $0x1e8] sm:$0xff] }
 0x2b0   : > { %vm2531_vm10 = vcmp.ge.f32.partialorder %v2467_v14, 0.0  ;;  %v2595_v22 = vmul.f32 0.01, %v2467_v14  ;;  %vm2532_vm11 = vcmp.ge.f32.partialorder %v2468_v15, 0.0  ;;  %v2596_v23 = vmul.f32 0.01, %v2468_v15 }
 0x2b1   : > { %v2657_v24 = vsel %vm2529_vm8, %v2465_v9, %v2593_v20  ;;  %v2658_v25 = vsel %vm2530_vm9, %v2466_v10, %v2594_v21  ;;  %vm2533_vm12 = vcmp.ge.f32.partialorder %v2469_v16, 0.0  ;;  %v2597_v26 = vmul.f32 0.01, %v2469_v16 }
 0x2b2   : > { %2721 = vst [vmem:[%s3708_s30 + $0x140] sm:$0xff] %v2657_v24  ;;  %2722 = vst [vmem:[%s3708_s30 + $0x148] sm:$0xff] %v2658_v25  ;;  %v2659_v27 = vsel %vm2531_vm10, %v2467_v14, %v2595_v22  ;;  %v2660_v28 = vsel %vm2532_vm11, %v2468_v15, %v2596_v23  ;;  %v2471_v30 = vadd.f32 %v3973_v35, %v2400_v12  ;;  %vm2534_vm13 = vcmp.ge.f32.partialorder %v2470_v29, 0.0  ;;  %v2416_v14 = vld [vmem:[#allocation2 + $0x1f0] sm:$0xff]  ;;  %v2417_v15 = vld [vmem:[#allocation2 + $0x1f8] sm:$0xff] }
 0x2b3   : > { %2723 = vst [vmem:[%s3708_s30 + $0x150] sm:$0xff] %v2659_v27  ;;  %2724 = vst [vmem:[%s3708_s30 + $0x158] sm:$0xff] %v2660_v28  ;;  %v2661_v33 = vsel %vm2533_vm12, %v2469_v16, %v2597_v26  ;;  %v2472_v34 = vadd.f32 %v3973_v35, %v2401_v17  ;;  %v2473_v36 = vadd.f32 %v3973_v35, %v2402_v18  ;;  %v2598_v41 = vmul.f32 0.01, %v2470_v29 }
 0x2b4   : > { %v2474_v37 = vadd.f32 %v3973_v35, %v2403_v19  ;;  %2725 = vst [vmem:[%s3708_s30 + $0x160] sm:$0xff] %v2661_v33  ;;  %vm2535_vm14 = vcmp.ge.f32.partialorder %v2471_v30, 0.0  ;;  %v2599_v42 = vmul.f32 0.01, %v2471_v30  ;;  %v2475_v50 = vadd.f32 %v3973_v35, %v2404_v31 }
 0x2b5   : > { %vm2536_vm15 = vcmp.ge.f32.partialorder %v2472_v34, 0.0  ;;  %v2600_v43 = vmul.f32 0.01, %v2472_v34  ;;  %vm2537_vm0 = vcmp.ge.f32.partialorder %v2473_v36, 0.0  ;;  %v2601_v44 = vmul.f32 0.01, %v2473_v36 }
 0x2b6   : > { %v2662_v45 = vsel %vm2534_vm13, %v2470_v29, %v2598_v41  ;;  %v2663_v46 = vsel %vm2535_vm14, %v2471_v30, %v2599_v42  ;;  %vm2538_vm1 = vcmp.ge.f32.partialorder %v2474_v37, 0.0  ;;  %v2602_v47 = vmul.f32 0.01, %v2474_v37 }
 0x2b7   : > { %2726 = vst [vmem:[%s3708_s30 + $0x168] sm:$0xff] %v2662_v45  ;;  %2727 = vst [vmem:[%s3708_s30 + $0x170] sm:$0xff] %v2663_v46  ;;  %v2664_v48 = vsel %vm2536_vm15, %v2472_v34, %v2600_v43  ;;  %v2665_v49 = vsel %vm2537_vm0, %v2473_v36, %v2601_v44  ;;  %v2476_v51 = vadd.f32 %v3973_v35, %v2405_v32  ;;  %vm2539_vm2 = vcmp.ge.f32.partialorder %v2475_v50, 0.0 }
 0x2b8   : > { %2728 = vst [vmem:[%s3708_s30 + $0x178] sm:$0xff] %v2664_v48  ;;  %2729 = vst [vmem:[%s3708_s30 + $0x180] sm:$0xff] %v2665_v49  ;;  %v2666_v54 = vsel %vm2538_vm1, %v2474_v37, %v2602_v47  ;;  %v2477_v55 = vadd.f32 %v3973_v35, %v2406_v38  ;;  %v2478_v56 = vadd.f32 %v3973_v35, %v2407_v39  ;;  %v2603_v61 = vmul.f32 0.01, %v2475_v50 }
 0x2b9   : > { %v2479_v57 = vadd.f32 %v3973_v35, %v2408_v40  ;;  %2730 = vst [vmem:[%s3708_s30 + $0x188] sm:$0xff] %v2666_v54  ;;  %vm2540_vm3 = vcmp.ge.f32.partialorder %v2476_v51, 0.0  ;;  %v2604_v62 = vmul.f32 0.01, %v2476_v51  ;;  %v2480_v6 = vadd.f32 %v3973_v35, %v2409_v52 }
 0x2ba   : > { %vm2541_vm4 = vcmp.ge.f32.partialorder %v2477_v55, 0.0  ;;  %v2605_v63 = vmul.f32 0.01, %v2477_v55  ;;  %vm2542_vm5 = vcmp.ge.f32.partialorder %v2478_v56, 0.0  ;;  %v2606_v0 = vmul.f32 0.01, %v2478_v56 }
 0x2bb   : > { %v2667_v1 = vsel %vm2539_vm2, %v2475_v50, %v2603_v61  ;;  %v2668_v2 = vsel %vm2540_vm3, %v2476_v51, %v2604_v62  ;;  %vm2543_vm6 = vcmp.ge.f32.partialorder %v2479_v57, 0.0  ;;  %v2607_v3 = vmul.f32 0.01, %v2479_v57 }
 0x2bc   : > { %2731 = vst [vmem:[%s3708_s30 + $0x190] sm:$0xff] %v2667_v1  ;;  %2732 = vst [vmem:[%s3708_s30 + $0x198] sm:$0xff] %v2668_v2  ;;  %v2669_v4 = vsel %vm2541_vm4, %v2477_v55, %v2605_v63  ;;  %v2670_v5 = vsel %vm2542_vm5, %v2478_v56, %v2606_v0  ;;  %v2481_v7 = vadd.f32 %v3973_v35, %v2410_v53  ;;  %vm2544_vm7 = vcmp.ge.f32.partialorder %v2480_v6, 0.0 }
 0x2bd   : > { %2733 = vst [vmem:[%s3708_s30 + $0x1a0] sm:$0xff] %v2669_v4  ;;  %2734 = vst [vmem:[%s3708_s30 + $0x1a8] sm:$0xff] %v2670_v5  ;;  %v2671_v9 = vsel %vm2543_vm6, %v2479_v57, %v2607_v3  ;;  %v2482_v10 = vadd.f32 %v3973_v35, %v2411_v58  ;;  %v2483_v11 = vadd.f32 %v3973_v35, %v2412_v59  ;;  %v2608_v16 = vmul.f32 0.01, %v2480_v6 }
 0x2be   : > { %v2484_v12 = vadd.f32 %v3973_v35, %v2413_v60  ;;  %2735 = vst [vmem:[%s3708_s30 + $0x1b0] sm:$0xff] %v2671_v9  ;;  %vm2545_vm8 = vcmp.ge.f32.partialorder %v2481_v7, 0.0  ;;  %v2609_v17 = vmul.f32 0.01, %v2481_v7  ;;  %v2485_v25 = vadd.f32 %v3973_v35, %v2414_v8 }
 0x2bf   : > { %vm2546_vm9 = vcmp.ge.f32.partialorder %v2482_v10, 0.0  ;;  %v2610_v18 = vmul.f32 0.01, %v2482_v10  ;;  %vm2547_vm10 = vcmp.ge.f32.partialorder %v2483_v11, 0.0  ;;  %v2611_v19 = vmul.f32 0.01, %v2483_v11 }
 0x2c0   : > { %v2672_v20 = vsel %vm2544_vm7, %v2480_v6, %v2608_v16  ;;  %v2673_v21 = vsel %vm2545_vm8, %v2481_v7, %v2609_v17  ;;  %vm2548_vm11 = vcmp.ge.f32.partialorder %v2484_v12, 0.0  ;;  %v2612_v22 = vmul.f32 0.01, %v2484_v12 }
 0x2c1   : > { %2736 = vst [vmem:[%s3708_s30 + $0x1b8] sm:$0xff] %v2672_v20  ;;  %2737 = vst [vmem:[%s3708_s30 + $0x1c0] sm:$0xff] %v2673_v21  ;;  %v2674_v23 = vsel %vm2546_vm9, %v2482_v10, %v2610_v18  ;;  %v2675_v24 = vsel %vm2547_vm10, %v2483_v11, %v2611_v19  ;;  %v2486_v26 = vadd.f32 %v3973_v35, %v2415_v13  ;;  %vm2549_vm12 = vcmp.ge.f32.partialorder %v2485_v25, 0.0 }
 0x2c2   : > { %2738 = vst [vmem:[%s3708_s30 + $0x1c8] sm:$0xff] %v2674_v23  ;;  %2739 = vst [vmem:[%s3708_s30 + $0x1d0] sm:$0xff] %v2675_v24  ;;  %v2676_v27 = vsel %vm2548_vm11, %v2484_v12, %v2612_v22  ;;  %v2487_v28 = vadd.f32 %v3973_v35, %v2416_v14  ;;  %v2488_v29 = vadd.f32 %v3973_v35, %v2417_v15  ;;  %v2613_v30 = vmul.f32 0.01, %v2485_v25 }
 0x2c3   : > { %2740 = vst [vmem:[%s3708_s30 + $0x1d8] sm:$0xff] %v2676_v27  ;;  %vm2550_vm13 = vcmp.ge.f32.partialorder %v2486_v26, 0.0  ;;  %v2614_v31 = vmul.f32 0.01, %v2486_v26 }
 0x2c4   : > { %vm2551_vm14 = vcmp.ge.f32.partialorder %v2487_v28, 0.0  ;;  %v2615_v32 = vmul.f32 0.01, %v2487_v28  ;;  %vm2552_vm15 = vcmp.ge.f32.partialorder %v2488_v29, 0.0  ;;  %v2616_v33 = vmul.f32 0.01, %v2488_v29 }
 0x2c5   : > { %v2677_v34 = vsel %vm2549_vm12, %v2485_v25, %v2613_v30  ;;  %v2678_v36 = vsel %vm2550_vm13, %v2486_v26, %v2614_v31 }
 0x2c6   : > { %2741 = vst [vmem:[%s3708_s30 + $0x1e0] sm:$0xff] %v2677_v34  ;;  %2742 = vst [vmem:[%s3708_s30 + $0x1e8] sm:$0xff] %v2678_v36  ;;  %v2679_v37 = vsel %vm2551_vm14, %v2487_v28, %v2615_v32  ;;  %v2680_v38 = vsel %vm2552_vm15, %v2488_v29, %v2616_v33 }
 0x2c7   : > { %2743 = vst [vmem:[%s3708_s30 + $0x1f0] sm:$0xff] %v2679_v37  ;;  %2744 = vst [vmem:[%s3708_s30 + $0x1f8] sm:$0xff] %v2680_v38 }
 0x2c8 PF: > { %s13_s18 = sadd.s32 1, %s3351_s18   ;;  %s4128_s12 = smov %s3331_s13 }
 0x2c9   : > { %p10_p0 = scmp.ge.s32.totalorder %s13_s18, 6   ;;  %s4129_s13 = smov %s3426_s25 }
 0x2ca   : > { %s4130_s14 = smov %s3343_s16  ;;  %s4131_s15 = smov %s3347_s17 }
 0x2cb   : > { %s4132_s16 = smov %s4135_s19  ;;  %s4133_s17 = smov %s4139_s20 }
 0x2cc   :  { %12 = sbr.rel (!%p10_p0) target bundleno = 4 (0x4), region = 101 }

// kernel: discriminator_forward.5
= control target key start
LH: loop header
LB: loop body
LE: loop exit
PB: predicated region body
PF: predicated region fallthrough
CT: control target
= control target key end

     0   :  { %s1389_s1 = inlined_call_operand.vmem [shape: bf16[512,128], index: 1, kind: input, shape index: {}]   ;;  %s1390_s0 = inlined_call_operand.vmem [shape: bf16[128,512], index: 0, kind: input, shape index: {}]   ;;  %s1391_s2 = inlined_call_operand.vmem [shape: f32[1,128], index: 2, kind: input, shape index: {}]   ;;  %s1392_s3 = inlined_call_operand.vmem [shape: f32[128,128], index: 3, kind: output, shape index: {}]  }
   0x1   :  { %v1028_v0 = vld [vmem:[%s1389_s1 + $0x40] sm:$0xff]   ;;  %v1032_v4 = vld [vmem:[%s1389_s1 + $0x48] sm:$0xff]   ;;  %v1036_v8 = vld [vmem:[%s1389_s1 + $0x50] sm:$0xff]  }
   0x2   :  { %v1029_v1 = vld [vmem:[%s1389_s1 + $0xc0] sm:$0xff]   ;;  %900 = vmatprep.subr.bf16.mxu0 %v1028_v0  ;;  %v1033_v5 = vld [vmem:[%s1389_s1 + $0xc8] sm:$0xff]   ;;  %v1037_v9 = vld [vmem:[%s1389_s1 + $0xd0] sm:$0xff]  }
   0x3   :  { %v1030_v2 = vld [vmem:[%s1389_s1] sm:$0xff]   ;;  %964 = vmatprep.subr.bf16.mxu1 %v1029_v1  ;;  %v1034_v6 = vld [vmem:[%s1389_s1 + $0x8] sm:$0xff]   ;;  %v1038_v10 = vld [vmem:[%s1389_s1 + $0x10] sm:$0xff]  }
   0x4   :  { %v1031_v3 = vld [vmem:[%s1389_s1 + $0x80] sm:$0xff]   ;;  %901 = vmatpush3.bf16.msra.mxu0 %v1030_v2  ;;  %v1035_v7 = vld [vmem:[%s1389_s1 + $0x88] sm:$0xff]   ;;  %v1039_v11 = vld [vmem:[%s1389_s1 + $0x90] sm:$0xff]  }
   0x5   :  { %965 = vmatpush3.bf16.msra.mxu1 %v1031_v3  ;;  %902 = vmatprep.subr.bf16.mxu0 %v1032_v4  ;;  %v1040_v12 = vld [vmem:[%s1389_s1 + $0x58] sm:$0xff]   ;;  %v1044_v16 = vld [vmem:[%s1389_s1 + $0x60] sm:$0xff]   ;;  %v1048_v20 = vld [vmem:[%s1389_s1 + $0x68] sm:$0xff]  }
   0x6   :  { %966 = vmatprep.subr.bf16.mxu1 %v1033_v5  ;;  %v1041_v13 = vld [vmem:[%s1389_s1 + $0xd8] sm:$0xff]   ;;  %v1045_v17 = vld [vmem:[%s1389_s1 + $0xe0] sm:$0xff]   ;;  %v1049_v21 = vld [vmem:[%s1389_s1 + $0xe8] sm:$0xff]  }
   0x7   :  { %v1042_v14 = vld [vmem:[%s1389_s1 + $0x18] sm:$0xff]   ;;  %v1046_v18 = vld [vmem:[%s1389_s1 + $0x20] sm:$0xff]   ;;  %v1050_v22 = vld [vmem:[%s1389_s1 + $0x28] sm:$0xff]  }
   0x8   :  { %903 = vmatpush3.bf16.msra.mxu0 %v1034_v6  ;;  %v1043_v15 = vld [vmem:[%s1389_s1 + $0x98] sm:$0xff]   ;;  %v1047_v19 = vld [vmem:[%s1389_s1 + $0xa0] sm:$0xff]   ;;  %v1051_v23 = vld [vmem:[%s1389_s1 + $0xa8] sm:$0xff]  }
   0x9   :  { %967 = vmatpush3.bf16.msra.mxu1 %v1035_v7  ;;  %904 = vmatprep.subr.bf16.mxu0 %v1036_v8  ;;  %v1052_v24 = vld [vmem:[%s1389_s1 + $0x70] sm:$0xff]   ;;  %v1056_v28 = vld [vmem:[%s1389_s1 + $0x78] sm:$0xff]  }
   0xa   :  { %968 = vmatprep.subr.bf16.mxu1 %v1037_v9  ;;  %v1053_v25 = vld [vmem:[%s1389_s1 + $0xf0] sm:$0xff]   ;;  %v1057_v29 = vld [vmem:[%s1389_s1 + $0xf8] sm:$0xff]   ;;  %v1323_v9 = vld [vmem:[%s1391_s2] ss:$0 sm:$0xff] }
   0xb   :  { %v1054_v26 = vld [vmem:[%s1389_s1 + $0x30] sm:$0xff]   ;;  %v1058_v30 = vld [vmem:[%s1389_s1 + $0x38] sm:$0xff]  }
   0xc   :  { %905 = vmatpush3.bf16.msra.mxu0 %v1038_v10  ;;  %v1055_v27 = vld [vmem:[%s1389_s1 + $0xb0] sm:$0xff]   ;;  %v1059_v31 = vld [vmem:[%s1389_s1 + $0xb8] sm:$0xff]  }
   0xd   :  { %969 = vmatpush3.bf16.msra.mxu1 %v1039_v11  ;;  %906 = vmatprep.subr.bf16.mxu0 %v1040_v12  ;;  %v1060_v32 = vld [vmem:[%s1390_s0] ss:$16 sps:$4 sm:$0xff]   ;;  %v1062_v33 = vld [vmem:[%s1390_s0 + $0x4] ss:$16 sps:$4 sm:$0xff]   ;;  %v1063_v34 = vld [vmem:[%s1390_s0 + $0x8] ss:$16 sps:$4 sm:$0xff]  }
   0xe   :  { %970 = vmatprep.subr.bf16.mxu1 %v1041_v13  ;;  %v1065_v35 = vld [vmem:[%s1390_s0 + $0xc] ss:$16 sps:$4 sm:$0xff]   ;;  %531 = vmatprep.mubr.bf16.mxu0 %v1062_v33  ;;  %v1066_v36 = vld [vmem:[%s1390_s0 + $0x24] ss:$16 sps:$4 sm:$0xff]   ;;  %v1070_v38 = vld [vmem:[%s1390_s0 + $0x20] ss:$16 sps:$4 sm:$0xff]  }
   0xf   :  { %628 = vmatprep.mubr.bf16.mxu1 %v1065_v35  ;;  %v1068_v37 = vld [vmem:[%s1390_s0 + $0x2c] ss:$16 sps:$4 sm:$0xff]   ;;  %v1071_v39 = vld [vmem:[%s1390_s0 + $0x28] ss:$16 sps:$4 sm:$0xff]   ;;  %v1072_v40 = vld [vmem:[%s1390_s0 + $0x44] ss:$16 sps:$4 sm:$0xff]  }
  0x10   :  { %907 = vmatpush3.bf16.msra.mxu0 %v1042_v14  ;;  %v1074_v41 = vld [vmem:[%s1390_s0 + $0x4c] ss:$16 sps:$4 sm:$0xff]   ;;  %v1076_v42 = vld [vmem:[%s1390_s0 + $0x40] ss:$16 sps:$4 sm:$0xff]   ;;  %v1077_v43 = vld [vmem:[%s1390_s0 + $0x48] ss:$16 sps:$4 sm:$0xff]  }
  0x11   :  { %971 = vmatpush3.bf16.msra.mxu1 %v1043_v15  ;;  %908 = vmatprep.subr.bf16.mxu0 %v1044_v16  ;;  %v1078_v44 = vld [vmem:[%s1390_s0 + $0x64] ss:$16 sps:$4 sm:$0xff]   ;;  %v1080_v45 = vld [vmem:[%s1390_s0 + $0x6c] ss:$16 sps:$4 sm:$0xff]   ;;  %v1082_v46 = vld [vmem:[%s1390_s0 + $0x60] ss:$16 sps:$4 sm:$0xff]  }
  0x12   :  { %972 = vmatprep.subr.bf16.mxu1 %v1045_v17  ;;  %v1083_v47 = vld [vmem:[%s1390_s0 + $0x68] ss:$16 sps:$4 sm:$0xff]   ;;  %v1084_v48 = vld [vmem:[%s1390_s0 + $0x84] ss:$16 sps:$4 sm:$0xff]   ;;  %v1086_v49 = vld [vmem:[%s1390_s0 + $0x8c] ss:$16 sps:$4 sm:$0xff]  }
  0x13   :  { %v1088_v50 = vld [vmem:[%s1390_s0 + $0x80] ss:$16 sps:$4 sm:$0xff]   ;;  %v1089_v51 = vld [vmem:[%s1390_s0 + $0x88] ss:$16 sps:$4 sm:$0xff]   ;;  %v1090_v52 = vld [vmem:[%s1390_s0 + $0xa4] ss:$16 sps:$4 sm:$0xff]  }
  0x14   :  { %909 = vmatpush3.bf16.msra.mxu0 %v1046_v18  ;;  %v1092_v53 = vld [vmem:[%s1390_s0 + $0xac] ss:$16 sps:$4 sm:$0xff]   ;;  %v1094_v54 = vld [vmem:[%s1390_s0 + $0xa0] ss:$16 sps:$4 sm:$0xff]   ;;  %v1095_v55 = vld [vmem:[%s1390_s0 + $0xa8] ss:$16 sps:$4 sm:$0xff]  }
  0x15   :  { %973 = vmatpush3.bf16.msra.mxu1 %v1047_v19  ;;  %910 = vmatprep.subr.bf16.mxu0 %v1048_v20  ;;  %v1096_v56 = vld [vmem:[%s1390_s0 + $0xc4] ss:$16 sps:$4 sm:$0xff]   ;;  %v1098_v57 = vld [vmem:[%s1390_s0 + $0xcc] ss:$16 sps:$4 sm:$0xff]   ;;  %v1100_v58 = vld [vmem:[%s1390_s0 + $0xc0] ss:$16 sps:$4 sm:$0xff]  }
  0x16   :  { %974 = vmatprep.subr.bf16.mxu1 %v1049_v21  ;;  %v1101_v59 = vld [vmem:[%s1390_s0 + $0xc8] ss:$16 sps:$4 sm:$0xff]   ;;  %v1102_v60 = vld [vmem:[%s1390_s0 + $0xe4] ss:$16 sps:$4 sm:$0xff]   ;;  %v1104_v61 = vld [vmem:[%s1390_s0 + $0xec] ss:$16 sps:$4 sm:$0xff]  }
  0x17   :  { %v1106_v62 = vld [vmem:[%s1390_s0 + $0xe0] ss:$16 sps:$4 sm:$0xff]   ;;  %v1107_v63 = vld [vmem:[%s1390_s0 + $0xe8] ss:$16 sps:$4 sm:$0xff]  }
  0x18   :  { %911 = vmatpush3.bf16.msra.mxu0 %v1050_v22 }
  0x19   :  { %975 = vmatpush3.bf16.msra.mxu1 %v1051_v23  ;;  %912 = vmatprep.subr.bf16.mxu0 %v1052_v24 }
  0x1a   :  { %976 = vmatprep.subr.bf16.mxu1 %v1053_v25 }
  0x1c   :  { %913 = vmatpush3.bf16.msra.mxu0 %v1054_v26 }
  0x1d   :  { %977 = vmatpush3.bf16.msra.mxu1 %v1055_v27  ;;  %914 = vmatprep.subr.bf16.mxu0 %v1056_v28 }
  0x1e   :  { %978 = vmatprep.subr.bf16.mxu1 %v1057_v29 }
  0x20   :  { %915 = vmatpush3.bf16.msra.mxu0 %v1058_v30 }
  0x21   :  { %979 = vmatpush3.bf16.msra.mxu1 %v1059_v31 }
  0x23   :  { %532 = vmatmul.mubr.bf16.vlgmr.msra.gmra.mrb[0].mxu0 %v1060_v32 }
  0x24   :  { %629 = vmatmul.mubr.bf16.vlgmr.msra.gmra.mrb[0].mxu1 %v1063_v34  ;;  %539 = vmatprep.mubr.bf16.mxu0 %v1066_v36 }
  0x25   :  { %636 = vmatprep.mubr.bf16.mxu1 %v1068_v37 }
  0x2b   :  { %540 = vmatmul.mubr.bf16.gmra.mrb[4].mxu0 %v1070_v38 }
  0x2c   :  { %637 = vmatmul.mubr.bf16.gmra.mrb[4].mxu1 %v1071_v39  ;;  %547 = vmatprep.mubr.bf16.mxu0 %v1072_v40 }
  0x2d   :  { %644 = vmatprep.mubr.bf16.mxu1 %v1074_v41 }
  0x33   :  { %548 = vmatmul.mubr.bf16.gmra.mrb[8].mxu0 %v1076_v42 }
  0x34   :  { %645 = vmatmul.mubr.bf16.gmra.mrb[8].mxu1 %v1077_v43  ;;  %555 = vmatprep.mubr.bf16.mxu0 %v1078_v44 }
  0x35   :  { %652 = vmatprep.mubr.bf16.mxu1 %v1080_v45 }
  0x3b   :  { %556 = vmatmul.mubr.bf16.gmra.mrb[12].mxu0 %v1082_v46 }
  0x3c   :  { %653 = vmatmul.mubr.bf16.gmra.mrb[12].mxu1 %v1083_v47  ;;  %563 = vmatprep.mubr.bf16.mxu0 %v1084_v48 }
  0x3d   :  { %660 = vmatprep.mubr.bf16.mxu1 %v1086_v49 }
  0x43   :  { %564 = vmatmul.mubr.bf16.gmra.mrb[16].mxu0 %v1088_v50 }
  0x44   :  { %661 = vmatmul.mubr.bf16.gmra.mrb[16].mxu1 %v1089_v51  ;;  %571 = vmatprep.mubr.bf16.mxu0 %v1090_v52 }
  0x45   :  { %668 = vmatprep.mubr.bf16.mxu1 %v1092_v53 }
  0x4b   :  { %572 = vmatmul.mubr.bf16.gmra.mrb[20].mxu0 %v1094_v54 }
  0x4c   :  { %669 = vmatmul.mubr.bf16.gmra.mrb[20].mxu1 %v1095_v55  ;;  %579 = vmatprep.mubr.bf16.mxu0 %v1096_v56 }
  0x4d   :  { %676 = vmatprep.mubr.bf16.mxu1 %v1098_v57 }
  0x53   :  { %580 = vmatmul.mubr.bf16.gmra.mrb[24].mxu0 %v1100_v58 }
  0x54   :  { %677 = vmatmul.mubr.bf16.gmra.mrb[24].mxu1 %v1101_v59  ;;  %587 = vmatprep.mubr.bf16.mxu0 %v1102_v60 }
  0x55   :  { %684 = vmatprep.mubr.bf16.mxu1 %v1104_v61 }
  0x5b   :  { %588 = vmatmul.mubr.bf16.gmra.mrb[28].mxu0 %v1106_v62 }
  0x5c   :  { %685 = vmatmul.mubr.bf16.gmra.mrb[28].mxu1 %v1107_v63 }
  0xf6   :  { %v916_v0 = vpop.f32.mrb[0].mxu0 }
  0xf7   :  { %v980_v1 = vpop.f32.mrb[0].mxu1  ;;  %v917_v2 = vpop.f32.mrb[1].mxu0 }
  0xf8   :  { %v918_v3 = vadd.f32 %v917_v2, %v916_v0  ;;  %v981_v4 = vpop.f32.mrb[1].mxu1  ;;  %v919_v5 = vpop.f32.mrb[2].mxu0 }
  0xf9   :  { %v982_v6 = vadd.f32 %v981_v4, %v980_v1  ;;  %v983_v7 = vpop.f32.mrb[2].mxu1  ;;  %v920_v8 = vpop.f32.mrb[3].mxu0 }
  0xfa   :  { %v921_v10 = vadd.f32 %v920_v8, %v919_v5  ;;  %v984_v11 = vpop.f32.mrb[3].mxu1 }
  0xfb   :  { %v631_v12 = vadd.f32 %v982_v6, %v918_v3  ;;  %v985_v13 = vadd.f32 %v984_v11, %v983_v7 }
  0xfd   :  { %v751_v14 = vadd.f32 %v1323_v9, %v631_v12  ;;  %v634_v15 = vadd.f32 %v985_v13, %v921_v10 }
  0xfe   :  { %v922_v16 = vpop.f32.mrb[4].mxu0 }
  0xff   :  { %vm767_vm0 = vcmp.ge.f32.partialorder %v751_v14, 0.0  ;;  %v783_v17 = vmul.f32 0.01, %v751_v14  ;;  %v752_v18 = vadd.f32 %v1323_v9, %v634_v15  ;;  %v986_v19 = vpop.f32.mrb[4].mxu1  ;;  %v923_v20 = vpop.f32.mrb[5].mxu0 }
 0x100   :  { %v924_v21 = vadd.f32 %v923_v20, %v922_v16  ;;  %v987_v22 = vpop.f32.mrb[5].mxu1  ;;  %v925_v23 = vpop.f32.mrb[6].mxu0 }
 0x101   :  { %v799_v24 = vsel %vm767_vm0, %v751_v14, %v783_v17  ;;  %vm768_vm1 = vcmp.ge.f32.partialorder %v752_v18, 0.0  ;;  %v784_v25 = vmul.f32 0.01, %v752_v18  ;;  %v988_v26 = vadd.f32 %v987_v22, %v986_v19  ;;  %v989_v27 = vpop.f32.mrb[6].mxu1  ;;  %v926_v28 = vpop.f32.mrb[7].mxu0 }
 0x102   :  { %815 = vst [vmem:[%s1392_s3] sm:$0xff] %v799_v24  ;;  %v927_v29 = vadd.f32 %v926_v28, %v925_v23  ;;  %v990_v30 = vpop.f32.mrb[7].mxu1 }
 0x103   :  { %v800_v31 = vsel %vm768_vm1, %v752_v18, %v784_v25  ;;  %v639_v32 = vadd.f32 %v988_v26, %v924_v21  ;;  %v991_v33 = vadd.f32 %v990_v30, %v989_v27 }
 0x104   :  { %816 = vst [vmem:[%s1392_s3 + $0x8] sm:$0xff] %v800_v31 }
 0x105   :  { %v753_v34 = vadd.f32 %v1323_v9, %v639_v32  ;;  %v642_v35 = vadd.f32 %v991_v33, %v927_v29 }
 0x106   :  { %v928_v36 = vpop.f32.mrb[8].mxu0 }
 0x107   :  { %vm769_vm2 = vcmp.ge.f32.partialorder %v753_v34, 0.0  ;;  %v785_v37 = vmul.f32 0.01, %v753_v34  ;;  %v754_v38 = vadd.f32 %v1323_v9, %v642_v35  ;;  %v992_v39 = vpop.f32.mrb[8].mxu1  ;;  %v929_v40 = vpop.f32.mrb[9].mxu0 }
 0x108   :  { %v930_v41 = vadd.f32 %v929_v40, %v928_v36  ;;  %v993_v42 = vpop.f32.mrb[9].mxu1  ;;  %v931_v43 = vpop.f32.mrb[10].mxu0 }
 0x109   :  { %v801_v44 = vsel %vm769_vm2, %v753_v34, %v785_v37  ;;  %vm770_vm3 = vcmp.ge.f32.partialorder %v754_v38, 0.0  ;;  %v786_v45 = vmul.f32 0.01, %v754_v38  ;;  %v994_v46 = vadd.f32 %v993_v42, %v992_v39  ;;  %v995_v47 = vpop.f32.mrb[10].mxu1  ;;  %v932_v48 = vpop.f32.mrb[11].mxu0 }
 0x10a   :  { %817 = vst [vmem:[%s1392_s3 + $0x10] sm:$0xff] %v801_v44  ;;  %v933_v49 = vadd.f32 %v932_v48, %v931_v43  ;;  %v996_v50 = vpop.f32.mrb[11].mxu1 }
 0x10b   :  { %v802_v51 = vsel %vm770_vm3, %v754_v38, %v786_v45  ;;  %v647_v52 = vadd.f32 %v994_v46, %v930_v41  ;;  %v997_v53 = vadd.f32 %v996_v50, %v995_v47 }
 0x10c   :  { %818 = vst [vmem:[%s1392_s3 + $0x18] sm:$0xff] %v802_v51 }
 0x10d   :  { %v755_v54 = vadd.f32 %v1323_v9, %v647_v52  ;;  %v650_v55 = vadd.f32 %v997_v53, %v933_v49 }
 0x10e   :  { %v934_v56 = vpop.f32.mrb[12].mxu0 }
 0x10f   :  { %vm771_vm4 = vcmp.ge.f32.partialorder %v755_v54, 0.0  ;;  %v787_v57 = vmul.f32 0.01, %v755_v54  ;;  %v756_v58 = vadd.f32 %v1323_v9, %v650_v55  ;;  %v998_v59 = vpop.f32.mrb[12].mxu1  ;;  %v935_v60 = vpop.f32.mrb[13].mxu0 }
 0x110   :  { %v936_v61 = vadd.f32 %v935_v60, %v934_v56  ;;  %v999_v62 = vpop.f32.mrb[13].mxu1  ;;  %v937_v63 = vpop.f32.mrb[14].mxu0 }
 0x111   :  { %v803_v0 = vsel %vm771_vm4, %v755_v54, %v787_v57  ;;  %vm772_vm5 = vcmp.ge.f32.partialorder %v756_v58, 0.0  ;;  %v788_v1 = vmul.f32 0.01, %v756_v58  ;;  %v1000_v2 = vadd.f32 %v999_v62, %v998_v59  ;;  %v1001_v3 = vpop.f32.mrb[14].mxu1  ;;  %v938_v4 = vpop.f32.mrb[15].mxu0 }
 0x112   :  { %819 = vst [vmem:[%s1392_s3 + $0x20] sm:$0xff] %v803_v0  ;;  %v939_v5 = vadd.f32 %v938_v4, %v937_v63  ;;  %v1002_v6 = vpop.f32.mrb[15].mxu1 }
 0x113   :  { %v804_v7 = vsel %vm772_vm5, %v756_v58, %v788_v1  ;;  %v655_v8 = vadd.f32 %v1000_v2, %v936_v61  ;;  %v1003_v10 = vadd.f32 %v1002_v6, %v1001_v3 }
 0x114   :  { %820 = vst [vmem:[%s1392_s3 + $0x28] sm:$0xff] %v804_v7 }
 0x115   :  { %v757_v11 = vadd.f32 %v1323_v9, %v655_v8  ;;  %v658_v12 = vadd.f32 %v1003_v10, %v939_v5 }
 0x116   :  { %v940_v13 = vpop.f32.mrb[16].mxu0 }
 0x117   :  { %vm773_vm6 = vcmp.ge.f32.partialorder %v757_v11, 0.0  ;;  %v789_v14 = vmul.f32 0.01, %v757_v11  ;;  %v758_v15 = vadd.f32 %v1323_v9, %v658_v12  ;;  %v1004_v16 = vpop.f32.mrb[16].mxu1  ;;  %v941_v17 = vpop.f32.mrb[17].mxu0 }
 0x118   :  { %v942_v18 = vadd.f32 %v941_v17, %v940_v13  ;;  %v1005_v19 = vpop.f32.mrb[17].mxu1  ;;  %v943_v20 = vpop.f32.mrb[18].mxu0 }
 0x119   :  { %v805_v21 = vsel %vm773_vm6, %v757_v11, %v789_v14  ;;  %vm774_vm7 = vcmp.ge.f32.partialorder %v758_v15, 0.0  ;;  %v790_v22 = vmul.f32 0.01, %v758_v15  ;;  %v1006_v23 = vadd.f32 %v1005_v19, %v1004_v16  ;;  %v1007_v24 = vpop.f32.mrb[18].mxu1  ;;  %v944_v25 = vpop.f32.mrb[19].mxu0 }
 0x11a   :  { %821 = vst [vmem:[%s1392_s3 + $0x30] sm:$0xff] %v805_v21  ;;  %v945_v26 = vadd.f32 %v944_v25, %v943_v20  ;;  %v1008_v27 = vpop.f32.mrb[19].mxu1 }
 0x11b   :  { %v806_v28 = vsel %vm774_vm7, %v758_v15, %v790_v22  ;;  %v663_v29 = vadd.f32 %v1006_v23, %v942_v18  ;;  %v1009_v30 = vadd.f32 %v1008_v27, %v1007_v24 }
 0x11c   :  { %822 = vst [vmem:[%s1392_s3 + $0x38] sm:$0xff] %v806_v28 }
 0x11d   :  { %v759_v31 = vadd.f32 %v1323_v9, %v663_v29  ;;  %v666_v32 = vadd.f32 %v1009_v30, %v945_v26 }
 0x11e   :  { %v946_v33 = vpop.f32.mrb[20].mxu0 }
 0x11f   :  { %vm775_vm8 = vcmp.ge.f32.partialorder %v759_v31, 0.0  ;;  %v791_v34 = vmul.f32 0.01, %v759_v31  ;;  %v760_v35 = vadd.f32 %v1323_v9, %v666_v32  ;;  %v1010_v36 = vpop.f32.mrb[20].mxu1  ;;  %v947_v37 = vpop.f32.mrb[21].mxu0 }
 0x120   :  { %v948_v38 = vadd.f32 %v947_v37, %v946_v33  ;;  %v1011_v39 = vpop.f32.mrb[21].mxu1  ;;  %v949_v40 = vpop.f32.mrb[22].mxu0 }
 0x121   :  { %v807_v41 = vsel %vm775_vm8, %v759_v31, %v791_v34  ;;  %vm776_vm9 = vcmp.ge.f32.partialorder %v760_v35, 0.0  ;;  %v792_v42 = vmul.f32 0.01, %v760_v35  ;;  %v1012_v43 = vadd.f32 %v1011_v39, %v1010_v36  ;;  %v1013_v44 = vpop.f32.mrb[22].mxu1  ;;  %v950_v45 = vpop.f32.mrb[23].mxu0 }
 0x122   :  { %823 = vst [vmem:[%s1392_s3 + $0x40] sm:$0xff] %v807_v41  ;;  %v951_v46 = vadd.f32 %v950_v45, %v949_v40  ;;  %v1014_v47 = vpop.f32.mrb[23].mxu1 }
 0x123   :  { %v808_v48 = vsel %vm776_vm9, %v760_v35, %v792_v42  ;;  %v671_v49 = vadd.f32 %v1012_v43, %v948_v38  ;;  %v1015_v50 = vadd.f32 %v1014_v47, %v1013_v44 }
 0x124   :  { %824 = vst [vmem:[%s1392_s3 + $0x48] sm:$0xff] %v808_v48 }
 0x125   :  { %v761_v51 = vadd.f32 %v1323_v9, %v671_v49  ;;  %v674_v52 = vadd.f32 %v1015_v50, %v951_v46 }
 0x126   :  { %v952_v53 = vpop.f32.mrb[24].mxu0 }
 0x127   :  { %vm777_vm10 = vcmp.ge.f32.partialorder %v761_v51, 0.0  ;;  %v793_v54 = vmul.f32 0.01, %v761_v51  ;;  %v762_v55 = vadd.f32 %v1323_v9, %v674_v52  ;;  %v1016_v56 = vpop.f32.mrb[24].mxu1  ;;  %v953_v57 = vpop.f32.mrb[25].mxu0 }
 0x128   :  { %v954_v58 = vadd.f32 %v953_v57, %v952_v53  ;;  %v1017_v59 = vpop.f32.mrb[25].mxu1  ;;  %v955_v60 = vpop.f32.mrb[26].mxu0 }
 0x129   :  { %v809_v61 = vsel %vm777_vm10, %v761_v51, %v793_v54  ;;  %vm778_vm11 = vcmp.ge.f32.partialorder %v762_v55, 0.0  ;;  %v794_v62 = vmul.f32 0.01, %v762_v55  ;;  %v1018_v63 = vadd.f32 %v1017_v59, %v1016_v56  ;;  %v1019_v0 = vpop.f32.mrb[26].mxu1  ;;  %v956_v1 = vpop.f32.mrb[27].mxu0 }
 0x12a   :  { %825 = vst [vmem:[%s1392_s3 + $0x50] sm:$0xff] %v809_v61  ;;  %v957_v2 = vadd.f32 %v956_v1, %v955_v60  ;;  %v1020_v3 = vpop.f32.mrb[27].mxu1 }
 0x12b   :  { %v810_v4 = vsel %vm778_vm11, %v762_v55, %v794_v62  ;;  %v679_v5 = vadd.f32 %v1018_v63, %v954_v58  ;;  %v1021_v6 = vadd.f32 %v1020_v3, %v1019_v0 }
 0x12c   :  { %826 = vst [vmem:[%s1392_s3 + $0x58] sm:$0xff] %v810_v4 }
 0x12d   :  { %v763_v7 = vadd.f32 %v1323_v9, %v679_v5  ;;  %v682_v8 = vadd.f32 %v1021_v6, %v957_v2 }
 0x12e   :  { %v958_v10 = vpop.f32.mrb[28].mxu0 }
 0x12f   :  { %vm779_vm12 = vcmp.ge.f32.partialorder %v763_v7, 0.0  ;;  %v795_v11 = vmul.f32 0.01, %v763_v7  ;;  %v764_v12 = vadd.f32 %v1323_v9, %v682_v8  ;;  %v1022_v13 = vpop.f32.mrb[28].mxu1  ;;  %v959_v14 = vpop.f32.mrb[29].mxu0 }
 0x130   :  { %v960_v15 = vadd.f32 %v959_v14, %v958_v10  ;;  %v1023_v16 = vpop.f32.mrb[29].mxu1  ;;  %v961_v17 = vpop.f32.mrb[30].mxu0 }
 0x131   :  { %v811_v18 = vsel %vm779_vm12, %v763_v7, %v795_v11  ;;  %vm780_vm13 = vcmp.ge.f32.partialorder %v764_v12, 0.0  ;;  %v796_v19 = vmul.f32 0.01, %v764_v12  ;;  %v1024_v20 = vadd.f32 %v1023_v16, %v1022_v13  ;;  %v1025_v21 = vpop.f32.mrb[30].mxu1  ;;  %v962_v22 = vpop.f32.mrb[31].mxu0 }
 0x132   :  { %827 = vst [vmem:[%s1392_s3 + $0x60] sm:$0xff] %v811_v18  ;;  %v963_v23 = vadd.f32 %v962_v22, %v961_v17  ;;  %v1026_v24 = vpop.f32.mrb[31].mxu1 }
 0x133   :  { %v812_v25 = vsel %vm780_vm13, %v764_v12, %v796_v19  ;;  %v687_v26 = vadd.f32 %v1024_v20, %v960_v15  ;;  %v1027_v27 = vadd.f32 %v1026_v24, %v1025_v21 }
 0x134   :  { %828 = vst [vmem:[%s1392_s3 + $0x68] sm:$0xff] %v812_v25 }
 0x135   :  { %v765_v28 = vadd.f32 %v1323_v9, %v687_v26  ;;  %v690_v29 = vadd.f32 %v1027_v27, %v963_v23 }
 0x137   :  { %vm781_vm14 = vcmp.ge.f32.partialorder %v765_v28, 0.0  ;;  %v797_v30 = vmul.f32 0.01, %v765_v28  ;;  %v766_v31 = vadd.f32 %v1323_v9, %v690_v29 }
 0x139   :  { %v813_v32 = vsel %vm781_vm14, %v765_v28, %v797_v30  ;;  %vm782_vm15 = vcmp.ge.f32.partialorder %v766_v31, 0.0  ;;  %v798_v33 = vmul.f32 0.01, %v766_v31 }
 0x13a   :  { %829 = vst [vmem:[%s1392_s3 + $0x70] sm:$0xff] %v813_v32 }
 0x13b   :  { %v814_v34 = vsel %vm782_vm15, %v766_v31, %v798_v33 }
 0x13c   :  { %830 = vst [vmem:[%s1392_s3 + $0x78] sm:$0xff] %v814_v34 }

// kernel: discriminator_forward.7
= control target key start
LH: loop header
LB: loop body
LE: loop exit
PB: predicated region body
PF: predicated region fallthrough
CT: control target
= control target key end

     0   :  { %s871_s12 = smov 0   ;;  %s873_s13 = smov 0   ;;  %s954_s0 = inlined_call_operand.vmem [shape: bf16[8,1024], index: 0, kind: input, shape index: {}]   ;;  %s955_s1 = inlined_call_operand.vmem [shape: bf16[1024,128], index: 1, kind: input, shape index: {}]   ;;  %s956_s2 = inlined_call_operand.vmem [shape: f32[1,128], index: 2, kind: input, shape index: {}]   ;;  %s957_s3 = inlined_call_operand.vmem [shape: f32[8,128], index: 3, kind: output, shape index: {}]  }
   0x1   :  { %s875_s14 = smov 0  }
   0x2 LB: > { %s22_s15 = sadd.s32 1, %s844_s13  ;;  %p674_p0 = scmp.ge.s32.totalorder %s848_s14, 1  ;;  %s848_s14 = sphi %s875_s14, %s13_s14   ;;  %s844_s13 = sphi %s873_s13, %s959_s13   ;;  %s840_s12 = sphi %s871_s12, %s958_s12  }
   0x3   : > { %p23_p1 = scmp.ge.s32.totalorder %s22_s15, 2  ;;  %p167_p2 = scmp.lt.s32.totalorder %s848_s14, 3 }
   0x5   : > { %s961_s15 = smov (%p23_p1, %s22_s15), 0  ;;  %p168_p3 = pnand %p674_p0, %p167_p2 }
   0x6   : > { %s675_s16 = sshll.u32 (!%p168_p3), %s840_s12, 2  ;;  %s677_s17 = sshll.u32 (!%p168_p3), %s840_s12, 6 }
   0x7   : > { %171 = sbr.rel (%p168_p3) target bundleno = 289 (0x121), region = 32  ;;  %p202_p4 = scmp.lt.s32.totalorder (!%p168_p3), %s675_s16, 7 }
   0x8   : > { %p210_p5 = scmp.lt.s32.totalorder (!%p168_p3), %s677_s17, 127  ;;  %p679_p6 = scmp.ne.s32.totalorder (!%p168_p3), %s840_s12, 0 }
   0xe   : > { %s963_s16 = smov (!%p202_p4, %s675_s16), 7  ;;  %s965_s17 = smov (!%p210_p5, %s677_s17), 127 }
   0xf   : > { %s676_s18 = sshll.u32 %s963_s16, 2  ;;  %s678_s22 = sshll.u32 %s965_s17, 2  ;;  %v850_v0 = vmov (!%p679_p6), 0.0  }
  0x10   : > { %s896_s21 = scalar_lea.vmem %s954_s0, %s676_s18  ;;  %s901_s25 = scalar_lea.vmem %s955_s1, %s678_s22  ;;  %224 = vst [vmem:[#allocation2] sm:$0xff] (!%p679_p6), %v850_v0 }
  0x11   : > { %223 = sbr.rel (%p679_p6) target bundleno = 24 (0x18), region = 36 }
  0x18 PF: > { %v790_v1 = vld [vmem:[%s901_s25 + $0x40] sm:$0xff]   ;;  %v794_v5 = vld [vmem:[%s901_s25 + $0x48] sm:$0xff]   ;;  %v798_v9 = vld [vmem:[%s901_s25 + $0x50] sm:$0xff]   ;;  %p716_p7 = scmp.ne.s32.totalorder %s840_s12, 1 }
  0x19   : > { %v791_v2 = vld [vmem:[%s901_s25 + $0xc0] sm:$0xff]   ;;  %721 = vmatprep.subr.bf16.mxu0 %v790_v1  ;;  %v795_v6 = vld [vmem:[%s901_s25 + $0xc8] sm:$0xff]   ;;  %v799_v10 = vld [vmem:[%s901_s25 + $0xd0] sm:$0xff]  }
  0x1a   : > { %v792_v3 = vld [vmem:[%s901_s25] sm:$0xff]   ;;  %743 = vmatprep.subr.bf16.mxu1 %v791_v2  ;;  %v796_v7 = vld [vmem:[%s901_s25 + $0x8] sm:$0xff]   ;;  %v800_v11 = vld [vmem:[%s901_s25 + $0x10] sm:$0xff]  }
  0x1b   : > { %v793_v4 = vld [vmem:[%s901_s25 + $0x80] sm:$0xff]   ;;  %722 = vmatpush3.bf16.msra.mxu0 %v792_v3  ;;  %v797_v8 = vld [vmem:[%s901_s25 + $0x88] sm:$0xff]   ;;  %v801_v12 = vld [vmem:[%s901_s25 + $0x90] sm:$0xff]  }
  0x1c   : > { %744 = vmatpush3.bf16.msra.mxu1 %v793_v4  ;;  %723 = vmatprep.subr.bf16.mxu0 %v794_v5  ;;  %v802_v13 = vld [vmem:[%s901_s25 + $0x58] sm:$0xff]   ;;  %v806_v17 = vld [vmem:[%s901_s25 + $0x60] sm:$0xff]   ;;  %v810_v21 = vld [vmem:[%s901_s25 + $0x68] sm:$0xff]  }
  0x1d   : > { %745 = vmatprep.subr.bf16.mxu1 %v795_v6  ;;  %v803_v14 = vld [vmem:[%s901_s25 + $0xd8] sm:$0xff]   ;;  %v807_v18 = vld [vmem:[%s901_s25 + $0xe0] sm:$0xff]   ;;  %v811_v22 = vld [vmem:[%s901_s25 + $0xe8] sm:$0xff]  }
  0x1e   : > { %v804_v15 = vld [vmem:[%s901_s25 + $0x18] sm:$0xff]   ;;  %v808_v19 = vld [vmem:[%s901_s25 + $0x20] sm:$0xff]   ;;  %v812_v23 = vld [vmem:[%s901_s25 + $0x28] sm:$0xff]  }
  0x1f   : > { %724 = vmatpush3.bf16.msra.mxu0 %v796_v7  ;;  %v805_v16 = vld [vmem:[%s901_s25 + $0x98] sm:$0xff]   ;;  %v809_v20 = vld [vmem:[%s901_s25 + $0xa0] sm:$0xff]   ;;  %v813_v24 = vld [vmem:[%s901_s25 + $0xa8] sm:$0xff]  }
  0x20   : > { %746 = vmatpush3.bf16.msra.mxu1 %v797_v8  ;;  %725 = vmatprep.subr.bf16.mxu0 %v798_v9  ;;  %v814_v25 = vld [vmem:[%s901_s25 + $0x70] sm:$0xff]   ;;  %v818_v29 = vld [vmem:[%s901_s25 + $0x78] sm:$0xff]   ;;  %v226_v33 = vld [vmem:[%s896_s21] sm:$0xff] }
  0x21   : > { %747 = vmatprep.subr.bf16.mxu1 %v799_v10  ;;  %v815_v26 = vld [vmem:[%s901_s25 + $0xf0] sm:$0xff]   ;;  %v819_v30 = vld [vmem:[%s901_s25 + $0xf8] sm:$0xff]   ;;  %v227_v34 = vld [vmem:[%s896_s21 + $0x8] sm:$0xff]  ;;  %v680_v35 = vcombine.low %v226_v33, %v226_v33  ;;  %v681_v36 = vcombine.high %v226_v33, %v226_v33 }
  0x22   : > { %v816_v27 = vld [vmem:[%s901_s25 + $0x30] sm:$0xff]   ;;  %v820_v31 = vld [vmem:[%s901_s25 + $0x38] sm:$0xff]   ;;  %v682_v37 = vcombine.low %v227_v34, %v227_v34  ;;  %v683_v38 = vcombine.high %v227_v34, %v227_v34  ;;  %v225_v47 = vld [vmem:[#allocation2] sm:$0xff] }
  0x23   : > { %726 = vmatpush3.bf16.msra.mxu0 %v800_v11  ;;  %v817_v28 = vld [vmem:[%s901_s25 + $0xb0] sm:$0xff]   ;;  %v821_v32 = vld [vmem:[%s901_s25 + $0xb8] sm:$0xff]   ;;  %530 = vmatprep.mubr.bf16.mxu0 %v681_v36  ;;  %v717_v53 = vld [vmem:[%s956_s2] ss:$0 sm:$0xff] (!%p716_p7) }
  0x24   : > { %748 = vmatpush3.bf16.msra.mxu1 %v801_v12  ;;  %727 = vmatprep.subr.bf16.mxu0 %v802_v13 }
  0x25   : > { %749 = vmatprep.subr.bf16.mxu1 %v803_v14  ;;  %570 = vmatprep.mubr.bf16.mxu1 %v683_v38 }
  0x27   : > { %728 = vmatpush3.bf16.msra.mxu0 %v804_v15 }
  0x28   : > { %750 = vmatpush3.bf16.msra.mxu1 %v805_v16  ;;  %729 = vmatprep.subr.bf16.mxu0 %v806_v17 }
  0x29   : > { %751 = vmatprep.subr.bf16.mxu1 %v807_v18 }
  0x2b   : > { %730 = vmatpush3.bf16.msra.mxu0 %v808_v19 }
  0x2c   : > { %752 = vmatpush3.bf16.msra.mxu1 %v809_v20  ;;  %731 = vmatprep.subr.bf16.mxu0 %v810_v21 }
  0x2d   : > { %753 = vmatprep.subr.bf16.mxu1 %v811_v22 }
  0x2f   : > { %732 = vmatpush3.bf16.msra.mxu0 %v812_v23 }
  0x30   : > { %754 = vmatpush3.bf16.msra.mxu1 %v813_v24  ;;  %733 = vmatprep.subr.bf16.mxu0 %v814_v25 }
  0x31   : > { %755 = vmatprep.subr.bf16.mxu1 %v815_v26 }
  0x33   : > { %734 = vmatpush3.bf16.msra.mxu0 %v816_v27 }
  0x34   : > { %756 = vmatpush3.bf16.msra.mxu1 %v817_v28  ;;  %735 = vmatprep.subr.bf16.mxu0 %v818_v29 }
  0x35   : > { %757 = vmatprep.subr.bf16.mxu1 %v819_v30 }
  0x37   : > { %736 = vmatpush3.bf16.msra.mxu0 %v820_v31 }
  0x38   : > { %758 = vmatpush3.bf16.msra.mxu1 %v821_v32 }
  0x3a   : > { %531 = vmatmul.mubr.bf16.vlgmr.msra.gmra.mrb[0].mxu0 %v680_v35 }
  0x3b   : > { %571 = vmatmul.mubr.bf16.vlgmr.msra.gmra.mrb[0].mxu1 %v682_v37 }
 0x10d   : > { %v737_v39 = vpop.f32.mrb[0].mxu0 }
 0x10e   : > { %v759_v40 = vpop.f32.mrb[0].mxu1  ;;  %v738_v41 = vpop.f32.mrb[1].mxu0 }
 0x10f   : > { %v760_v42 = vpop.f32.mrb[1].mxu1  ;;  %v739_v43 = vadd.f32 %v738_v41, %v737_v39  ;;  %v740_v45 = vpop.f32.mrb[2].mxu0 }
 0x110   : > { %v761_v44 = vadd.f32 %v760_v42, %v759_v40  ;;  %v762_v46 = vpop.f32.mrb[2].mxu1  ;;  %v741_v48 = vpop.f32.mrb[3].mxu0  ;;  %583 = sbr.rel (%p716_p7) target bundleno = 289 (0x121), region = 40 }
 0x111   : > { %v763_v49 = vpop.f32.mrb[3].mxu1 }
 0x112   : > { %v573_v50 = vadd.f32 %v761_v44, %v739_v43 }
 0x114   : > { %v578_v51 = vadd.f32 %v573_v50, %v225_v47 }
 0x116   : > { %579 = vst [vmem:[#allocation2] sm:$0xff] %v578_v51 }
 0x11d   : > { %v584_v52 = vld [vmem:[#allocation2] sm:$0xff] }
 0x11e   : > { %v592_v54 = vadd.f32 %v717_v53, %v584_v52 }
 0x120   : > { %593 = vst [vmem:[%s957_s3] sm:$0xff] %v592_v54 }
 0x121 PF: > { %s13_s14 = sadd.s32 1, %s848_s14   ;;  %s958_s12 = smov %s844_s13 }
 0x122   : > { %p10_p8 = scmp.ge.s32.totalorder %s13_s14, 4   ;;  %s959_s13 = smov %s961_s15 }
 0x124   :  { %12 = sbr.rel (!%p10_p8) target bundleno = 2 (0x2), region = 73 }

// kernel: discriminator_forward.6
= control target key start
LH: loop header
LB: loop body
LE: loop exit
PB: predicated region body
PF: predicated region fallthrough
CT: control target
= control target key end

     0   :  { %v972_v0 = vmov 0   ;;  %vm451_vm0 = vcmask 392192   ;;  %s1258_s1 = inlined_call_operand.vmem [shape: bf16[432,128], index: 1, kind: input, shape index: {}]   ;;  %s1259_s0 = inlined_call_operand.vmem [shape: bf16[128,432], index: 0, kind: input, shape index: {}]   ;;  %s1260_s2 = inlined_call_operand.vmem [shape: f32[1,128], index: 2, kind: input, shape index: {}]   ;;  %s1261_s3 = inlined_call_operand.vmem [shape: f32[128,128], index: 3, kind: output, shape index: {}]  }
   0x1   :  { %573 = vmatprep.subr.bf16.mxu1 %v972_v0  ;;  %v897_v1 = vld [vmem:[%s1258_s1 + $0x80] sm:$0xff]   ;;  %v898_v2 = vld [vmem:[%s1258_s1 + $0x88] sm:$0xff]   ;;  %v901_v5 = vld [vmem:[%s1258_s1 + $0x90] sm:$0xff]  }
   0x2   :  { %574 = vmatpush1.bf16.msra.mxu1 %v897_v1  ;;  %v899_v3 = vld [vmem:[%s1258_s1 + $0x40] sm:$0xff]   ;;  %v902_v6 = vld [vmem:[%s1258_s1 + $0x48] sm:$0xff]   ;;  %v905_v8 = vld [vmem:[%s1258_s1 + $0x50] sm:$0xff]  }
   0x3   :  { %575 = vmatprep.subr.bf16.mxu1 %v972_v0  ;;  %v900_v4 = vld [vmem:[%s1258_s1] sm:$0xff]   ;;  %832 = vmatprep.subr.bf16.mxu0 %v899_v3  ;;  %v903_v7 = vld [vmem:[%s1258_s1 + $0x8] sm:$0xff]   ;;  %v906_v9 = vld [vmem:[%s1258_s1 + $0x10] sm:$0xff]  }
   0x4   :  { %833 = vmatpush3.bf16.msra.mxu0 %v900_v4  ;;  %v904_v10 = vld [vmem:[%s1258_s1 + $0x98] sm:$0xff]   ;;  %v907_v12 = vld [vmem:[%s1258_s1 + $0xa0] sm:$0xff]   ;;  %v910_v15 = vld [vmem:[%s1258_s1 + $0xa8] sm:$0xff]  }
   0x5   :  { %834 = vmatprep.subr.bf16.mxu0 %v902_v6  ;;  %v908_v11 = vld [vmem:[%s1258_s1 + $0x58] sm:$0xff]   ;;  %v911_v14 = vld [vmem:[%s1258_s1 + $0x60] sm:$0xff]   ;;  %v914_v17 = vld [vmem:[%s1258_s1 + $0x68] sm:$0xff]  }
   0x6   :  { %576 = vmatpush1.bf16.msra.mxu1 %v898_v2  ;;  %v909_v13 = vld [vmem:[%s1258_s1 + $0x18] sm:$0xff]   ;;  %v912_v16 = vld [vmem:[%s1258_s1 + $0x20] sm:$0xff]   ;;  %v913_v18 = vld [vmem:[%s1258_s1 + $0xb0] sm:$0xff]  }
   0x7   :  { %577 = vmatprep.subr.bf16.mxu1 %v972_v0  ;;  %v915_v19 = vld [vmem:[%s1258_s1 + $0x28] sm:$0xff]   ;;  %v917_v20 = vld [vmem:[%s1258_s1 + $0x70] sm:$0xff]   ;;  %v916_v21 = vld [vmem:[%s1258_s1 + $0xb8] sm:$0xff]  }
   0x8   :  { %835 = vmatpush3.bf16.msra.mxu0 %v903_v7  ;;  %v918_v22 = vld [vmem:[%s1258_s1 + $0x30] sm:$0xff]   ;;  %v920_v23 = vld [vmem:[%s1258_s1 + $0x78] sm:$0xff]   ;;  %v919_v27 = vld [vmem:[%s1258_s1 + $0xc0] sm:$0xff]  }
   0x9   :  { %836 = vmatprep.subr.bf16.mxu0 %v905_v8  ;;  %v924_v24 = vld [vmem:[%s1259_s0 + $0x4] ss:$16 sps:$4 sm:$0xff]   ;;  %v921_v25 = vld [vmem:[%s1258_s1 + $0x38] sm:$0xff]   ;;  %v922_v28 = vld [vmem:[%s1259_s0] ss:$16 sps:$4 sm:$0xff]  }
   0xa   :  { %578 = vmatpush1.bf16.msra.mxu1 %v901_v5  ;;  %508 = vmatprep.mubr.bf16.mxu0 %v924_v24  ;;  %v929_v26 = vld [vmem:[%s1259_s0 + $0xc] ss:$16 sps:$4 sm:$0xff]   ;;  %v930_v29 = vld [vmem:[%s1259_s0 + $0x24] ss:$16 sps:$4 sm:$0xff]   ;;  %v932_v32 = vld [vmem:[%s1259_s0 + $0x20] ss:$16 sps:$4 sm:$0xff]  }
   0xb   :  { %579 = vmatprep.subr.bf16.mxu1 %v972_v0  ;;  %823 = vmatprep.mubr.msk.bf16.mxu1 %vm451_vm0, %v929_v26  ;;  %v925_v30 = vld [vmem:[%s1258_s1 + $0xc8] sm:$0xff]   ;;  %v926_v31 = vld [vmem:[%s1258_s1 + $0xd0] sm:$0xff]   ;;  %v1192_v4 = vld [vmem:[%s1260_s2] ss:$0 sm:$0xff] }
   0xc   :  { %837 = vmatpush3.bf16.msra.mxu0 %v906_v9  ;;  %v927_v33 = vld [vmem:[%s1259_s0 + $0x8] ss:$16 sps:$4 sm:$0xff]   ;;  %v936_v34 = vld [vmem:[%s1259_s0 + $0x44] ss:$16 sps:$4 sm:$0xff]   ;;  %v933_v35 = vld [vmem:[%s1259_s0 + $0x2c] ss:$16 sps:$4 sm:$0xff]  }
   0xd   :  { %838 = vmatprep.subr.bf16.mxu0 %v908_v11  ;;  %v938_v36 = vld [vmem:[%s1259_s0 + $0x40] ss:$16 sps:$4 sm:$0xff]   ;;  %v935_v37 = vld [vmem:[%s1259_s0 + $0x28] ss:$16 sps:$4 sm:$0xff]   ;;  %v942_v38 = vld [vmem:[%s1259_s0 + $0x64] ss:$16 sps:$4 sm:$0xff]  }
   0xe   :  { %580 = vmatpush1.bf16.msra.mxu1 %v904_v10  ;;  %v939_v39 = vld [vmem:[%s1259_s0 + $0x4c] ss:$16 sps:$4 sm:$0xff]   ;;  %v944_v40 = vld [vmem:[%s1259_s0 + $0x60] ss:$16 sps:$4 sm:$0xff]   ;;  %v941_v41 = vld [vmem:[%s1259_s0 + $0x48] ss:$16 sps:$4 sm:$0xff]  }
   0xf   :  { %581 = vmatprep.subr.bf16.mxu1 %v972_v0  ;;  %v948_v42 = vld [vmem:[%s1259_s0 + $0x84] ss:$16 sps:$4 sm:$0xff]   ;;  %v945_v43 = vld [vmem:[%s1259_s0 + $0x6c] ss:$16 sps:$4 sm:$0xff]   ;;  %v950_v44 = vld [vmem:[%s1259_s0 + $0x80] ss:$16 sps:$4 sm:$0xff]  }
  0x10   :  { %839 = vmatpush3.bf16.msra.mxu0 %v909_v13  ;;  %v947_v45 = vld [vmem:[%s1259_s0 + $0x68] ss:$16 sps:$4 sm:$0xff]   ;;  %v954_v46 = vld [vmem:[%s1259_s0 + $0xa4] ss:$16 sps:$4 sm:$0xff]   ;;  %v951_v47 = vld [vmem:[%s1259_s0 + $0x8c] ss:$16 sps:$4 sm:$0xff]  }
  0x11   :  { %840 = vmatprep.subr.bf16.mxu0 %v911_v14  ;;  %v956_v48 = vld [vmem:[%s1259_s0 + $0xa0] ss:$16 sps:$4 sm:$0xff]   ;;  %v953_v49 = vld [vmem:[%s1259_s0 + $0x88] ss:$16 sps:$4 sm:$0xff]   ;;  %v960_v50 = vld [vmem:[%s1259_s0 + $0xc4] ss:$16 sps:$4 sm:$0xff]  }
  0x12   :  { %582 = vmatpush1.bf16.msra.mxu1 %v907_v12  ;;  %v957_v51 = vld [vmem:[%s1259_s0 + $0xac] ss:$16 sps:$4 sm:$0xff]   ;;  %v962_v52 = vld [vmem:[%s1259_s0 + $0xc0] ss:$16 sps:$4 sm:$0xff]   ;;  %v959_v53 = vld [vmem:[%s1259_s0 + $0xa8] ss:$16 sps:$4 sm:$0xff]  }
  0x13   :  { %583 = vmatprep.subr.bf16.mxu1 %v972_v0  ;;  %v966_v54 = vld [vmem:[%s1259_s0 + $0xe4] ss:$16 sps:$4 sm:$0xff]   ;;  %v963_v55 = vld [vmem:[%s1259_s0 + $0xcc] ss:$16 sps:$4 sm:$0xff]   ;;  %v968_v56 = vld [vmem:[%s1259_s0 + $0xe0] ss:$16 sps:$4 sm:$0xff]  }
  0x14   :  { %841 = vmatpush3.bf16.msra.mxu0 %v912_v16  ;;  %v965_v57 = vld [vmem:[%s1259_s0 + $0xc8] ss:$16 sps:$4 sm:$0xff]   ;;  %v969_v58 = vld [vmem:[%s1259_s0 + $0xec] ss:$16 sps:$4 sm:$0xff]  }
  0x15   :  { %842 = vmatprep.subr.bf16.mxu0 %v914_v17  ;;  %v971_v59 = vld [vmem:[%s1259_s0 + $0xe8] ss:$16 sps:$4 sm:$0xff]  }
  0x16   :  { %584 = vmatpush1.bf16.msra.mxu1 %v910_v15 }
  0x17   :  { %585 = vmatprep.subr.bf16.mxu1 %v972_v0 }
  0x18   :  { %843 = vmatpush3.bf16.msra.mxu0 %v915_v19 }
  0x19   :  { %844 = vmatprep.subr.bf16.mxu0 %v917_v20 }
  0x1a   :  { %586 = vmatpush1.bf16.msra.mxu1 %v913_v18 }
  0x1b   :  { %587 = vmatprep.subr.bf16.mxu1 %v972_v0 }
  0x1c   :  { %845 = vmatpush3.bf16.msra.mxu0 %v918_v22 }
  0x1d   :  { %846 = vmatprep.subr.bf16.mxu0 %v920_v23 }
  0x1e   :  { %588 = vmatpush1.bf16.msra.mxu1 %v916_v21 }
  0x1f   :  { %589 = vmatprep.subr.bf16.mxu1 %v972_v0 }
  0x20   :  { %847 = vmatpush3.bf16.msra.mxu0 %v921_v25 }
  0x22   :  { %590 = vmatpush1.bf16.msra.mxu1 %v919_v27 }
  0x23   :  { %591 = vmatprep.subr.bf16.mxu1 %v972_v0  ;;  %509 = vmatmul.mubr.bf16.vlgmr.msra.gmra.mrb[0].mxu0 %v922_v28 }
  0x24   :  { %516 = vmatprep.mubr.bf16.mxu0 %v930_v29 }
  0x26   :  { %592 = vmatpush1.bf16.msra.mxu1 %v925_v30 }
  0x27   :  { %593 = vmatprep.subr.bf16.mxu1 %v972_v0 }
  0x2a   :  { %594 = vmatpush1.bf16.msra.mxu1 %v926_v31 }
  0x2b   :  { %517 = vmatmul.mubr.bf16.gmra.mrb[4].mxu0 %v932_v32 }
  0x2c   :  { %524 = vmatprep.mubr.bf16.mxu0 %v936_v34 }
  0x2d   :  { %606 = vmatmul.mubr.bf16.vlgmr.msra.gmra.mrb[0].mxu1 %v927_v33 }
  0x2e   :  { %824 = vmatprep.mubr.msk.bf16.mxu1 %vm451_vm0, %v933_v35 }
  0x33   :  { %525 = vmatmul.mubr.bf16.gmra.mrb[8].mxu0 %v938_v36 }
  0x34   :  { %532 = vmatprep.mubr.bf16.mxu0 %v942_v38 }
  0x35   :  { %614 = vmatmul.mubr.bf16.gmra.mrb[4].mxu1 %v935_v37 }
  0x36   :  { %825 = vmatprep.mubr.msk.bf16.mxu1 %vm451_vm0, %v939_v39 }
  0x3b   :  { %533 = vmatmul.mubr.bf16.gmra.mrb[12].mxu0 %v944_v40 }
  0x3c   :  { %540 = vmatprep.mubr.bf16.mxu0 %v948_v42 }
  0x3d   :  { %622 = vmatmul.mubr.bf16.gmra.mrb[8].mxu1 %v941_v41 }
  0x3e   :  { %826 = vmatprep.mubr.msk.bf16.mxu1 %vm451_vm0, %v945_v43 }
  0x43   :  { %541 = vmatmul.mubr.bf16.gmra.mrb[16].mxu0 %v950_v44 }
  0x44   :  { %548 = vmatprep.mubr.bf16.mxu0 %v954_v46 }
  0x45   :  { %630 = vmatmul.mubr.bf16.gmra.mrb[12].mxu1 %v947_v45 }
  0x46   :  { %827 = vmatprep.mubr.msk.bf16.mxu1 %vm451_vm0, %v951_v47 }
  0x4b   :  { %549 = vmatmul.mubr.bf16.gmra.mrb[20].mxu0 %v956_v48 }
  0x4c   :  { %556 = vmatprep.mubr.bf16.mxu0 %v960_v50 }
  0x4d   :  { %638 = vmatmul.mubr.bf16.gmra.mrb[16].mxu1 %v953_v49 }
  0x4e   :  { %828 = vmatprep.mubr.msk.bf16.mxu1 %vm451_vm0, %v957_v51 }
  0x53   :  { %557 = vmatmul.mubr.bf16.gmra.mrb[24].mxu0 %v962_v52 }
  0x54   :  { %564 = vmatprep.mubr.bf16.mxu0 %v966_v54 }
  0x55   :  { %646 = vmatmul.mubr.bf16.gmra.mrb[20].mxu1 %v959_v53 }
  0x56   :  { %829 = vmatprep.mubr.msk.bf16.mxu1 %vm451_vm0, %v963_v55 }
  0x5b   :  { %565 = vmatmul.mubr.bf16.gmra.mrb[28].mxu0 %v968_v56 }
  0x5d   :  { %654 = vmatmul.mubr.bf16.gmra.mrb[24].mxu1 %v965_v57 }
  0x5e   :  { %830 = vmatprep.mubr.msk.bf16.mxu1 %vm451_vm0, %v969_v58 }
  0x65   :  { %662 = vmatmul.mubr.bf16.gmra.mrb[28].mxu1 %v971_v59 }
  0xf6   :  { %v848_v60 = vpop.f32.mrb[0].mxu0 }
  0xf7   :  { %v849_v61 = vpop.f32.mrb[1].mxu0 }
  0xf8   :  { %v850_v62 = vadd.f32 %v849_v61, %v848_v60  ;;  %v851_v63 = vpop.f32.mrb[2].mxu0 }
  0xf9   :  { %v852_v0 = vpop.f32.mrb[3].mxu0 }
  0xfa   :  { %v853_v1 = vadd.f32 %v852_v0, %v851_v63 }
  0xfe   :  { %v854_v2 = vpop.f32.mrb[4].mxu0 }
  0xff   :  { %v855_v5 = vpop.f32.mrb[5].mxu0 }
 0x100   :  { %v607_v3 = vpop.f32.mrb[0].mxu1  ;;  %v856_v8 = vadd.f32 %v855_v5, %v854_v2  ;;  %v857_v9 = vpop.f32.mrb[6].mxu0 }
 0x101   :  { %v608_v6 = vadd.f32 %v850_v62, %v607_v3  ;;  %v609_v7 = vpop.f32.mrb[1].mxu1  ;;  %v858_v11 = vpop.f32.mrb[7].mxu0 }
 0x102   :  { %v610_v10 = vpop.f32.mrb[2].mxu1  ;;  %v859_v15 = vadd.f32 %v858_v11, %v857_v9 }
 0x103   :  { %v728_v12 = vadd.f32 %v1192_v4, %v608_v6  ;;  %v611_v13 = vadd.f32 %v853_v1, %v610_v10  ;;  %v612_v14 = vpop.f32.mrb[3].mxu1 }
 0x105   :  { %744 = vst [vmem:[%s1261_s3] sm:$0xff] %v728_v12  ;;  %v729_v16 = vadd.f32 %v1192_v4, %v611_v13 }
 0x106   :  { %v860_v17 = vpop.f32.mrb[8].mxu0 }
 0x107   :  { %745 = vst [vmem:[%s1261_s3 + $0x8] sm:$0xff] %v729_v16  ;;  %v861_v19 = vpop.f32.mrb[9].mxu0 }
 0x108   :  { %v615_v18 = vpop.f32.mrb[4].mxu1  ;;  %v862_v22 = vadd.f32 %v861_v19, %v860_v17  ;;  %v863_v23 = vpop.f32.mrb[10].mxu0 }
 0x109   :  { %v616_v20 = vadd.f32 %v856_v8, %v615_v18  ;;  %v617_v21 = vpop.f32.mrb[5].mxu1  ;;  %v864_v25 = vpop.f32.mrb[11].mxu0 }
 0x10a   :  { %v618_v24 = vpop.f32.mrb[6].mxu1  ;;  %v865_v29 = vadd.f32 %v864_v25, %v863_v23 }
 0x10b   :  { %v730_v26 = vadd.f32 %v1192_v4, %v616_v20  ;;  %v619_v27 = vadd.f32 %v859_v15, %v618_v24  ;;  %v620_v28 = vpop.f32.mrb[7].mxu1 }
 0x10d   :  { %746 = vst [vmem:[%s1261_s3 + $0x10] sm:$0xff] %v730_v26  ;;  %v731_v30 = vadd.f32 %v1192_v4, %v619_v27 }
 0x10e   :  { %v866_v31 = vpop.f32.mrb[12].mxu0 }
 0x10f   :  { %747 = vst [vmem:[%s1261_s3 + $0x18] sm:$0xff] %v731_v30  ;;  %v867_v33 = vpop.f32.mrb[13].mxu0 }
 0x110   :  { %v623_v32 = vpop.f32.mrb[8].mxu1  ;;  %v868_v36 = vadd.f32 %v867_v33, %v866_v31  ;;  %v869_v37 = vpop.f32.mrb[14].mxu0 }
 0x111   :  { %v624_v34 = vadd.f32 %v862_v22, %v623_v32  ;;  %v625_v35 = vpop.f32.mrb[9].mxu1  ;;  %v870_v39 = vpop.f32.mrb[15].mxu0 }
 0x112   :  { %v626_v38 = vpop.f32.mrb[10].mxu1  ;;  %v871_v43 = vadd.f32 %v870_v39, %v869_v37 }
 0x113   :  { %v732_v40 = vadd.f32 %v1192_v4, %v624_v34  ;;  %v627_v41 = vadd.f32 %v865_v29, %v626_v38  ;;  %v628_v42 = vpop.f32.mrb[11].mxu1 }
 0x115   :  { %748 = vst [vmem:[%s1261_s3 + $0x20] sm:$0xff] %v732_v40  ;;  %v733_v44 = vadd.f32 %v1192_v4, %v627_v41 }
 0x116   :  { %v872_v45 = vpop.f32.mrb[16].mxu0 }
 0x117   :  { %749 = vst [vmem:[%s1261_s3 + $0x28] sm:$0xff] %v733_v44  ;;  %v873_v47 = vpop.f32.mrb[17].mxu0 }
 0x118   :  { %v631_v46 = vpop.f32.mrb[12].mxu1  ;;  %v874_v50 = vadd.f32 %v873_v47, %v872_v45  ;;  %v875_v51 = vpop.f32.mrb[18].mxu0 }
 0x119   :  { %v632_v48 = vadd.f32 %v868_v36, %v631_v46  ;;  %v633_v49 = vpop.f32.mrb[13].mxu1  ;;  %v876_v53 = vpop.f32.mrb[19].mxu0 }
 0x11a   :  { %v634_v52 = vpop.f32.mrb[14].mxu1  ;;  %v877_v57 = vadd.f32 %v876_v53, %v875_v51 }
 0x11b   :  { %v734_v54 = vadd.f32 %v1192_v4, %v632_v48  ;;  %v635_v55 = vadd.f32 %v871_v43, %v634_v52  ;;  %v636_v56 = vpop.f32.mrb[15].mxu1 }
 0x11d   :  { %750 = vst [vmem:[%s1261_s3 + $0x30] sm:$0xff] %v734_v54  ;;  %v735_v58 = vadd.f32 %v1192_v4, %v635_v55 }
 0x11e   :  { %v878_v59 = vpop.f32.mrb[20].mxu0 }
 0x11f   :  { %751 = vst [vmem:[%s1261_s3 + $0x38] sm:$0xff] %v735_v58  ;;  %v879_v61 = vpop.f32.mrb[21].mxu0 }
 0x120   :  { %v639_v60 = vpop.f32.mrb[16].mxu1  ;;  %v880_v0 = vadd.f32 %v879_v61, %v878_v59  ;;  %v881_v1 = vpop.f32.mrb[22].mxu0 }
 0x121   :  { %v640_v62 = vadd.f32 %v874_v50, %v639_v60  ;;  %v641_v63 = vpop.f32.mrb[17].mxu1  ;;  %v882_v3 = vpop.f32.mrb[23].mxu0 }
 0x122   :  { %v642_v2 = vpop.f32.mrb[18].mxu1  ;;  %v883_v8 = vadd.f32 %v882_v3, %v881_v1 }
 0x123   :  { %v736_v5 = vadd.f32 %v1192_v4, %v640_v62  ;;  %v643_v6 = vadd.f32 %v877_v57, %v642_v2  ;;  %v644_v7 = vpop.f32.mrb[19].mxu1 }
 0x125   :  { %752 = vst [vmem:[%s1261_s3 + $0x40] sm:$0xff] %v736_v5  ;;  %v737_v9 = vadd.f32 %v1192_v4, %v643_v6 }
 0x126   :  { %v884_v10 = vpop.f32.mrb[24].mxu0 }
 0x127   :  { %753 = vst [vmem:[%s1261_s3 + $0x48] sm:$0xff] %v737_v9  ;;  %v885_v12 = vpop.f32.mrb[25].mxu0 }
 0x128   :  { %v647_v11 = vpop.f32.mrb[20].mxu1  ;;  %v886_v15 = vadd.f32 %v885_v12, %v884_v10  ;;  %v887_v16 = vpop.f32.mrb[26].mxu0 }
 0x129   :  { %v648_v13 = vadd.f32 %v880_v0, %v647_v11  ;;  %v649_v14 = vpop.f32.mrb[21].mxu1  ;;  %v888_v18 = vpop.f32.mrb[27].mxu0 }
 0x12a   :  { %v650_v17 = vpop.f32.mrb[22].mxu1  ;;  %v889_v22 = vadd.f32 %v888_v18, %v887_v16 }
 0x12b   :  { %v738_v19 = vadd.f32 %v1192_v4, %v648_v13  ;;  %v651_v20 = vadd.f32 %v883_v8, %v650_v17  ;;  %v652_v21 = vpop.f32.mrb[23].mxu1 }
 0x12d   :  { %754 = vst [vmem:[%s1261_s3 + $0x50] sm:$0xff] %v738_v19  ;;  %v739_v23 = vadd.f32 %v1192_v4, %v651_v20 }
 0x12e   :  { %v890_v24 = vpop.f32.mrb[28].mxu0 }
 0x12f   :  { %755 = vst [vmem:[%s1261_s3 + $0x58] sm:$0xff] %v739_v23  ;;  %v891_v26 = vpop.f32.mrb[29].mxu0 }
 0x130   :  { %v655_v25 = vpop.f32.mrb[24].mxu1  ;;  %v892_v29 = vadd.f32 %v891_v26, %v890_v24  ;;  %v893_v30 = vpop.f32.mrb[30].mxu0 }
 0x131   :  { %v656_v27 = vadd.f32 %v886_v15, %v655_v25  ;;  %v657_v28 = vpop.f32.mrb[25].mxu1  ;;  %v894_v32 = vpop.f32.mrb[31].mxu0 }
 0x132   :  { %v658_v31 = vpop.f32.mrb[26].mxu1  ;;  %v895_v36 = vadd.f32 %v894_v32, %v893_v30 }
 0x133   :  { %v740_v33 = vadd.f32 %v1192_v4, %v656_v27  ;;  %v659_v34 = vadd.f32 %v889_v22, %v658_v31  ;;  %v660_v35 = vpop.f32.mrb[27].mxu1 }
 0x135   :  { %756 = vst [vmem:[%s1261_s3 + $0x60] sm:$0xff] %v740_v33  ;;  %v741_v37 = vadd.f32 %v1192_v4, %v659_v34 }
 0x137   :  { %757 = vst [vmem:[%s1261_s3 + $0x68] sm:$0xff] %v741_v37 }
 0x138   :  { %v663_v38 = vpop.f32.mrb[28].mxu1 }
 0x139   :  { %v664_v39 = vadd.f32 %v892_v29, %v663_v38  ;;  %v665_v40 = vpop.f32.mrb[29].mxu1 }
 0x13a   :  { %v666_v41 = vpop.f32.mrb[30].mxu1 }
 0x13b   :  { %v742_v42 = vadd.f32 %v1192_v4, %v664_v39  ;;  %v667_v43 = vadd.f32 %v895_v36, %v666_v41  ;;  %v668_v44 = vpop.f32.mrb[31].mxu1 }
 0x13d   :  { %758 = vst [vmem:[%s1261_s3 + $0x70] sm:$0xff] %v742_v42  ;;  %v743_v45 = vadd.f32 %v1192_v4, %v667_v43 }
 0x13f   :  { %759 = vst [vmem:[%s1261_s3 + $0x78] sm:$0xff] %v743_v45 }

</bundles_post_ra>
